<compile_context>
chip_gen: v7x
topology: tpu7x:2x2x1
jax: 0.10.0
libtpu: 0.0.40
codegen_flags: <defaults>
</compile_context>

<pallas_src>
import functools
import math

import jax
import jax.numpy as jnp
from jax.experimental import pallas as pl
from jax.experimental.pallas import tpu as pltpu


# ---------------------------------------------------------------------------
# In-kernel helpers
# ---------------------------------------------------------------------------
def _prenorm(x, alpha, beta, eps):
    """PyTorch-style LayerNormalization: alpha*(x-mean)/(std+eps)+beta,
    std unbiased (ddof=1) and eps added to std (matches the module spec)."""
    d = x.shape[-1]
    mean = jnp.mean(x, axis=-1, keepdims=True)
    xc = x - mean
    var = jnp.sum(xc * xc, axis=-1, keepdims=True) * (1.0 / (d - 1))
    return alpha * xc / (jnp.sqrt(var) + eps) + beta


# ---------------------------------------------------------------------------
# Kernel 1: LayerNorm + packed QKV + multi-head attention + Wo + residual
#           (one grid step per batch element)
# ---------------------------------------------------------------------------
def _attn_block_kernel(x_ref, mask_ref, wqkv_ref, bqkv_ref, wo_ref, bo_ref,
                       ln_a_ref, ln_b_ref, o_ref, *, num_heads, eps):
    S = x_ref.shape[1]
    D = x_ref.shape[2]
    d_k = D // num_heads
    scale = 1.0 / math.sqrt(d_k)
    mm_dt = wqkv_ref.dtype              # matmul operand dtype (bf16 in production)

    x = x_ref[0].astype(jnp.float32)                       # (S, D) residual input
    n = _prenorm(x, ln_a_ref[...], ln_b_ref[...], eps)     # (S, D) f32

    # Packed QKV projection: one lane-dense (S, D) @ (D, 3D) MXU matmul,
    # bf16 operands, f32 accumulation.
    qkv = jnp.dot(n.astype(mm_dt), wqkv_ref[...],
                  preferred_element_type=jnp.float32)
    qkv = qkv + bqkv_ref[...].astype(jnp.float32)          # (S, 3D) f32

    # Fold the softmax scale into Q once: O(S*D) work instead of O(H*S^2).
    q = (qkv[:, :D] * scale).astype(mm_dt)
    k = qkv[:, D:2 * D].astype(mm_dt)
    v = qkv[:, 2 * D:].astype(mm_dt)

    # Mask predicate computed once per batch element, reused by every head.
    masked = mask_ref[0].astype(jnp.int32) == 0            # (S, S) bool

    # TODO(synk): for large num_heads / seq, switch to lax.fori_loop over heads
    # (or a head grid axis) with a VMEM accumulator to bound live ranges, add a
    # query-tile grid axis, and emit QKV in a head-aligned (128-lane padded)
    # layout so head slices are free views.
    head_out = []
    for h in range(num_heads):
        lo = h * d_k
        qh = q[:, lo:lo + d_k]
        kh = k[:, lo:lo + d_k]
        vh = v[:, lo:lo + d_k]

        s = jnp.einsum("qd,kd->qk", qh, kh,
                       preferred_element_type=jnp.float32)      # (S, S) f32
        s = jnp.where(masked, -1e9, s)
        s = s - jnp.max(s, axis=-1, keepdims=True)              # stable softmax
        p = jnp.exp(s)
        p = p * pl.reciprocal(jnp.sum(p, axis=-1, keepdims=True), approx=True)
        head_out.append(jnp.dot(p.astype(mm_dt), vh,
                                preferred_element_type=jnp.float32))

    attn = jnp.concatenate(head_out, axis=-1)               # (S, D) f32
    # Single full-K output projection instead of H narrow (K=d_k) matmuls.
    out = x + jnp.dot(attn.astype(mm_dt), wo_ref[...],
                      preferred_element_type=jnp.float32)
    out = out + bo_ref[...].astype(jnp.float32)
    o_ref[0] = out.astype(o_ref.dtype)


# ---------------------------------------------------------------------------
# Kernel 2: LayerNorm + FFN (Linear -> ReLU -> Linear) + residual
#           (tiled over batch x query tiles)
# ---------------------------------------------------------------------------
def _norm_ffn_kernel(x_ref, w1_ref, b1_ref, w2_ref, b2_ref, ln_a_ref, ln_b_ref,
                     o_ref, *, eps):
    mm_dt = w1_ref.dtype
    x = x_ref[0].astype(jnp.float32)                         # (tq, D)
    n = _prenorm(x, ln_a_ref[...], ln_b_ref[...], eps)
    h = jnp.dot(n.astype(mm_dt), w1_ref[...],
                preferred_element_type=jnp.float32) + b1_ref[...].astype(jnp.float32)
    h = jnp.maximum(h, 0.0)                                  # ReLU in f32 (v5e-safe)
    y = jnp.dot(h.astype(mm_dt), w2_ref[...],
                preferred_element_type=jnp.float32) + b2_ref[...].astype(jnp.float32)
    o_ref[0] = (x + y).astype(o_ref.dtype)
    # TODO(synk): at production d_model/d_ff, K/N-tile w1/w2 (extra grid axes +
    # f32 accumulator scratch) instead of keeping full weights VMEM-resident.


# ---------------------------------------------------------------------------
# Spec / tuning helpers
# ---------------------------------------------------------------------------
def _const_spec(shape, single_buffer):
    """BlockSpec for weights/biases with a constant index_map.

    These blocks never change across grid steps, so they do not need the
    default double buffering; request a single VMEM buffer when supported.
    """
    idx = lambda *_: (0,) * len(shape)
    if single_buffer:
        return pl.BlockSpec(shape, idx, pipeline_mode=pl.Buffered(1))
    return pl.BlockSpec(shape, idx)


def _vmem_limit_bytes():
    """Generation-aware scoped-VMEM limit (v7x has only 64 MiB physical)."""
    kind = ""
    try:
        kind = jax.devices()[0].device_kind.lower()
    except Exception:
        pass
    if "v7" in kind or "tpu7" in kind:
        return 32 * 1024 * 1024
    if "v5" in kind or "v6" in kind:
        return 96 * 1024 * 1024
    return 64 * 1024 * 1024


# ---------------------------------------------------------------------------
# Forward wrapper
# ---------------------------------------------------------------------------
@functools.partial(
    jax.jit,
    static_argnames=("num_heads", "tq", "eps", "single_buffer_weights"))
def encoder_block_forward(x, src_mask, params, *, num_heads, tq=512, eps=1e-6,
                          single_buffer_weights=True):
    """x: (B, S, D); src_mask: (B, S, S) int (0 == masked); params: pack_params()."""
    B, S, D = x.shape
    d_ff = params["w1t"].shape[1]

    # int8 mask: 1 byte/elem of DMA traffic instead of 4.
    # TODO(synk): for pure padding masks, pass per-batch valid lengths via
    # scalar prefetch and build the mask in-kernel with broadcasted_iota.
    if src_mask.dtype != jnp.int8:
        src_mask = src_mask.astype(jnp.int8)

    vmem_limit = _vmem_limit_bytes()
    cspec = functools.partial(_const_spec, single_buffer=single_buffer_weights)

    # ---- Stage 1 (fused): LN1 + QKV + attention + Wo + residual ----------
    # TODO(synk): add a query-tile grid axis (B, S//tq) with K/V resident for
    # large S / better v7x megacore occupancy at small B.
    attn_out = pl.pallas_call(
        functools.partial(_attn_block_kernel, num_heads=num_heads, eps=eps),
        out_shape=jax.ShapeDtypeStruct((B, S, D), x.dtype),
        grid_spec=pltpu.PrefetchScalarGridSpec(
            num_scalar_prefetch=0,
            grid=(B,),
            in_specs=[
                pl.BlockSpec((1, S, D), lambda b: (b, 0, 0)),
                pl.BlockSpec((1, S, S), lambda b: (b, 0, 0)),
                cspec((D, 3 * D)),      # wqkv  (bf16)
                cspec((1, 3 * D)),      # bqkv  (f32)
                cspec((D, D)),          # wo^T  (bf16)
                cspec((1, D)),          # bo    (f32)
                cspec((1, 1)),          # ln1 alpha
                cspec((1, 1)),          # ln1 beta
            ],
            out_specs=pl.BlockSpec((1, S, D), lambda b: (b, 0, 0)),
        ),
        compiler_params=pltpu.CompilerParams(
            dimension_semantics=("parallel",),
            vmem_limit_bytes=vmem_limit,
        ),
        cost_estimate=pl.CostEstimate(
            flops=2 * B * S * D * 3 * D + 4 * B * S * S * D + 2 * B * S * D * D,
            transcendentals=B * num_heads * S * S,
            bytes_accessed=(8 * B * S * D + B * S * S
                            + 2 * (3 * D * D + D * D) + 4 * (4 * D + 2)),
        ),
    )(x, src_mask, params["wqkv"], params["bqkv"], params["wot"], params["bo"],
      params["ln1_alpha"], params["ln1_beta"])

    # ---- Stage 2: LN2 + FFN + residual ------------------------------------
    tq_eff = min(tq, S)
    if S % tq_eff != 0:
        tq_eff = S                      # fall back to one whole-sequence tile
    n_tq = S // tq_eff

    out = pl.pallas_call(
        functools.partial(_norm_ffn_kernel, eps=eps),
        out_shape=jax.ShapeDtypeStruct((B, S, D), x.dtype),
        grid_spec=pltpu.PrefetchScalarGridSpec(
            num_scalar_prefetch=0,
            grid=(B, n_tq),
            in_specs=[
                pl.BlockSpec((1, tq_eff, D), lambda b, t: (b, t, 0)),
                cspec((D, d_ff)),       # w1^T (bf16)
                cspec((1, d_ff)),       # b1   (f32)
                cspec((d_ff, D)),       # w2^T (bf16)
                cspec((1, D)),          # b2   (f32)
                cspec((1, 1)),          # ln2 alpha
                cspec((1, 1)),          # ln2 beta
            ],
            out_specs=pl.BlockSpec((1, tq_eff, D), lambda b, t: (b, t, 0)),
        ),
        compiler_params=pltpu.CompilerParams(
            dimension_semantics=("parallel", "parallel"),
            vmem_limit_bytes=vmem_limit,
        ),
        cost_estimate=pl.CostEstimate(
            flops=4 * B * S * D * d_ff,
            transcendentals=0,
            bytes_accessed=8 * B * S * D + 4 * D * d_ff + 4 * (d_ff + D + 2),
        ),
    )(attn_out, params["w1t"], params["b1"], params["w2t"], params["b2"],
      params["ln2_alpha"], params["ln2_beta"])

    return out


# ---------------------------------------------------------------------------
# Parameter initialization / packing (done once, outside the jitted forward)
# ---------------------------------------------------------------------------
def init_raw_params(key, d_model, d_ff):
    """PyTorch-layout parameters (nn.Linear stores weight as (out, in))."""
    ks = jax.random.split(key, 6)

    def linear(k, fan_in, fan_out):
        kw, kb = jax.random.split(k)
        bound = 1.0 / math.sqrt(fan_in)
        w = jax.random.uniform(kw, (fan_out, fan_in), jnp.float32, -bound, bound)
        b = jax.random.uniform(kb, (fan_out,), jnp.float32, -bound, bound)
        return w, b

    wq, bq = linear(ks[0], d_model, d_model)
    wk, bk = linear(ks[1], d_model, d_model)
    wv, bv = linear(ks[2], d_model, d_model)
    wo, bo = linear(ks[3], d_model, d_model)
    w1, b1 = linear(ks[4], d_model, d_ff)
    w2, b2 = linear(ks[5], d_ff, d_model)
    return dict(
        wq=wq, bq=bq, wk=wk, bk=bk, wv=wv, bv=bv, wo=wo, bo=bo,
        w1=w1, b1=b1, w2=w2, b2=b2,
        ln1_alpha=jnp.full((1,), 1.3, jnp.float32),
        ln1_beta=jnp.full((1,), -0.2, jnp.float32),
        ln2_alpha=jnp.full((1,), 0.7, jnp.float32),
        ln2_beta=jnp.full((1,), 0.1, jnp.float32),
    )


def pack_params(p, mm_dtype=jnp.bfloat16):
    """Pre-transpose / pre-pack once; weights stored in the MXU operand dtype
    (bf16 by default: native MXU throughput + half the DMA/VMEM footprint),
    biases and LN scalars stay f32 (added after the f32 accumulation)."""
    return dict(
        wqkv=jnp.concatenate([p["wq"].T, p["wk"].T, p["wv"].T],
                             axis=1).astype(mm_dtype),                 # (D, 3D)
        bqkv=jnp.concatenate([p["bq"], p["bk"], p["bv"]])[None, :]
            .astype(jnp.float32),                                      # (1, 3D)
        wot=p["wo"].T.astype(mm_dtype), bo=p["bo"][None, :].astype(jnp.float32),
        w1t=p["w1"].T.astype(mm_dtype), b1=p["b1"][None, :].astype(jnp.float32),
        w2t=p["w2"].T.astype(mm_dtype), b2=p["b2"][None, :].astype(jnp.float32),
        ln1_alpha=p["ln1_alpha"].reshape(1, 1).astype(jnp.float32),
        ln1_beta=p["ln1_beta"].reshape(1, 1).astype(jnp.float32),
        ln2_alpha=p["ln2_alpha"].reshape(1, 1).astype(jnp.float32),
        ln2_beta=p["ln2_beta"].reshape(1, 1).astype(jnp.float32),
    )


# ---------------------------------------------------------------------------
# Pure-JAX reference (intended semantics of the PyTorch EncoderBlock, eval mode)
# ---------------------------------------------------------------------------
def reference_encoder_block(x, mask, p, *, num_heads, eps=1e-6):
    def ln(t, alpha, beta):
        mean = t.mean(axis=-1, keepdims=True)
        std = jnp.std(t, axis=-1, keepdims=True, ddof=1)
        return alpha * (t - mean) / (std + eps) + beta

    B, S, D = x.shape
    d_k = D // num_heads

    n1 = ln(x, p["ln1_alpha"], p["ln1_beta"])
    q = n1 @ p["wq"].T + p["bq"]
    k = n1 @ p["wk"].T + p["bk"]
    v = n1 @ p["wv"].T + p["bv"]

    def split(t):
        return t.reshape(B, S, num_heads, d_k).transpose(0, 2, 1, 3)

    q, k, v = split(q), split(k), split(v)
    s = (q @ k.transpose(0, 1, 3, 2)) / math.sqrt(d_k)
    s = jnp.where(mask[:, None, :, :] == 0, -1e9, s)
    a = jax.nn.softmax(s, axis=-1)
    o = (a @ v).transpose(0, 2, 1, 3).reshape(B, S, D)
    x = x + o @ p["wo"].T + p["bo"]

    n2 = ln(x, p["ln2_alpha"], p["ln2_beta"])
    ff = jnp.maximum(n2 @ p["w1"].T + p["b1"], 0.0) @ p["w2"].T + p["b2"]
    return x + ff


# ---------------------------------------------------------------------------
# Demo / self-test
# ---------------------------------------------------------------------------
if __name__ == "__main__":
    batch, seq, d_model, num_heads, d_ff = 2, 8, 32, 4, 64
    # TODO(synk): dropout layers are identity (eval mode); training-mode dropout
    # would use pltpu.prng_seed / pltpu.prng_random_bits inside the kernels.

    key = jax.random.PRNGKey(0)
    kx, kp = jax.random.split(key)
    x = jax.random.normal(kx, (batch, seq, d_model), jnp.float32)

    # Padding-style source mask (int8): batch 0 keeps all 8 keys, batch 1 keeps 6.
    key_pos = jnp.arange(seq)
    valid = jnp.array([seq, seq - 2])
    src_mask = jnp.broadcast_to(
        (key_pos[None, None, :] < valid[:, None, None]).astype(jnp.int8),
        (batch, seq, seq),
    )

    raw = init_raw_params(kp, d_model, d_ff)
    packed = pack_params(raw)                 # bf16 matmul weights, f32 biases

    # f32 reference with scoped (not global) high matmul precision.
    with jax.default_matmul_precision("highest"):
        ref = jax.block_until_ready(
            reference_encoder_block(x, src_mask, raw, num_heads=num_heads))

    def run(single_buffer):
        o = encoder_block_forward(x, src_mask, packed, num_heads=num_heads,
                                  single_buffer_weights=single_buffer)
        o = jax.block_until_ready(o)
        return o, float(jnp.max(jnp.abs(o - ref)))

    try:
        out, err = run(True)
        ok = err < 1e-1
    except Exception:
        ok = False
    if not ok:
        # Fallback if pl.Buffered(1) single-buffering is unsupported on this JAX.
        out, err = run(False)

    assert out.shape == (batch, seq, d_model)
    # Tolerance accounts for bf16 matmul operands (f32 accumulation) and the
    # EUP approximate reciprocal vs the full-f32 reference.
    assert err < 1e-1, f"mismatch vs reference: max abs diff {err}"

    print("KERNEL_OK")
</pallas_src>

<mosaic_0001>
module attributes {stable_mosaic.version = 11 : i64} {
  func.func @_norm_ffn_kernel(%arg0: i32, %arg1: i32, %arg2: memref<1x8x32xf32, #tpu.memory_space<vmem>>, %arg3: memref<32x64xbf16, #tpu.memory_space<vmem>>, %arg4: memref<1x64xf32, #tpu.memory_space<vmem>>, %arg5: memref<64x32xbf16, #tpu.memory_space<vmem>>, %arg6: memref<1x32xf32, #tpu.memory_space<vmem>>, %arg7: memref<1x1xf32, #tpu.memory_space<vmem>>, %arg8: memref<1x1xf32, #tpu.memory_space<vmem>>, %arg9: memref<1x8x32xf32, #tpu.memory_space<vmem>>) attributes {dimension_semantics = [#tpu.dimension_semantics<parallel>, #tpu.dimension_semantics<parallel>], iteration_bounds = array<i64: 2, 1>, scalar_prefetch = 0 : i64, scratch_operands = 0 : i64, tpu.core_type = #tpu.core_type<tc>, window_params = [{transform_indices = @transform_0, window_bounds = array<i64: 1, 8, 32>}, {pipeline_mode = #tpu.pipeline_mode<synchronous>, transform_indices = @transform_1, window_bounds = array<i64: 32, 64>}, {pipeline_mode = #tpu.pipeline_mode<synchronous>, transform_indices = @transform_2, window_bounds = array<i64: 1, 64>}, {pipeline_mode = #tpu.pipeline_mode<synchronous>, transform_indices = @transform_3, window_bounds = array<i64: 64, 32>}, {pipeline_mode = #tpu.pipeline_mode<synchronous>, transform_indices = @transform_4, window_bounds = array<i64: 1, 32>}, {pipeline_mode = #tpu.pipeline_mode<synchronous>, transform_indices = @transform_5, window_bounds = array<i64: 1, 1>}, {pipeline_mode = #tpu.pipeline_mode<synchronous>, transform_indices = @transform_6, window_bounds = array<i64: 1, 1>}, {transform_indices = @transform_7, window_bounds = array<i64: 1, 8, 32>}]} {
    %c0 = arith.constant 0 : index
    %c0_0 = arith.constant 0 : index
    %c0_1 = arith.constant 0 : index
    %0 = vector.load %arg2[%c0, %c0_0, %c0_1] : memref<1x8x32xf32, #tpu.memory_space<vmem>>, vector<1x8x32xf32>
    %1 = vector.shape_cast %0 : vector<1x8x32xf32> to vector<8x32xf32>
    %c0_2 = arith.constant 0 : index
    %c0_3 = arith.constant 0 : index
    %2 = vector.load %arg7[%c0_2, %c0_3] : memref<1x1xf32, #tpu.memory_space<vmem>>, vector<1x1xf32>
    %c0_4 = arith.constant 0 : index
    %c0_5 = arith.constant 0 : index
    %3 = vector.load %arg8[%c0_4, %c0_5] : memref<1x1xf32, #tpu.memory_space<vmem>>, vector<1x1xf32>
    %cst = arith.constant dense<0.000000e+00> : vector<8xf32>
    %4 = vector.multi_reduction <add>, %1, %cst [1] : vector<8x32xf32> to vector<8xf32>
    %5 = vector.shape_cast %4 : vector<8xf32> to vector<8x1xf32>
    %cst_6 = arith.constant 3.200000e+01 : f32
    %6 = vector.broadcast %cst_6 : f32 to vector<8x1xf32>
    %7 = arith.divf %5, %6 : vector<8x1xf32>
    %8 = vector.broadcast %7 : vector<8x1xf32> to vector<8x32xf32>
    %9 = arith.subf %1, %8 : vector<8x32xf32>
    %10 = arith.mulf %9, %9 : vector<8x32xf32>
    %cst_7 = arith.constant dense<0.000000e+00> : vector<8xf32>
    %11 = vector.multi_reduction <add>, %10, %cst_7 [1] : vector<8x32xf32> to vector<8xf32>
    %12 = vector.shape_cast %11 : vector<8xf32> to vector<8x1xf32>
    %cst_8 = arith.constant 0.0322580636 : f32
    %13 = vector.broadcast %cst_8 : f32 to vector<8x1xf32>
    %14 = arith.mulf %12, %13 : vector<8x1xf32>
    %15 = vector.broadcast %2 : vector<1x1xf32> to vector<8x32xf32>
    %16 = arith.mulf %15, %9 : vector<8x32xf32>
    %17 = math.sqrt %14 : vector<8x1xf32>
    %cst_9 = arith.constant 9.99999997E-7 : f32
    %18 = vector.broadcast %cst_9 : f32 to vector<8x1xf32>
    %19 = arith.addf %17, %18 : vector<8x1xf32>
    %20 = vector.broadcast %19 : vector<8x1xf32> to vector<8x32xf32>
    %21 = arith.divf %16, %20 : vector<8x32xf32>
    %22 = vector.broadcast %3 : vector<1x1xf32> to vector<8x32xf32>
    %23 = arith.addf %21, %22 : vector<8x32xf32>
    %24 = arith.truncf %23 : vector<8x32xf32> to vector<8x32xbf16>
    %c0_10 = arith.constant 0 : index
    %c0_11 = arith.constant 0 : index
    %25 = vector.load %arg3[%c0_10, %c0_11] : memref<32x64xbf16, #tpu.memory_space<vmem>>, vector<32x64xbf16>
    %cst_12 = arith.constant dense<0.000000e+00> : vector<8x64xf32>
    %26 = tpu.matmul %24, %25, %cst_12 {dimension_numbers = #tpu.dot_dimension_numbers<[1], [0], [0], [1], [0, 0, 1, 1], [], []>} : vector<8x32xbf16>, vector<32x64xbf16>, vector<8x64xf32> -> vector<8x64xf32>
    %c0_13 = arith.constant 0 : index
    %c0_14 = arith.constant 0 : index
    %27 = vector.load %arg4[%c0_13, %c0_14] : memref<1x64xf32, #tpu.memory_space<vmem>>, vector<1x64xf32>
    %28 = vector.broadcast %27 : vector<1x64xf32> to vector<8x64xf32>
    %29 = arith.addf %26, %28 : vector<8x64xf32>
    %cst_15 = arith.constant 0.000000e+00 : f32
    %30 = vector.broadcast %cst_15 : f32 to vector<8x64xf32>
    %31 = arith.maximumf %29, %30 : vector<8x64xf32>
    %32 = arith.truncf %31 : vector<8x64xf32> to vector<8x64xbf16>
    %c0_16 = arith.constant 0 : index
    %c0_17 = arith.constant 0 : index
    %33 = vector.load %arg5[%c0_16, %c0_17] : memref<64x32xbf16, #tpu.memory_space<vmem>>, vector<64x32xbf16>
    %cst_18 = arith.constant dense<0.000000e+00> : vector<8x32xf32>
    %34 = tpu.matmul %32, %33, %cst_18 {dimension_numbers = #tpu.dot_dimension_numbers<[1], [0], [0], [1], [0, 0, 1, 1], [], []>} : vector<8x64xbf16>, vector<64x32xbf16>, vector<8x32xf32> -> vector<8x32xf32>
    %c0_19 = arith.constant 0 : index
    %c0_20 = arith.constant 0 : index
    %35 = vector.load %arg6[%c0_19, %c0_20] : memref<1x32xf32, #tpu.memory_space<vmem>>, vector<1x32xf32>
    %36 = vector.broadcast %35 : vector<1x32xf32> to vector<8x32xf32>
    %37 = arith.addf %34, %36 : vector<8x32xf32>
    %38 = arith.addf %1, %37 : vector<8x32xf32>
    %c0_21 = arith.constant 0 : index
    %c0_22 = arith.constant 0 : index
    %c0_23 = arith.constant 0 : index
    %39 = vector.load %arg9[%c0_21, %c0_22, %c0_23] : memref<1x8x32xf32, #tpu.memory_space<vmem>>, vector<1x8x32xf32>
    %40 = vector.shape_cast %39 : vector<1x8x32xf32> to vector<8x32xf32>
    %41 = vector.shape_cast %38 : vector<8x32xf32> to vector<1x8x32xf32>
    tpu.vector_store %arg9[%c0_21, %c0_22, %c0_23], %41 {strides = array<i32>} : memref<1x8x32xf32, #tpu.memory_space<vmem>>, vector<1x8x32xf32>,
    return
  }
  func.func @transform_0(%arg0: i32, %arg1: i32) -> (i32, i32, i32) {
    %c0_i32 = arith.constant 0 : i32
    %c0_i32_0 = arith.constant 0 : i32
    return %arg0, %arg1, %c0_i32 : i32, i32, i32
  }
  func.func @transform_1(%arg0: i32, %arg1: i32) -> (i32, i32) {
    %c0_i32 = arith.constant 0 : i32
    %c0_i32_0 = arith.constant 0 : i32
    %c0_i32_1 = arith.constant 0 : i32
    return %c0_i32, %c0_i32_0 : i32, i32
  }
  func.func @transform_2(%arg0: i32, %arg1: i32) -> (i32, i32) {
    %c0_i32 = arith.constant 0 : i32
    %c0_i32_0 = arith.constant 0 : i32
    %c0_i32_1 = arith.constant 0 : i32
    return %c0_i32, %c0_i32_0 : i32, i32
  }
  func.func @transform_3(%arg0: i32, %arg1: i32) -> (i32, i32) {
    %c0_i32 = arith.constant 0 : i32
    %c0_i32_0 = arith.constant 0 : i32
    %c0_i32_1 = arith.constant 0 : i32
    return %c0_i32, %c0_i32_0 : i32, i32
  }
  func.func @transform_4(%arg0: i32, %arg1: i32) -> (i32, i32) {
    %c0_i32 = arith.constant 0 : i32
    %c0_i32_0 = arith.constant 0 : i32
    %c0_i32_1 = arith.constant 0 : i32
    return %c0_i32, %c0_i32_0 : i32, i32
  }
  func.func @transform_5(%arg0: i32, %arg1: i32) -> (i32, i32) {
    %c0_i32 = arith.constant 0 : i32
    %c0_i32_0 = arith.constant 0 : i32
    %c0_i32_1 = arith.constant 0 : i32
    return %c0_i32, %c0_i32_0 : i32, i32
  }
  func.func @transform_6(%arg0: i32, %arg1: i32) -> (i32, i32) {
    %c0_i32 = arith.constant 0 : i32
    %c0_i32_0 = arith.constant 0 : i32
    %c0_i32_1 = arith.constant 0 : i32
    return %c0_i32, %c0_i32_0 : i32, i32
  }
  func.func @transform_7(%arg0: i32, %arg1: i32) -> (i32, i32, i32) {
    %c0_i32 = arith.constant 0 : i32
    %c0_i32_0 = arith.constant 0 : i32
    return %arg0, %arg1, %c0_i32 : i32, i32, i32
  }
}

module attributes {stable_mosaic.version = 11 : i64} {
  func.func @_attn_block_kernel(%arg0: i32, %arg1: memref<1x8x32xf32, #tpu.memory_space<vmem>>, %arg2: memref<1x8x8xi8, #tpu.memory_space<vmem>>, %arg3: memref<32x96xbf16, #tpu.memory_space<vmem>>, %arg4: memref<1x96xf32, #tpu.memory_space<vmem>>, %arg5: memref<32x32xbf16, #tpu.memory_space<vmem>>, %arg6: memref<1x32xf32, #tpu.memory_space<vmem>>, %arg7: memref<1x1xf32, #tpu.memory_space<vmem>>, %arg8: memref<1x1xf32, #tpu.memory_space<vmem>>, %arg9: memref<1x8x32xf32, #tpu.memory_space<vmem>>) attributes {dimension_semantics = [#tpu.dimension_semantics<parallel>], iteration_bounds = array<i64: 2>, scalar_prefetch = 0 : i64, scratch_operands = 0 : i64, tpu.core_type = #tpu.core_type<tc>, window_params = [{transform_indices = @transform_0, window_bounds = array<i64: 1, 8, 32>}, {transform_indices = @transform_1, window_bounds = array<i64: 1, 8, 8>}, {pipeline_mode = #tpu.pipeline_mode<synchronous>, transform_indices = @transform_2, window_bounds = array<i64: 32, 96>}, {pipeline_mode = #tpu.pipeline_mode<synchronous>, transform_indices = @transform_3, window_bounds = array<i64: 1, 96>}, {pipeline_mode = #tpu.pipeline_mode<synchronous>, transform_indices = @transform_4, window_bounds = array<i64: 32, 32>}, {pipeline_mode = #tpu.pipeline_mode<synchronous>, transform_indices = @transform_5, window_bounds = array<i64: 1, 32>}, {pipeline_mode = #tpu.pipeline_mode<synchronous>, transform_indices = @transform_6, window_bounds = array<i64: 1, 1>}, {pipeline_mode = #tpu.pipeline_mode<synchronous>, transform_indices = @transform_7, window_bounds = array<i64: 1, 1>}, {transform_indices = @transform_8, window_bounds = array<i64: 1, 8, 32>}]} {
    %c0 = arith.constant 0 : index
    %c0_0 = arith.constant 0 : index
    %c0_1 = arith.constant 0 : index
    %0 = vector.load %arg1[%c0, %c0_0, %c0_1] : memref<1x8x32xf32, #tpu.memory_space<vmem>>, vector<1x8x32xf32>
    %1 = vector.shape_cast %0 : vector<1x8x32xf32> to vector<8x32xf32>
    %c0_2 = arith.constant 0 : index
    %c0_3 = arith.constant 0 : index
    %2 = vector.load %arg7[%c0_2, %c0_3] : memref<1x1xf32, #tpu.memory_space<vmem>>, vector<1x1xf32>
    %c0_4 = arith.constant 0 : index
    %c0_5 = arith.constant 0 : index
    %3 = vector.load %arg8[%c0_4, %c0_5] : memref<1x1xf32, #tpu.memory_space<vmem>>, vector<1x1xf32>
    %cst = arith.constant dense<0.000000e+00> : vector<8xf32>
    %4 = vector.multi_reduction <add>, %1, %cst [1] : vector<8x32xf32> to vector<8xf32>
    %5 = vector.shape_cast %4 : vector<8xf32> to vector<8x1xf32>
    %cst_6 = arith.constant 3.200000e+01 : f32
    %6 = vector.broadcast %cst_6 : f32 to vector<8x1xf32>
    %7 = arith.divf %5, %6 : vector<8x1xf32>
    %8 = vector.broadcast %7 : vector<8x1xf32> to vector<8x32xf32>
    %9 = arith.subf %1, %8 : vector<8x32xf32>
    %10 = arith.mulf %9, %9 : vector<8x32xf32>
    %cst_7 = arith.constant dense<0.000000e+00> : vector<8xf32>
    %11 = vector.multi_reduction <add>, %10, %cst_7 [1] : vector<8x32xf32> to vector<8xf32>
    %12 = vector.shape_cast %11 : vector<8xf32> to vector<8x1xf32>
    %cst_8 = arith.constant 0.0322580636 : f32
    %13 = vector.broadcast %cst_8 : f32 to vector<8x1xf32>
    %14 = arith.mulf %12, %13 : vector<8x1xf32>
    %15 = vector.broadcast %2 : vector<1x1xf32> to vector<8x32xf32>
    %16 = arith.mulf %15, %9 : vector<8x32xf32>
    %17 = math.sqrt %14 : vector<8x1xf32>
    %cst_9 = arith.constant 9.99999997E-7 : f32
    %18 = vector.broadcast %cst_9 : f32 to vector<8x1xf32>
    %19 = arith.addf %17, %18 : vector<8x1xf32>
    %20 = vector.broadcast %19 : vector<8x1xf32> to vector<8x32xf32>
    %21 = arith.divf %16, %20 : vector<8x32xf32>
    %22 = vector.broadcast %3 : vector<1x1xf32> to vector<8x32xf32>
    %23 = arith.addf %21, %22 : vector<8x32xf32>
    %24 = arith.truncf %23 : vector<8x32xf32> to vector<8x32xbf16>
    %c0_10 = arith.constant 0 : index
    %c0_11 = arith.constant 0 : index
    %25 = vector.load %arg3[%c0_10, %c0_11] : memref<32x96xbf16, #tpu.memory_space<vmem>>, vector<32x96xbf16>
    %cst_12 = arith.constant dense<0.000000e+00> : vector<8x96xf32>
    %26 = tpu.matmul %24, %25, %cst_12 {dimension_numbers = #tpu.dot_dimension_numbers<[1], [0], [0], [1], [0, 0, 1, 1], [], []>} : vector<8x32xbf16>, vector<32x96xbf16>, vector<8x96xf32> -> vector<8x96xf32>
    %c0_13 = arith.constant 0 : index
    %c0_14 = arith.constant 0 : index
    %27 = vector.load %arg4[%c0_13, %c0_14] : memref<1x96xf32, #tpu.memory_space<vmem>>, vector<1x96xf32>
    %28 = vector.broadcast %27 : vector<1x96xf32> to vector<8x96xf32>
    %29 = arith.addf %26, %28 : vector<8x96xf32>
    %30 = vector.extract_strided_slice %29 {offsets = [0, 0], sizes = [8, 32], strides = [1, 1]} : vector<8x96xf32> to vector<8x32xf32>
    %cst_15 = arith.constant 0.353553385 : f32
    %31 = vector.broadcast %cst_15 : f32 to vector<8x32xf32>
    %32 = arith.mulf %30, %31 : vector<8x32xf32>
    %33 = arith.truncf %32 : vector<8x32xf32> to vector<8x32xbf16>
    %34 = vector.extract_strided_slice %29 {offsets = [0, 32], sizes = [8, 32], strides = [1, 1]} : vector<8x96xf32> to vector<8x32xf32>
    %35 = arith.truncf %34 : vector<8x32xf32> to vector<8x32xbf16>
    %36 = vector.extract_strided_slice %29 {offsets = [0, 64], sizes = [8, 32], strides = [1, 1]} : vector<8x96xf32> to vector<8x32xf32>
    %37 = arith.truncf %36 : vector<8x32xf32> to vector<8x32xbf16>
    %c0_16 = arith.constant 0 : index
    %c0_17 = arith.constant 0 : index
    %c0_18 = arith.constant 0 : index
    %38 = vector.load %arg2[%c0_16, %c0_17, %c0_18] : memref<1x8x8xi8, #tpu.memory_space<vmem>>, vector<1x8x8xi8>
    %39 = vector.shape_cast %38 : vector<1x8x8xi8> to vector<8x8xi8>
    %40 = arith.extsi %39 : vector<8x8xi8> to vector<8x8xi32>
    %c0_i32 = arith.constant 0 : i32
    %41 = vector.broadcast %c0_i32 : i32 to vector<8x8xi32>
    %42 = arith.cmpi eq, %40, %41 : vector<8x8xi32>
    %43 = vector.extract_strided_slice %33 {offsets = [0, 0], sizes = [8, 8], strides = [1, 1]} : vector<8x32xbf16> to vector<8x8xbf16>
    %44 = vector.extract_strided_slice %35 {offsets = [0, 0], sizes = [8, 8], strides = [1, 1]} : vector<8x32xbf16> to vector<8x8xbf16>
    %45 = vector.extract_strided_slice %37 {offsets = [0, 0], sizes = [8, 8], strides = [1, 1]} : vector<8x32xbf16> to vector<8x8xbf16>
    "tpu.trace_start"() <{level = 10 : i32, message = "qd,kd->qk"}> : () -> ()
    %cst_19 = arith.constant dense<0.000000e+00> : vector<8x8xf32>
    %46 = tpu.matmul %43, %44, %cst_19 {dimension_numbers = #tpu.dot_dimension_numbers<[1], [1], [0], [0], [0, 0, 1, 0], [], []>} : vector<8x8xbf16>, vector<8x8xbf16>, vector<8x8xf32> -> vector<8x8xf32>
    %cst_20 = arith.constant -1.000000e+09 : f32
    "tpu.trace_stop"() : () -> ()
    %47 = vector.broadcast %cst_20 : f32 to vector<8x8xf32>
    %48 = arith.select %42, %47, %46 : vector<8x8xi1>, vector<8x8xf32>
    %cst_21 = arith.constant dense<0xFF800000> : vector<8xf32>
    %49 = vector.multi_reduction <maximumf>, %48, %cst_21 [1] : vector<8x8xf32> to vector<8xf32>
    %50 = vector.shape_cast %49 : vector<8xf32> to vector<8x1xf32>
    %51 = vector.broadcast %50 : vector<8x1xf32> to vector<8x8xf32>
    %52 = arith.subf %48, %51 : vector<8x8xf32>
    %53 = math.exp %52 : vector<8x8xf32>
    %cst_22 = arith.constant dense<0.000000e+00> : vector<8xf32>
    %54 = vector.multi_reduction <add>, %53, %cst_22 [1] : vector<8x8xf32> to vector<8xf32>
    %55 = vector.shape_cast %54 : vector<8xf32> to vector<8x1xf32>
    %56 = tpu.reciprocal %55 {approx = true} : vector<8x1xf32> -> vector<8x1xf32>
    %57 = vector.broadcast %56 : vector<8x1xf32> to vector<8x8xf32>
    %58 = arith.mulf %53, %57 : vector<8x8xf32>
    %59 = arith.truncf %58 : vector<8x8xf32> to vector<8x8xbf16>
    %cst_23 = arith.constant dense<0.000000e+00> : vector<8x8xf32>
    %60 = tpu.matmul %59, %45, %cst_23 {dimension_numbers = #tpu.dot_dimension_numbers<[1], [0], [0], [1], [0, 0, 1, 1], [], []>} : vector<8x8xbf16>, vector<8x8xbf16>, vector<8x8xf32> -> vector<8x8xf32>
    %61 = vector.extract_strided_slice %33 {offsets = [0, 8], sizes = [8, 8], strides = [1, 1]} : vector<8x32xbf16> to vector<8x8xbf16>
    %62 = vector.extract_strided_slice %35 {offsets = [0, 8], sizes = [8, 8], strides = [1, 1]} : vector<8x32xbf16> to vector<8x8xbf16>
    %63 = vector.extract_strided_slice %37 {offsets = [0, 8], sizes = [8, 8], strides = [1, 1]} : vector<8x32xbf16> to vector<8x8xbf16>
    "tpu.trace_start"() <{level = 10 : i32, message = "qd,kd->qk"}> : () -> ()
    %cst_24 = arith.constant dense<0.000000e+00> : vector<8x8xf32>
    %64 = tpu.matmul %61, %62, %cst_24 {dimension_numbers = #tpu.dot_dimension_numbers<[1], [1], [0], [0], [0, 0, 1, 0], [], []>} : vector<8x8xbf16>, vector<8x8xbf16>, vector<8x8xf32> -> vector<8x8xf32>
    %cst_25 = arith.constant -1.000000e+09 : f32
    "tpu.trace_stop"() : () -> ()
    %65 = vector.broadcast %cst_25 : f32 to vector<8x8xf32>
    %66 = arith.select %42, %65, %64 : vector<8x8xi1>, vector<8x8xf32>
    %cst_26 = arith.constant dense<0xFF800000> : vector<8xf32>
    %67 = vector.multi_reduction <maximumf>, %66, %cst_26 [1] : vector<8x8xf32> to vector<8xf32>
    %68 = vector.shape_cast %67 : vector<8xf32> to vector<8x1xf32>
    %69 = vector.broadcast %68 : vector<8x1xf32> to vector<8x8xf32>
    %70 = arith.subf %66, %69 : vector<8x8xf32>
    %71 = math.exp %70 : vector<8x8xf32>
    %cst_27 = arith.constant dense<0.000000e+00> : vector<8xf32>
    %72 = vector.multi_reduction <add>, %71, %cst_27 [1] : vector<8x8xf32> to vector<8xf32>
    %73 = vector.shape_cast %72 : vector<8xf32> to vector<8x1xf32>
    %74 = tpu.reciprocal %73 {approx = true} : vector<8x1xf32> -> vector<8x1xf32>
    %75 = vector.broadcast %74 : vector<8x1xf32> to vector<8x8xf32>
    %76 = arith.mulf %71, %75 : vector<8x8xf32>
    %77 = arith.truncf %76 : vector<8x8xf32> to vector<8x8xbf16>
    %cst_28 = arith.constant dense<0.000000e+00> : vector<8x8xf32>
    %78 = tpu.matmul %77, %63, %cst_28 {dimension_numbers = #tpu.dot_dimension_numbers<[1], [0], [0], [1], [0, 0, 1, 1], [], []>} : vector<8x8xbf16>, vector<8x8xbf16>, vector<8x8xf32> -> vector<8x8xf32>
    %79 = vector.extract_strided_slice %33 {offsets = [0, 16], sizes = [8, 8], strides = [1, 1]} : vector<8x32xbf16> to vector<8x8xbf16>
    %80 = vector.extract_strided_slice %35 {offsets = [0, 16], sizes = [8, 8], strides = [1, 1]} : vector<8x32xbf16> to vector<8x8xbf16>
    %81 = vector.extract_strided_slice %37 {offsets = [0, 16], sizes = [8, 8], strides = [1, 1]} : vector<8x32xbf16> to vector<8x8xbf16>
    "tpu.trace_start"() <{level = 10 : i32, message = "qd,kd->qk"}> : () -> ()
    %cst_29 = arith.constant dense<0.000000e+00> : vector<8x8xf32>
    %82 = tpu.matmul %79, %80, %cst_29 {dimension_numbers = #tpu.dot_dimension_numbers<[1], [1], [0], [0], [0, 0, 1, 0], [], []>} : vector<8x8xbf16>, vector<8x8xbf16>, vector<8x8xf32> -> vector<8x8xf32>
    %cst_30 = arith.constant -1.000000e+09 : f32
    "tpu.trace_stop"() : () -> ()
    %83 = vector.broadcast %cst_30 : f32 to vector<8x8xf32>
    %84 = arith.select %42, %83, %82 : vector<8x8xi1>, vector<8x8xf32>
    %cst_31 = arith.constant dense<0xFF800000> : vector<8xf32>
    %85 = vector.multi_reduction <maximumf>, %84, %cst_31 [1] : vector<8x8xf32> to vector<8xf32>
    %86 = vector.shape_cast %85 : vector<8xf32> to vector<8x1xf32>
    %87 = vector.broadcast %86 : vector<8x1xf32> to vector<8x8xf32>
    %88 = arith.subf %84, %87 : vector<8x8xf32>
    %89 = math.exp %88 : vector<8x8xf32>
    %cst_32 = arith.constant dense<0.000000e+00> : vector<8xf32>
    %90 = vector.multi_reduction <add>, %89, %cst_32 [1] : vector<8x8xf32> to vector<8xf32>
    %91 = vector.shape_cast %90 : vector<8xf32> to vector<8x1xf32>
    %92 = tpu.reciprocal %91 {approx = true} : vector<8x1xf32> -> vector<8x1xf32>
    %93 = vector.broadcast %92 : vector<8x1xf32> to vector<8x8xf32>
    %94 = arith.mulf %89, %93 : vector<8x8xf32>
    %95 = arith.truncf %94 : vector<8x8xf32> to vector<8x8xbf16>
    %cst_33 = arith.constant dense<0.000000e+00> : vector<8x8xf32>
    %96 = tpu.matmul %95, %81, %cst_33 {dimension_numbers = #tpu.dot_dimension_numbers<[1], [0], [0], [1], [0, 0, 1, 1], [], []>} : vector<8x8xbf16>, vector<8x8xbf16>, vector<8x8xf32> -> vector<8x8xf32>
    %97 = vector.extract_strided_slice %33 {offsets = [0, 24], sizes = [8, 8], strides = [1, 1]} : vector<8x32xbf16> to vector<8x8xbf16>
    %98 = vector.extract_strided_slice %35 {offsets = [0, 24], sizes = [8, 8], strides = [1, 1]} : vector<8x32xbf16> to vector<8x8xbf16>
    %99 = vector.extract_strided_slice %37 {offsets = [0, 24], sizes = [8, 8], strides = [1, 1]} : vector<8x32xbf16> to vector<8x8xbf16>
    "tpu.trace_start"() <{level = 10 : i32, message = "qd,kd->qk"}> : () -> ()
    %cst_34 = arith.constant dense<0.000000e+00> : vector<8x8xf32>
    %100 = tpu.matmul %97, %98, %cst_34 {dimension_numbers = #tpu.dot_dimension_numbers<[1], [1], [0], [0], [0, 0, 1, 0], [], []>} : vector<8x8xbf16>, vector<8x8xbf16>, vector<8x8xf32> -> vector<8x8xf32>
    %cst_35 = arith.constant -1.000000e+09 : f32
    "tpu.trace_stop"() : () -> ()
    %101 = vector.broadcast %cst_35 : f32 to vector<8x8xf32>
    %102 = arith.select %42, %101, %100 : vector<8x8xi1>, vector<8x8xf32>
    %cst_36 = arith.constant dense<0xFF800000> : vector<8xf32>
    %103 = vector.multi_reduction <maximumf>, %102, %cst_36 [1] : vector<8x8xf32> to vector<8xf32>
    %104 = vector.shape_cast %103 : vector<8xf32> to vector<8x1xf32>
    %105 = vector.broadcast %104 : vector<8x1xf32> to vector<8x8xf32>
    %106 = arith.subf %102, %105 : vector<8x8xf32>
    %107 = math.exp %106 : vector<8x8xf32>
    %cst_37 = arith.constant dense<0.000000e+00> : vector<8xf32>
    %108 = vector.multi_reduction <add>, %107, %cst_37 [1] : vector<8x8xf32> to vector<8xf32>
    %109 = vector.shape_cast %108 : vector<8xf32> to vector<8x1xf32>
    %110 = tpu.reciprocal %109 {approx = true} : vector<8x1xf32> -> vector<8x1xf32>
    %111 = vector.broadcast %110 : vector<8x1xf32> to vector<8x8xf32>
    %112 = arith.mulf %107, %111 : vector<8x8xf32>
    %113 = arith.truncf %112 : vector<8x8xf32> to vector<8x8xbf16>
    %cst_38 = arith.constant dense<0.000000e+00> : vector<8x8xf32>
    %114 = tpu.matmul %113, %99, %cst_38 {dimension_numbers = #tpu.dot_dimension_numbers<[1], [0], [0], [1], [0, 0, 1, 1], [], []>} : vector<8x8xbf16>, vector<8x8xbf16>, vector<8x8xf32> -> vector<8x8xf32>
    %115 = tpu.concatenate %60, %78, %96, %114 in 1 : vector<8x8xf32>, vector<8x8xf32>, vector<8x8xf32>, vector<8x8xf32> -> vector<8x32xf32>
    %116 = arith.truncf %115 : vector<8x32xf32> to vector<8x32xbf16>
    %c0_39 = arith.constant 0 : index
    %c0_40 = arith.constant 0 : index
    %117 = vector.load %arg5[%c0_39, %c0_40] : memref<32x32xbf16, #tpu.memory_space<vmem>>, vector<32x32xbf16>
    %cst_41 = arith.constant dense<0.000000e+00> : vector<8x32xf32>
    %118 = tpu.matmul %116, %117, %cst_41 {dimension_numbers = #tpu.dot_dimension_numbers<[1], [0], [0], [1], [0, 0, 1, 1], [], []>} : vector<8x32xbf16>, vector<32x32xbf16>, vector<8x32xf32> -> vector<8x32xf32>
    %119 = arith.addf %1, %118 : vector<8x32xf32>
    %c0_42 = arith.constant 0 : index
    %c0_43 = arith.constant 0 : index
    %120 = vector.load %arg6[%c0_42, %c0_43] : memref<1x32xf32, #tpu.memory_space<vmem>>, vector<1x32xf32>
    %121 = vector.broadcast %120 : vector<1x32xf32> to vector<8x32xf32>
    %122 = arith.addf %119, %121 : vector<8x32xf32>
    %c0_44 = arith.constant 0 : index
    %c0_45 = arith.constant 0 : index
    %c0_46 = arith.constant 0 : index
    %123 = vector.load %arg9[%c0_44, %c0_45, %c0_46] : memref<1x8x32xf32, #tpu.memory_space<vmem>>, vector<1x8x32xf32>
    %124 = vector.shape_cast %123 : vector<1x8x32xf32> to vector<8x32xf32>
    %125 = vector.shape_cast %122 : vector<8x32xf32> to vector<1x8x32xf32>
    tpu.vector_store %arg9[%c0_44, %c0_45, %c0_46], %125 {strides = array<i32>} : memref<1x8x32xf32, #tpu.memory_space<vmem>>, vector<1x8x32xf32>,
    return
  }
  func.func @transform_0(%arg0: i32) -> (i32, i32, i32) {
    %c0_i32 = arith.constant 0 : i32
    %c0_i32_0 = arith.constant 0 : i32
    %c0_i32_1 = arith.constant 0 : i32
    return %arg0, %c0_i32, %c0_i32_0 : i32, i32, i32
  }
  func.func @transform_1(%arg0: i32) -> (i32, i32, i32) {
    %c0_i32 = arith.constant 0 : i32
    %c0_i32_0 = arith.constant 0 : i32
    %c0_i32_1 = arith.constant 0 : i32
    return %arg0, %c0_i32, %c0_i32_0 : i32, i32, i32
  }
  func.func @transform_2(%arg0: i32) -> (i32, i32) {
    %c0_i32 = arith.constant 0 : i32
    %c0_i32_0 = arith.constant 0 : i32
    %c0_i32_1 = arith.constant 0 : i32
    return %c0_i32, %c0_i32_0 : i32, i32
  }
  func.func @transform_3(%arg0: i32) -> (i32, i32) {
    %c0_i32 = arith.constant 0 : i32
    %c0_i32_0 = arith.constant 0 : i32
    %c0_i32_1 = arith.constant 0 : i32
    return %c0_i32, %c0_i32_0 : i32, i32
  }
  func.func @transform_4(%arg0: i32) -> (i32, i32) {
    %c0_i32 = arith.constant 0 : i32
    %c0_i32_0 = arith.constant 0 : i32
    %c0_i32_1 = arith.constant 0 : i32
    return %c0_i32, %c0_i32_0 : i32, i32
  }
  func.func @transform_5(%arg0: i32) -> (i32, i32) {
    %c0_i32 = arith.constant 0 : i32
    %c0_i32_0 = arith.constant 0 : i32
    %c0_i32_1 = arith.constant 0 : i32
    return %c0_i32, %c0_i32_0 : i32, i32
  }
  func.func @transform_6(%arg0: i32) -> (i32, i32) {
    %c0_i32 = arith.constant 0 : i32
    %c0_i32_0 = arith.constant 0 : i32
    %c0_i32_1 = arith.constant 0 : i32
    return %c0_i32, %c0_i32_0 : i32, i32
  }
  func.func @transform_7(%arg0: i32) -> (i32, i32) {
    %c0_i32 = arith.constant 0 : i32
    %c0_i32_0 = arith.constant 0 : i32
    %c0_i32_1 = arith.constant 0 : i32
    return %c0_i32, %c0_i32_0 : i32, i32
  }
  func.func @transform_8(%arg0: i32) -> (i32, i32, i32) {
    %c0_i32 = arith.constant 0 : i32
    %c0_i32_0 = arith.constant 0 : i32
    %c0_i32_1 = arith.constant 0 : i32
    return %arg0, %c0_i32, %c0_i32_0 : i32, i32, i32
  }
}

module attributes {stable_mosaic.version = 11 : i64} {
  func.func @_norm_ffn_kernel(%arg0: i32, %arg1: i32, %arg2: memref<1x8x32xf32, #tpu.memory_space<vmem>>, %arg3: memref<32x64xbf16, #tpu.memory_space<vmem>>, %arg4: memref<1x64xf32, #tpu.memory_space<vmem>>, %arg5: memref<64x32xbf16, #tpu.memory_space<vmem>>, %arg6: memref<1x32xf32, #tpu.memory_space<vmem>>, %arg7: memref<1x1xf32, #tpu.memory_space<vmem>>, %arg8: memref<1x1xf32, #tpu.memory_space<vmem>>, %arg9: memref<1x8x32xf32, #tpu.memory_space<vmem>>) attributes {dimension_semantics = [#tpu.dimension_semantics<parallel>, #tpu.dimension_semantics<parallel>], iteration_bounds = array<i64: 2, 1>, scalar_prefetch = 0 : i64, scratch_operands = 0 : i64, tpu.core_type = #tpu.core_type<tc>, window_params = [{transform_indices = @transform_0, window_bounds = array<i64: 1, 8, 32>}, {pipeline_mode = #tpu.pipeline_mode<synchronous>, transform_indices = @transform_1, window_bounds = array<i64: 32, 64>}, {pipeline_mode = #tpu.pipeline_mode<synchronous>, transform_indices = @transform_2, window_bounds = array<i64: 1, 64>}, {pipeline_mode = #tpu.pipeline_mode<synchronous>, transform_indices = @transform_3, window_bounds = array<i64: 64, 32>}, {pipeline_mode = #tpu.pipeline_mode<synchronous>, transform_indices = @transform_4, window_bounds = array<i64: 1, 32>}, {pipeline_mode = #tpu.pipeline_mode<synchronous>, transform_indices = @transform_5, window_bounds = array<i64: 1, 1>}, {pipeline_mode = #tpu.pipeline_mode<synchronous>, transform_indices = @transform_6, window_bounds = array<i64: 1, 1>}, {transform_indices = @transform_7, window_bounds = array<i64: 1, 8, 32>}]} {
    %c0 = arith.constant 0 : index
    %c0_0 = arith.constant 0 : index
    %c0_1 = arith.constant 0 : index
    %0 = vector.load %arg2[%c0, %c0_0, %c0_1] : memref<1x8x32xf32, #tpu.memory_space<vmem>>, vector<1x8x32xf32>
    %1 = vector.shape_cast %0 : vector<1x8x32xf32> to vector<8x32xf32>
    %c0_2 = arith.constant 0 : index
    %c0_3 = arith.constant 0 : index
    %2 = vector.load %arg7[%c0_2, %c0_3] : memref<1x1xf32, #tpu.memory_space<vmem>>, vector<1x1xf32>
    %c0_4 = arith.constant 0 : index
    %c0_5 = arith.constant 0 : index
    %3 = vector.load %arg8[%c0_4, %c0_5] : memref<1x1xf32, #tpu.memory_space<vmem>>, vector<1x1xf32>
    %cst = arith.constant dense<0.000000e+00> : vector<8xf32>
    %4 = vector.multi_reduction <add>, %1, %cst [1] : vector<8x32xf32> to vector<8xf32>
    %5 = vector.shape_cast %4 : vector<8xf32> to vector<8x1xf32>
    %cst_6 = arith.constant 3.200000e+01 : f32
    %6 = vector.broadcast %cst_6 : f32 to vector<8x1xf32>
    %7 = arith.divf %5, %6 : vector<8x1xf32>
    %8 = vector.broadcast %7 : vector<8x1xf32> to vector<8x32xf32>
    %9 = arith.subf %1, %8 : vector<8x32xf32>
    %10 = arith.mulf %9, %9 : vector<8x32xf32>
    %cst_7 = arith.constant dense<0.000000e+00> : vector<8xf32>
    %11 = vector.multi_reduction <add>, %10, %cst_7 [1] : vector<8x32xf32> to vector<8xf32>
    %12 = vector.shape_cast %11 : vector<8xf32> to vector<8x1xf32>
    %cst_8 = arith.constant 0.0322580636 : f32
    %13 = vector.broadcast %cst_8 : f32 to vector<8x1xf32>
    %14 = arith.mulf %12, %13 : vector<8x1xf32>
    %15 = vector.broadcast %2 : vector<1x1xf32> to vector<8x32xf32>
    %16 = arith.mulf %15, %9 : vector<8x32xf32>
    %17 = math.sqrt %14 : vector<8x1xf32>
    %cst_9 = arith.constant 9.99999997E-7 : f32
    %18 = vector.broadcast %cst_9 : f32 to vector<8x1xf32>
    %19 = arith.addf %17, %18 : vector<8x1xf32>
    %20 = vector.broadcast %19 : vector<8x1xf32> to vector<8x32xf32>
    %21 = arith.divf %16, %20 : vector<8x32xf32>
    %22 = vector.broadcast %3 : vector<1x1xf32> to vector<8x32xf32>
    %23 = arith.addf %21, %22 : vector<8x32xf32>
    %24 = arith.truncf %23 : vector<8x32xf32> to vector<8x32xbf16>
    %c0_10 = arith.constant 0 : index
    %c0_11 = arith.constant 0 : index
    %25 = vector.load %arg3[%c0_10, %c0_11] : memref<32x64xbf16, #tpu.memory_space<vmem>>, vector<32x64xbf16>
    %cst_12 = arith.constant dense<0.000000e+00> : vector<8x64xf32>
    %26 = tpu.matmul %24, %25, %cst_12 {dimension_numbers = #tpu.dot_dimension_numbers<[1], [0], [0], [1], [0, 0, 1, 1], [], []>} : vector<8x32xbf16>, vector<32x64xbf16>, vector<8x64xf32> -> vector<8x64xf32>
    %c0_13 = arith.constant 0 : index
    %c0_14 = arith.constant 0 : index
    %27 = vector.load %arg4[%c0_13, %c0_14] : memref<1x64xf32, #tpu.memory_space<vmem>>, vector<1x64xf32>
    %28 = vector.broadcast %27 : vector<1x64xf32> to vector<8x64xf32>
    %29 = arith.addf %26, %28 : vector<8x64xf32>
    %cst_15 = arith.constant 0.000000e+00 : f32
    %30 = vector.broadcast %cst_15 : f32 to vector<8x64xf32>
    %31 = arith.maximumf %29, %30 : vector<8x64xf32>
    %32 = arith.truncf %31 : vector<8x64xf32> to vector<8x64xbf16>
    %c0_16 = arith.constant 0 : index
    %c0_17 = arith.constant 0 : index
    %33 = vector.load %arg5[%c0_16, %c0_17] : memref<64x32xbf16, #tpu.memory_space<vmem>>, vector<64x32xbf16>
    %cst_18 = arith.constant dense<0.000000e+00> : vector<8x32xf32>
    %34 = tpu.matmul %32, %33, %cst_18 {dimension_numbers = #tpu.dot_dimension_numbers<[1], [0], [0], [1], [0, 0, 1, 1], [], []>} : vector<8x64xbf16>, vector<64x32xbf16>, vector<8x32xf32> -> vector<8x32xf32>
    %c0_19 = arith.constant 0 : index
    %c0_20 = arith.constant 0 : index
    %35 = vector.load %arg6[%c0_19, %c0_20] : memref<1x32xf32, #tpu.memory_space<vmem>>, vector<1x32xf32>
    %36 = vector.broadcast %35 : vector<1x32xf32> to vector<8x32xf32>
    %37 = arith.addf %34, %36 : vector<8x32xf32>
    %38 = arith.addf %1, %37 : vector<8x32xf32>
    %c0_21 = arith.constant 0 : index
    %c0_22 = arith.constant 0 : index
    %c0_23 = arith.constant 0 : index
    %39 = vector.load %arg9[%c0_21, %c0_22, %c0_23] : memref<1x8x32xf32, #tpu.memory_space<vmem>>, vector<1x8x32xf32>
    %40 = vector.shape_cast %39 : vector<1x8x32xf32> to vector<8x32xf32>
    %41 = vector.shape_cast %38 : vector<8x32xf32> to vector<1x8x32xf32>
    tpu.vector_store %arg9[%c0_21, %c0_22, %c0_23], %41 {strides = array<i32>} : memref<1x8x32xf32, #tpu.memory_space<vmem>>, vector<1x8x32xf32>,
    return
  }
  func.func @transform_0(%arg0: i32, %arg1: i32) -> (i32, i32, i32) {
    %c0_i32 = arith.constant 0 : i32
    %c0_i32_0 = arith.constant 0 : i32
    return %arg0, %arg1, %c0_i32 : i32, i32, i32
  }
  func.func @transform_1(%arg0: i32, %arg1: i32) -> (i32, i32) {
    %c0_i32 = arith.constant 0 : i32
    %c0_i32_0 = arith.constant 0 : i32
    %c0_i32_1 = arith.constant 0 : i32
    return %c0_i32, %c0_i32_0 : i32, i32
  }
  func.func @transform_2(%arg0: i32, %arg1: i32) -> (i32, i32) {
    %c0_i32 = arith.constant 0 : i32
    %c0_i32_0 = arith.constant 0 : i32
    %c0_i32_1 = arith.constant 0 : i32
    return %c0_i32, %c0_i32_0 : i32, i32
  }
  func.func @transform_3(%arg0: i32, %arg1: i32) -> (i32, i32) {
    %c0_i32 = arith.constant 0 : i32
    %c0_i32_0 = arith.constant 0 : i32
    %c0_i32_1 = arith.constant 0 : i32
    return %c0_i32, %c0_i32_0 : i32, i32
  }
  func.func @transform_4(%arg0: i32, %arg1: i32) -> (i32, i32) {
    %c0_i32 = arith.constant 0 : i32
    %c0_i32_0 = arith.constant 0 : i32
    %c0_i32_1 = arith.constant 0 : i32
    return %c0_i32, %c0_i32_0 : i32, i32
  }
  func.func @transform_5(%arg0: i32, %arg1: i32) -> (i32, i32) {
    %c0_i32 = arith.constant 0 : i32
    %c0_i32_0 = arith.constant 0 : i32
    %c0_i32_1 = arith.constant 0 : i32
    return %c0_i32, %c0_i32_0 : i32, i32
  }
  func.func @transform_6(%arg0: i32, %arg1: i32) -> (i32, i32) {
    %c0_i32 = arith.constant 0 : i32
    %c0_i32_0 = arith.constant 0 : i32
    %c0_i32_1 = arith.constant 0 : i32
    return %c0_i32, %c0_i32_0 : i32, i32
  }
  func.func @transform_7(%arg0: i32, %arg1: i32) -> (i32, i32, i32) {
    %c0_i32 = arith.constant 0 : i32
    %c0_i32_0 = arith.constant 0 : i32
    return %arg0, %arg1, %c0_i32 : i32, i32, i32
  }
}

module attributes {stable_mosaic.version = 11 : i64} {
  func.func @_attn_block_kernel(%arg0: i32, %arg1: memref<1x8x32xf32, #tpu.memory_space<vmem>>, %arg2: memref<1x8x8xi8, #tpu.memory_space<vmem>>, %arg3: memref<32x96xbf16, #tpu.memory_space<vmem>>, %arg4: memref<1x96xf32, #tpu.memory_space<vmem>>, %arg5: memref<32x32xbf16, #tpu.memory_space<vmem>>, %arg6: memref<1x32xf32, #tpu.memory_space<vmem>>, %arg7: memref<1x1xf32, #tpu.memory_space<vmem>>, %arg8: memref<1x1xf32, #tpu.memory_space<vmem>>, %arg9: memref<1x8x32xf32, #tpu.memory_space<vmem>>) attributes {dimension_semantics = [#tpu.dimension_semantics<parallel>], iteration_bounds = array<i64: 2>, scalar_prefetch = 0 : i64, scratch_operands = 0 : i64, tpu.core_type = #tpu.core_type<tc>, window_params = [{transform_indices = @transform_0, window_bounds = array<i64: 1, 8, 32>}, {transform_indices = @transform_1, window_bounds = array<i64: 1, 8, 8>}, {pipeline_mode = #tpu.pipeline_mode<synchronous>, transform_indices = @transform_2, window_bounds = array<i64: 32, 96>}, {pipeline_mode = #tpu.pipeline_mode<synchronous>, transform_indices = @transform_3, window_bounds = array<i64: 1, 96>}, {pipeline_mode = #tpu.pipeline_mode<synchronous>, transform_indices = @transform_4, window_bounds = array<i64: 32, 32>}, {pipeline_mode = #tpu.pipeline_mode<synchronous>, transform_indices = @transform_5, window_bounds = array<i64: 1, 32>}, {pipeline_mode = #tpu.pipeline_mode<synchronous>, transform_indices = @transform_6, window_bounds = array<i64: 1, 1>}, {pipeline_mode = #tpu.pipeline_mode<synchronous>, transform_indices = @transform_7, window_bounds = array<i64: 1, 1>}, {transform_indices = @transform_8, window_bounds = array<i64: 1, 8, 32>}]} {
    %c0 = arith.constant 0 : index
    %c0_0 = arith.constant 0 : index
    %c0_1 = arith.constant 0 : index
    %0 = vector.load %arg1[%c0, %c0_0, %c0_1] : memref<1x8x32xf32, #tpu.memory_space<vmem>>, vector<1x8x32xf32>
    %1 = vector.shape_cast %0 : vector<1x8x32xf32> to vector<8x32xf32>
    %c0_2 = arith.constant 0 : index
    %c0_3 = arith.constant 0 : index
    %2 = vector.load %arg7[%c0_2, %c0_3] : memref<1x1xf32, #tpu.memory_space<vmem>>, vector<1x1xf32>
    %c0_4 = arith.constant 0 : index
    %c0_5 = arith.constant 0 : index
    %3 = vector.load %arg8[%c0_4, %c0_5] : memref<1x1xf32, #tpu.memory_space<vmem>>, vector<1x1xf32>
    %cst = arith.constant dense<0.000000e+00> : vector<8xf32>
    %4 = vector.multi_reduction <add>, %1, %cst [1] : vector<8x32xf32> to vector<8xf32>
    %5 = vector.shape_cast %4 : vector<8xf32> to vector<8x1xf32>
    %cst_6 = arith.constant 3.200000e+01 : f32
    %6 = vector.broadcast %cst_6 : f32 to vector<8x1xf32>
    %7 = arith.divf %5, %6 : vector<8x1xf32>
    %8 = vector.broadcast %7 : vector<8x1xf32> to vector<8x32xf32>
    %9 = arith.subf %1, %8 : vector<8x32xf32>
    %10 = arith.mulf %9, %9 : vector<8x32xf32>
    %cst_7 = arith.constant dense<0.000000e+00> : vector<8xf32>
    %11 = vector.multi_reduction <add>, %10, %cst_7 [1] : vector<8x32xf32> to vector<8xf32>
    %12 = vector.shape_cast %11 : vector<8xf32> to vector<8x1xf32>
    %cst_8 = arith.constant 0.0322580636 : f32
    %13 = vector.broadcast %cst_8 : f32 to vector<8x1xf32>
    %14 = arith.mulf %12, %13 : vector<8x1xf32>
    %15 = vector.broadcast %2 : vector<1x1xf32> to vector<8x32xf32>
    %16 = arith.mulf %15, %9 : vector<8x32xf32>
    %17 = math.sqrt %14 : vector<8x1xf32>
    %cst_9 = arith.constant 9.99999997E-7 : f32
    %18 = vector.broadcast %cst_9 : f32 to vector<8x1xf32>
    %19 = arith.addf %17, %18 : vector<8x1xf32>
    %20 = vector.broadcast %19 : vector<8x1xf32> to vector<8x32xf32>
    %21 = arith.divf %16, %20 : vector<8x32xf32>
    %22 = vector.broadcast %3 : vector<1x1xf32> to vector<8x32xf32>
    %23 = arith.addf %21, %22 : vector<8x32xf32>
    %24 = arith.truncf %23 : vector<8x32xf32> to vector<8x32xbf16>
    %c0_10 = arith.constant 0 : index
    %c0_11 = arith.constant 0 : index
    %25 = vector.load %arg3[%c0_10, %c0_11] : memref<32x96xbf16, #tpu.memory_space<vmem>>, vector<32x96xbf16>
    %cst_12 = arith.constant dense<0.000000e+00> : vector<8x96xf32>
    %26 = tpu.matmul %24, %25, %cst_12 {dimension_numbers = #tpu.dot_dimension_numbers<[1], [0], [0], [1], [0, 0, 1, 1], [], []>} : vector<8x32xbf16>, vector<32x96xbf16>, vector<8x96xf32> -> vector<8x96xf32>
    %c0_13 = arith.constant 0 : index
    %c0_14 = arith.constant 0 : index
    %27 = vector.load %arg4[%c0_13, %c0_14] : memref<1x96xf32, #tpu.memory_space<vmem>>, vector<1x96xf32>
    %28 = vector.broadcast %27 : vector<1x96xf32> to vector<8x96xf32>
    %29 = arith.addf %26, %28 : vector<8x96xf32>
    %30 = vector.extract_strided_slice %29 {offsets = [0, 0], sizes = [8, 32], strides = [1, 1]} : vector<8x96xf32> to vector<8x32xf32>
    %cst_15 = arith.constant 0.353553385 : f32
    %31 = vector.broadcast %cst_15 : f32 to vector<8x32xf32>
    %32 = arith.mulf %30, %31 : vector<8x32xf32>
    %33 = arith.truncf %32 : vector<8x32xf32> to vector<8x32xbf16>
    %34 = vector.extract_strided_slice %29 {offsets = [0, 32], sizes = [8, 32], strides = [1, 1]} : vector<8x96xf32> to vector<8x32xf32>
    %35 = arith.truncf %34 : vector<8x32xf32> to vector<8x32xbf16>
    %36 = vector.extract_strided_slice %29 {offsets = [0, 64], sizes = [8, 32], strides = [1, 1]} : vector<8x96xf32> to vector<8x32xf32>
    %37 = arith.truncf %36 : vector<8x32xf32> to vector<8x32xbf16>
    %c0_16 = arith.constant 0 : index
    %c0_17 = arith.constant 0 : index
    %c0_18 = arith.constant 0 : index
    %38 = vector.load %arg2[%c0_16, %c0_17, %c0_18] : memref<1x8x8xi8, #tpu.memory_space<vmem>>, vector<1x8x8xi8>
    %39 = vector.shape_cast %38 : vector<1x8x8xi8> to vector<8x8xi8>
    %40 = arith.extsi %39 : vector<8x8xi8> to vector<8x8xi32>
    %c0_i32 = arith.constant 0 : i32
    %41 = vector.broadcast %c0_i32 : i32 to vector<8x8xi32>
    %42 = arith.cmpi eq, %40, %41 : vector<8x8xi32>
    %43 = vector.extract_strided_slice %33 {offsets = [0, 0], sizes = [8, 8], strides = [1, 1]} : vector<8x32xbf16> to vector<8x8xbf16>
    %44 = vector.extract_strided_slice %35 {offsets = [0, 0], sizes = [8, 8], strides = [1, 1]} : vector<8x32xbf16> to vector<8x8xbf16>
    %45 = vector.extract_strided_slice %37 {offsets = [0, 0], sizes = [8, 8], strides = [1, 1]} : vector<8x32xbf16> to vector<8x8xbf16>
    "tpu.trace_start"() <{level = 10 : i32, message = "qd,kd->qk"}> : () -> ()
    %cst_19 = arith.constant dense<0.000000e+00> : vector<8x8xf32>
    %46 = tpu.matmul %43, %44, %cst_19 {dimension_numbers = #tpu.dot_dimension_numbers<[1], [1], [0], [0], [0, 0, 1, 0], [], []>} : vector<8x8xbf16>, vector<8x8xbf16>, vector<8x8xf32> -> vector<8x8xf32>
    %cst_20 = arith.constant -1.000000e+09 : f32
    "tpu.trace_stop"() : () -> ()
    %47 = vector.broadcast %cst_20 : f32 to vector<8x8xf32>
    %48 = arith.select %42, %47, %46 : vector<8x8xi1>, vector<8x8xf32>
    %cst_21 = arith.constant dense<0xFF800000> : vector<8xf32>
    %49 = vector.multi_reduction <maximumf>, %48, %cst_21 [1] : vector<8x8xf32> to vector<8xf32>
    %50 = vector.shape_cast %49 : vector<8xf32> to vector<8x1xf32>
    %51 = vector.broadcast %50 : vector<8x1xf32> to vector<8x8xf32>
    %52 = arith.subf %48, %51 : vector<8x8xf32>
    %53 = math.exp %52 : vector<8x8xf32>
    %cst_22 = arith.constant dense<0.000000e+00> : vector<8xf32>
    %54 = vector.multi_reduction <add>, %53, %cst_22 [1] : vector<8x8xf32> to vector<8xf32>
    %55 = vector.shape_cast %54 : vector<8xf32> to vector<8x1xf32>
    %56 = tpu.reciprocal %55 {approx = true} : vector<8x1xf32> -> vector<8x1xf32>
    %57 = vector.broadcast %56 : vector<8x1xf32> to vector<8x8xf32>
    %58 = arith.mulf %53, %57 : vector<8x8xf32>
    %59 = arith.truncf %58 : vector<8x8xf32> to vector<8x8xbf16>
    %cst_23 = arith.constant dense<0.000000e+00> : vector<8x8xf32>
    %60 = tpu.matmul %59, %45, %cst_23 {dimension_numbers = #tpu.dot_dimension_numbers<[1], [0], [0], [1], [0, 0, 1, 1], [], []>} : vector<8x8xbf16>, vector<8x8xbf16>, vector<8x8xf32> -> vector<8x8xf32>
    %61 = vector.extract_strided_slice %33 {offsets = [0, 8], sizes = [8, 8], strides = [1, 1]} : vector<8x32xbf16> to vector<8x8xbf16>
    %62 = vector.extract_strided_slice %35 {offsets = [0, 8], sizes = [8, 8], strides = [1, 1]} : vector<8x32xbf16> to vector<8x8xbf16>
    %63 = vector.extract_strided_slice %37 {offsets = [0, 8], sizes = [8, 8], strides = [1, 1]} : vector<8x32xbf16> to vector<8x8xbf16>
    "tpu.trace_start"() <{level = 10 : i32, message = "qd,kd->qk"}> : () -> ()
    %cst_24 = arith.constant dense<0.000000e+00> : vector<8x8xf32>
    %64 = tpu.matmul %61, %62, %cst_24 {dimension_numbers = #tpu.dot_dimension_numbers<[1], [1], [0], [0], [0, 0, 1, 0], [], []>} : vector<8x8xbf16>, vector<8x8xbf16>, vector<8x8xf32> -> vector<8x8xf32>
    %cst_25 = arith.constant -1.000000e+09 : f32
    "tpu.trace_stop"() : () -> ()
    %65 = vector.broadcast %cst_25 : f32 to vector<8x8xf32>
    %66 = arith.select %42, %65, %64 : vector<8x8xi1>, vector<8x8xf32>
    %cst_26 = arith.constant dense<0xFF800000> : vector<8xf32>
    %67 = vector.multi_reduction <maximumf>, %66, %cst_26 [1] : vector<8x8xf32> to vector<8xf32>
    %68 = vector.shape_cast %67 : vector<8xf32> to vector<8x1xf32>
    %69 = vector.broadcast %68 : vector<8x1xf32> to vector<8x8xf32>
    %70 = arith.subf %66, %69 : vector<8x8xf32>
    %71 = math.exp %70 : vector<8x8xf32>
    %cst_27 = arith.constant dense<0.000000e+00> : vector<8xf32>
    %72 = vector.multi_reduction <add>, %71, %cst_27 [1] : vector<8x8xf32> to vector<8xf32>
    %73 = vector.shape_cast %72 : vector<8xf32> to vector<8x1xf32>
    %74 = tpu.reciprocal %73 {approx = true} : vector<8x1xf32> -> vector<8x1xf32>
    %75 = vector.broadcast %74 : vector<8x1xf32> to vector<8x8xf32>
    %76 = arith.mulf %71, %75 : vector<8x8xf32>
    %77 = arith.truncf %76 : vector<8x8xf32> to vector<8x8xbf16>
    %cst_28 = arith.constant dense<0.000000e+00> : vector<8x8xf32>
    %78 = tpu.matmul %77, %63, %cst_28 {dimension_numbers = #tpu.dot_dimension_numbers<[1], [0], [0], [1], [0, 0, 1, 1], [], []>} : vector<8x8xbf16>, vector<8x8xbf16>, vector<8x8xf32> -> vector<8x8xf32>
    %79 = vector.extract_strided_slice %33 {offsets = [0, 16], sizes = [8, 8], strides = [1, 1]} : vector<8x32xbf16> to vector<8x8xbf16>
    %80 = vector.extract_strided_slice %35 {offsets = [0, 16], sizes = [8, 8], strides = [1, 1]} : vector<8x32xbf16> to vector<8x8xbf16>
    %81 = vector.extract_strided_slice %37 {offsets = [0, 16], sizes = [8, 8], strides = [1, 1]} : vector<8x32xbf16> to vector<8x8xbf16>
    "tpu.trace_start"() <{level = 10 : i32, message = "qd,kd->qk"}> : () -> ()
    %cst_29 = arith.constant dense<0.000000e+00> : vector<8x8xf32>
    %82 = tpu.matmul %79, %80, %cst_29 {dimension_numbers = #tpu.dot_dimension_numbers<[1], [1], [0], [0], [0, 0, 1, 0], [], []>} : vector<8x8xbf16>, vector<8x8xbf16>, vector<8x8xf32> -> vector<8x8xf32>
    %cst_30 = arith.constant -1.000000e+09 : f32
    "tpu.trace_stop"() : () -> ()
    %83 = vector.broadcast %cst_30 : f32 to vector<8x8xf32>
    %84 = arith.select %42, %83, %82 : vector<8x8xi1>, vector<8x8xf32>
    %cst_31 = arith.constant dense<0xFF800000> : vector<8xf32>
    %85 = vector.multi_reduction <maximumf>, %84, %cst_31 [1] : vector<8x8xf32> to vector<8xf32>
    %86 = vector.shape_cast %85 : vector<8xf32> to vector<8x1xf32>
    %87 = vector.broadcast %86 : vector<8x1xf32> to vector<8x8xf32>
    %88 = arith.subf %84, %87 : vector<8x8xf32>
    %89 = math.exp %88 : vector<8x8xf32>
    %cst_32 = arith.constant dense<0.000000e+00> : vector<8xf32>
    %90 = vector.multi_reduction <add>, %89, %cst_32 [1] : vector<8x8xf32> to vector<8xf32>
    %91 = vector.shape_cast %90 : vector<8xf32> to vector<8x1xf32>
    %92 = tpu.reciprocal %91 {approx = true} : vector<8x1xf32> -> vector<8x1xf32>
    %93 = vector.broadcast %92 : vector<8x1xf32> to vector<8x8xf32>
    %94 = arith.mulf %89, %93 : vector<8x8xf32>
    %95 = arith.truncf %94 : vector<8x8xf32> to vector<8x8xbf16>
    %cst_33 = arith.constant dense<0.000000e+00> : vector<8x8xf32>
    %96 = tpu.matmul %95, %81, %cst_33 {dimension_numbers = #tpu.dot_dimension_numbers<[1], [0], [0], [1], [0, 0, 1, 1], [], []>} : vector<8x8xbf16>, vector<8x8xbf16>, vector<8x8xf32> -> vector<8x8xf32>
    %97 = vector.extract_strided_slice %33 {offsets = [0, 24], sizes = [8, 8], strides = [1, 1]} : vector<8x32xbf16> to vector<8x8xbf16>
    %98 = vector.extract_strided_slice %35 {offsets = [0, 24], sizes = [8, 8], strides = [1, 1]} : vector<8x32xbf16> to vector<8x8xbf16>
    %99 = vector.extract_strided_slice %37 {offsets = [0, 24], sizes = [8, 8], strides = [1, 1]} : vector<8x32xbf16> to vector<8x8xbf16>
    "tpu.trace_start"() <{level = 10 : i32, message = "qd,kd->qk"}> : () -> ()
    %cst_34 = arith.constant dense<0.000000e+00> : vector<8x8xf32>
    %100 = tpu.matmul %97, %98, %cst_34 {dimension_numbers = #tpu.dot_dimension_numbers<[1], [1], [0], [0], [0, 0, 1, 0], [], []>} : vector<8x8xbf16>, vector<8x8xbf16>, vector<8x8xf32> -> vector<8x8xf32>
    %cst_35 = arith.constant -1.000000e+09 : f32
    "tpu.trace_stop"() : () -> ()
    %101 = vector.broadcast %cst_35 : f32 to vector<8x8xf32>
    %102 = arith.select %42, %101, %100 : vector<8x8xi1>, vector<8x8xf32>
    %cst_36 = arith.constant dense<0xFF800000> : vector<8xf32>
    %103 = vector.multi_reduction <maximumf>, %102, %cst_36 [1] : vector<8x8xf32> to vector<8xf32>
    %104 = vector.shape_cast %103 : vector<8xf32> to vector<8x1xf32>
    %105 = vector.broadcast %104 : vector<8x1xf32> to vector<8x8xf32>
    %106 = arith.subf %102, %105 : vector<8x8xf32>
    %107 = math.exp %106 : vector<8x8xf32>
    %cst_37 = arith.constant dense<0.000000e+00> : vector<8xf32>
    %108 = vector.multi_reduction <add>, %107, %cst_37 [1] : vector<8x8xf32> to vector<8xf32>
    %109 = vector.shape_cast %108 : vector<8xf32> to vector<8x1xf32>
    %110 = tpu.reciprocal %109 {approx = true} : vector<8x1xf32> -> vector<8x1xf32>
    %111 = vector.broadcast %110 : vector<8x1xf32> to vector<8x8xf32>
    %112 = arith.mulf %107, %111 : vector<8x8xf32>
    %113 = arith.truncf %112 : vector<8x8xf32> to vector<8x8xbf16>
    %cst_38 = arith.constant dense<0.000000e+00> : vector<8x8xf32>
    %114 = tpu.matmul %113, %99, %cst_38 {dimension_numbers = #tpu.dot_dimension_numbers<[1], [0], [0], [1], [0, 0, 1, 1], [], []>} : vector<8x8xbf16>, vector<8x8xbf16>, vector<8x8xf32> -> vector<8x8xf32>
    %115 = tpu.concatenate %60, %78, %96, %114 in 1 : vector<8x8xf32>, vector<8x8xf32>, vector<8x8xf32>, vector<8x8xf32> -> vector<8x32xf32>
    %116 = arith.truncf %115 : vector<8x32xf32> to vector<8x32xbf16>
    %c0_39 = arith.constant 0 : index
    %c0_40 = arith.constant 0 : index
    %117 = vector.load %arg5[%c0_39, %c0_40] : memref<32x32xbf16, #tpu.memory_space<vmem>>, vector<32x32xbf16>
    %cst_41 = arith.constant dense<0.000000e+00> : vector<8x32xf32>
    %118 = tpu.matmul %116, %117, %cst_41 {dimension_numbers = #tpu.dot_dimension_numbers<[1], [0], [0], [1], [0, 0, 1, 1], [], []>} : vector<8x32xbf16>, vector<32x32xbf16>, vector<8x32xf32> -> vector<8x32xf32>
    %119 = arith.addf %1, %118 : vector<8x32xf32>
    %c0_42 = arith.constant 0 : index
    %c0_43 = arith.constant 0 : index
    %120 = vector.load %arg6[%c0_42, %c0_43] : memref<1x32xf32, #tpu.memory_space<vmem>>, vector<1x32xf32>
    %121 = vector.broadcast %120 : vector<1x32xf32> to vector<8x32xf32>
    %122 = arith.addf %119, %121 : vector<8x32xf32>
    %c0_44 = arith.constant 0 : index
    %c0_45 = arith.constant 0 : index
    %c0_46 = arith.constant 0 : index
    %123 = vector.load %arg9[%c0_44, %c0_45, %c0_46] : memref<1x8x32xf32, #tpu.memory_space<vmem>>, vector<1x8x32xf32>
    %124 = vector.shape_cast %123 : vector<1x8x32xf32> to vector<8x32xf32>
    %125 = vector.shape_cast %122 : vector<8x32xf32> to vector<1x8x32xf32>
    tpu.vector_store %arg9[%c0_44, %c0_45, %c0_46], %125 {strides = array<i32>} : memref<1x8x32xf32, #tpu.memory_space<vmem>>, vector<1x8x32xf32>,
    return
  }
  func.func @transform_0(%arg0: i32) -> (i32, i32, i32) {
    %c0_i32 = arith.constant 0 : i32
    %c0_i32_0 = arith.constant 0 : i32
    %c0_i32_1 = arith.constant 0 : i32
    return %arg0, %c0_i32, %c0_i32_0 : i32, i32, i32
  }
  func.func @transform_1(%arg0: i32) -> (i32, i32, i32) {
    %c0_i32 = arith.constant 0 : i32
    %c0_i32_0 = arith.constant 0 : i32
    %c0_i32_1 = arith.constant 0 : i32
    return %arg0, %c0_i32, %c0_i32_0 : i32, i32, i32
  }
  func.func @transform_2(%arg0: i32) -> (i32, i32) {
    %c0_i32 = arith.constant 0 : i32
    %c0_i32_0 = arith.constant 0 : i32
    %c0_i32_1 = arith.constant 0 : i32
    return %c0_i32, %c0_i32_0 : i32, i32
  }
  func.func @transform_3(%arg0: i32) -> (i32, i32) {
    %c0_i32 = arith.constant 0 : i32
    %c0_i32_0 = arith.constant 0 : i32
    %c0_i32_1 = arith.constant 0 : i32
    return %c0_i32, %c0_i32_0 : i32, i32
  }
  func.func @transform_4(%arg0: i32) -> (i32, i32) {
    %c0_i32 = arith.constant 0 : i32
    %c0_i32_0 = arith.constant 0 : i32
    %c0_i32_1 = arith.constant 0 : i32
    return %c0_i32, %c0_i32_0 : i32, i32
  }
  func.func @transform_5(%arg0: i32) -> (i32, i32) {
    %c0_i32 = arith.constant 0 : i32
    %c0_i32_0 = arith.constant 0 : i32
    %c0_i32_1 = arith.constant 0 : i32
    return %c0_i32, %c0_i32_0 : i32, i32
  }
  func.func @transform_6(%arg0: i32) -> (i32, i32) {
    %c0_i32 = arith.constant 0 : i32
    %c0_i32_0 = arith.constant 0 : i32
    %c0_i32_1 = arith.constant 0 : i32
    return %c0_i32, %c0_i32_0 : i32, i32
  }
  func.func @transform_7(%arg0: i32) -> (i32, i32) {
    %c0_i32 = arith.constant 0 : i32
    %c0_i32_0 = arith.constant 0 : i32
    %c0_i32_1 = arith.constant 0 : i32
    return %c0_i32, %c0_i32_0 : i32, i32
  }
  func.func @transform_8(%arg0: i32) -> (i32, i32, i32) {
    %c0_i32 = arith.constant 0 : i32
    %c0_i32_0 = arith.constant 0 : i32
    %c0_i32_1 = arith.constant 0 : i32
    return %arg0, %c0_i32, %c0_i32_0 : i32, i32, i32
  }
}

</mosaic_0001>

<bundles_post_ra>
// kernel: encoder_block_forward.3
= control target key start
LH: loop header
LB: loop body
LE: loop exit
PB: predicated region body
PF: predicated region fallthrough
CT: control target
= control target key end

     0   :  { %s1482_s0 = inlined_call_operand.hbm [shape: f32[2,8,32], index: 0, kind: input, shape index: {}]   ;;  %s1483_s1 = inlined_call_operand.hbm [shape: bf16[32,64], index: 1, kind: input, shape index: {}]   ;;  %s1484_s2 = inlined_call_operand.hbm [shape: f32[1,64], index: 2, kind: input, shape index: {}]   ;;  %s1485_s3 = inlined_call_operand.hbm [shape: bf16[64,32], index: 3, kind: input, shape index: {}]   ;;  %s1486_s4 = inlined_call_operand.hbm [shape: f32[1,32], index: 4, kind: input, shape index: {}]   ;;  %s1487_s5 = inlined_call_operand.<no memory space> [shape: f32[1,1], index: 5, kind: input, shape index: {}]   ;;  %s1488_s7 = inlined_call_operand.hbm [shape: f32[2,8,32], index: 7, kind: output, shape index: {}]   ;;  %s1489_s6 = inlined_call_operand.<no memory space> [shape: f32[1,1], index: 6, kind: input, shape index: {}]  }
   0x1   :  { %v12_v0 = vstv %s1487_s5  ;;  %v14_v1 = vstv %s1489_s6 }
   0x2   :  { %13 = vst [vmem:[#allocation2] sm:$0x1] %v12_v0  ;;  %15 = vst [vmem:[#allocation3] sm:$0x1] %v14_v1 }
   0x3   :  { %16 = vsyncpa [#allocation5], 0 }
   0x4   :  { %18 = vsyncpa [#allocation5 + $0x1], 0 }
   0x5   :  { %19 = vsyncpa [#allocation8], 0 }
   0x6   :  { %20 = vsyncpa [#allocation11], 0 }
   0x7   :  { %21 = vsyncpa [#allocation6], 0 }
   0x8   :  { %23 = vsyncpa [#allocation6 + $0x1], 0  ;;  %s1174_s28 = smov 0   ;;  %s1176_s29 = smov 0  }
   0x9   :  { %s1178_s30 = smov 0   ;;  %s1180_s8 = smov 0  }
   0xa   :  { %s1182_s5 = smov 0   ;;  %s1184_s9 = smov 0  }
   0xb LB: > { %s702_s6 = sadd.s32 4294967295, %s1115_s9   ;;  %p704_p0 = scmp.ge.s32.totalorder %s1115_s9, 1  ;;  %s1115_s9 = sphi %s1184_s9, %s29_s9   ;;  %s1111_s5 = sphi %s1182_s5, %s1513_s5   ;;  %s1107_s8 = sphi %s1180_s8, %s1512_s8   ;;  %s1103_s30 = sphi %s1178_s30, %s1511_s30   ;;  %s1099_s29 = sphi %s1176_s29, %s1510_s29   ;;  %s1095_s28 = sphi %s1174_s28, %s1509_s28  }
   0xc   : > { %p1208_p1 = scmp.eq.s32.totalorder %s702_s6, 0  ;;  %p228_p2 = scmp.lt.s32.totalorder %s1115_s9, 3 }
   0xd   : > { %s1117_s12 = smov [#allocation7]   ;;  %s1118_s15 = smov [#allocation10]  }
   0xe   : > { %s1494_s10 = scalar_select %p1208_p1, 1, 0 }
   0xf   : > { %p1213_p3 = pnand %p704_p0, %p228_p2  ;;  %s240_s13 = sshll.u32 %s1117_s12, 4  ;;  %s1217_s13 = int_to_ptr.vmem [resolvable:$true] %s240_s13 }
  0x10   : > { %s264_s16 = sshll.u32 %s1118_s15, 4  ;;  %s1119_s17 = smov [#allocation9]   ;;  %s1228_s16 = int_to_ptr.vmem [resolvable:$true] %s264_s16 }
  0x11   : > { %s1495_s11 = scalar_select %p1213_p3, 1, 0 }
  0x12   : > { %p783_p4 = pneg %p1213_p3  ;;  %s1230_s18 = sshll.u32 %s1119_s17, 4  ;;  %s255_s18 = int_to_ptr.vmem [resolvable:$true] %s1230_s18 }
  0x13   : > { %s883_s21 = scalar_lea.hbm %s1483_s1, 256 }
  0x14   : > { %p1224_p6 = pnand %p783_p4, %p1208_p1  ;;  %p884_p7 = scmp.ne.s32.totalorder %s1483_s1, %s883_s21 }
  0x15   : > { %p890_p11 = scmp.lt.u32.totalorder %s883_s21, %s1483_s1 }
  0x16   : > { %p1240_p8 = pneg %p1224_p6 }
  0x18   : > { %p886_p9 = pnand %p1240_p8, %p884_p7 }
  0x1a   : > { %p887_p10 = pneg %p886_p9 }
  0x1c   : > { %p892_p12 = pnand %p890_p11, %p887_p10 }
  0x1e   : > { %895 = shalt.err (!%p892_p12)
}
  0x1f   : > { %s896_s27 = scalar_lea.vmem %s1217_s13, 256  ;;  %p904_p4 = scmp.lt.s32.totalorder %s1217_s13, %s1217_s13 }
  0x20   : > { %p897_p13 = scmp.ne.s32.totalorder %s1217_s13, %s896_s27  ;;  %p905_p5 = scmp.lt.s32.totalorder %s896_s27, %s896_s27 }
  0x22   : > { %p899_p0 = pnand %p897_p13, %p1240_p8  ;;  %p906_p7 = por %p905_p5, %p904_p4 }
  0x24   : > { %p900_p2 = pneg %p899_p0 }
  0x26   : > { %p907_p9 = pnand %p906_p7, %p900_p2 }
  0x28   : > { %910 = shalt.err (!%p907_p9)
}
  0x29   : > { %s1120_s12 = smov 64   ;;  %s1121_s15 = smov 4  }
  0x2a   : > { %786 = dma.hbm_to_vmem [thread:$0]  (!%p1224_p6), %s1483_s1, 256, %s1217_s13, [#allocation8], %s1120_s12, %s1120_s12, %s1121_s15  }
  0x2b   : > { %s911_s22 = scalar_lea.hbm %s1485_s3, 512 }
  0x2c   : > { %p912_p5 = scmp.ne.s32.totalorder %s1485_s3, %s911_s22  ;;  %p918_p12 = scmp.lt.u32.totalorder %s911_s22, %s1485_s3 }
  0x2e   : > { %p914_p10 = pnand %p912_p5, %p1240_p8 }
  0x30   : > { %p915_p11 = pneg %p914_p10 }
  0x32   : > { %p920_p13 = pnand %p918_p12, %p915_p11 }
  0x34   : > { %923 = shalt.err (!%p920_p13)
}
  0x35   : > { %s924_s13 = scalar_lea.vmem %s1228_s16, 512  ;;  %p932_p7 = scmp.lt.s32.totalorder %s1228_s16, %s1228_s16 }
  0x36   : > { %p925_p0 = scmp.ne.s32.totalorder %s1228_s16, %s924_s13  ;;  %p933_p9 = scmp.lt.s32.totalorder %s924_s13, %s924_s13 }
  0x38   : > { %p927_p2 = pnand %p925_p0, %p1240_p8  ;;  %p934_p5 = por %p933_p9, %p932_p7 }
  0x3a   : > { %p928_p4 = pneg %p927_p2 }
  0x3c   : > { %p935_p10 = pnand %p934_p5, %p928_p4 }
  0x3e   : > { %938 = shalt.err (!%p935_p10)
}
  0x3f   : > { %792 = dma.hbm_to_vmem [thread:$0]  (!%p1224_p6), %s1485_s3, 512, %s1228_s16, [#allocation11], %s1120_s12, %s1120_s12, %s1121_s15  }
  0x40   : > { %s939_s22 = scalar_lea.hbm %s1484_s2, 16 }
  0x41   : > { %p940_p11 = scmp.ne.s32.totalorder %s1484_s2, %s939_s22  ;;  %p946_p0 = scmp.lt.u32.totalorder %s939_s22, %s1484_s2 }
  0x43   : > { %p942_p12 = pnand %p940_p11, %p1240_p8 }
  0x45   : > { %p943_p13 = pneg %p942_p12 }
  0x47   : > { %p948_p2 = pnand %p946_p0, %p943_p13 }
  0x49   : > { %951 = shalt.err (!%p948_p2)
}
  0x4a   : > { %s952_s13 = scalar_lea.vmem %s255_s18, 16  ;;  %s959_s16 = scalar_lea.vmem %s255_s18, 32 }
  0x4b   : > { %p953_p4 = scmp.ne.s32.totalorder %s255_s18, %s952_s13  ;;  %p960_p5 = scmp.lt.s32.totalorder %s255_s18, %s255_s18 }
  0x4c   : > { %p961_p10 = scmp.lt.s32.totalorder %s959_s16, %s952_s13 }
  0x4d   : > { %p955_p7 = pnand %p953_p4, %p1240_p8 }
  0x4e   : > { %p962_p3 = por %p961_p10, %p960_p5 }
  0x4f   : > { %p956_p9 = pneg %p955_p7 }
  0x51   : > { %p963_p1 = pnand %p962_p3, %p956_p9 }
  0x53   : > { %966 = shalt.err (!%p963_p1)
}
  0x54   : > { %789 = dma.hbm_to_vmem [thread:$0]  (!%p1224_p6), %s1484_s2, 16, %s255_s18, [#allocation8]  }
  0x55   : > { %s1122_s17 = smov [#allocation12]   ;;  %s967_s22 = scalar_lea.hbm %s1486_s4, 16 }
  0x56   : > { %s278_s19 = sshll.u32 %s1122_s17, 4  ;;  %p968_p11 = scmp.ne.s32.totalorder %s1486_s4, %s967_s22  ;;  %s279_s19 = int_to_ptr.vmem [resolvable:$true] %s278_s19 }
  0x57   : > { %p974_p12 = scmp.lt.u32.totalorder %s967_s22, %s1486_s4 }
  0x58   : > { %p970_p1 = pnand %p968_p11, %p1240_p8 }
  0x5a   : > { %p971_p3 = pneg %p970_p1 }
  0x5c   : > { %p976_p13 = pnand %p974_p12, %p971_p3 }
  0x5e   : > { %979 = shalt.err (!%p976_p13)
}
  0x5f   : > { %s980_s18 = scalar_lea.vmem %s279_s19, 16  ;;  %s987_s13 = scalar_lea.vmem %s279_s19, 32 }
  0x60   : > { %p981_p0 = scmp.ne.s32.totalorder %s279_s19, %s980_s18  ;;  %p988_p7 = scmp.lt.s32.totalorder %s279_s19, %s279_s19 }
  0x61   : > { %p989_p9 = scmp.lt.s32.totalorder %s987_s13, %s980_s18 }
  0x62   : > { %p983_p2 = pnand %p981_p0, %p1240_p8 }
  0x63   : > { %p990_p5 = por %p989_p9, %p988_p7 }
  0x64   : > { %p984_p4 = pneg %p983_p2 }
  0x66   : > { %p991_p10 = pnand %p990_p5, %p984_p4 }
  0x68   : > { %994 = shalt.err (!%p991_p10)
}
  0x69   : > { %795 = dma.hbm_to_vmem [thread:$0]  (!%p1224_p6), %s1486_s4, 16, %s279_s19, [#allocation11]  }
  0x6a   : > { %s703_s24 = sadd.s32 4294967294, %s1115_s9   ;;  %s41_s15 = sadd.s32 1, %s1111_s5 }
  0x6b   : > { %p43_p8 = scmp.ge.s32.totalorder %s41_s15, 2  ;;  %s50_s14 = sadd.s32 1, %s1103_s30 }
  0x6c   : > { %p57_p11 = scmp.ne.s32.totalorder %s1103_s30, %s1099_s29  ;;  %p58_p1 = scmp.eq.s32.totalorder %s1115_s9, 0 }
  0x6d   : > { %s1515_s15 = smov (%p43_p8, %s41_s15), 0  ;;  %p63_p12 = scmp.ne.s32.totalorder %s1099_s29, %s1095_s28 }
  0x6e   : > { %p1329_p3 = por %p58_p1, %p57_p11  ;;  %s45_s19 = ssub.s32 %s1111_s5, %s1515_s15 }
  0x6f   : > { %p215_p6 = scmp.eq.s32.totalorder %s702_s6, 1  ;;  %p48_p13 = scmp.eq.s32.totalorder %s45_s19, 0 }
  0x70   : > { %p1499_p0 = scmp.ne.s32.totalorder %s1494_s10, 0  ;;  %p221_p7 = scmp.eq.s32.totalorder %s703_s24, 1 }
  0x71   : > { %p1345_p4 = por %p215_p6, %p57_p11  ;;  %p808_p5 = scmp.lt.s32.totalorder %s1115_s9, 2 }
  0x72   : > { %p1341_p2 = por %p1499_p0, %p63_p12  ;;  %p1352_p9 = por %p221_p7, %p63_p12 }
  0x73   : > { %s1501_s21 = scalar_select %p1345_p4, 1, 0 }
  0x74   : > { %s1350_s22 = scalar_select %p48_p13, %s1103_s30, %s50_s14  }
  0x75   : > { %s1502_s23 = scalar_select %p1352_p9, 1, 0 }
  0x76   : > { %s295_s25 = sand.u32 1, %s1103_s30   ;;  %s711_s6 = sshll.u32 %s1111_s5, 7 }
  0x77   : > { %s710_s26 = sshll.u32 %s295_s25, 3  ;;  %s1362_s13 = scalar_lea.hbm %s1482_s0, %s711_s6 }
  0x78   : > { %s299_s16 = scalar_lea.vmem [#allocation4], %s710_s26  ;;  %p1366_p10 = pnand %p808_p5, %p1329_p3 }
  0x79   : > { %s307_s12 = sshll.u32 %s299_s16, 4  ;;  %s296_s14 = scalar_lea.sflag [#allocation5], %s295_s25  ;;  %s1370_s12 = int_to_ptr.vmem [resolvable:$true] %s307_s12 }
  0x7a   : > { %s995_s19 = scalar_lea.hbm %s1362_s13, 128  ;;  %p997_p11 = pneg %p1366_p10 }
  0x7b   : > { %p996_p8 = scmp.ne.s32.totalorder %s1362_s13, %s995_s19  ;;  %s1000_s17 = scalar_lea.hbm %s1482_s0, 256 }
  0x7c   : > { %p1001_p3 = scmp.lt.u32.totalorder %s1362_s13, %s1482_s0  ;;  %p1002_p6 = scmp.lt.u32.totalorder %s1000_s17, %s995_s19 }
  0x7d   : > { %p998_p1 = pnand %p997_p11, %p996_p8  ;;  %p1004_p0 = scmp.lt.u32.totalorder %s995_s19, %s1362_s13 }
  0x7e   : > { %p1003_p13 = por %p1002_p6, %p1001_p3 }
  0x7f   : > { %p999_p12 = pneg %p998_p1 }
  0x80   : > { %p1005_p7 = por %p1004_p0, %p1003_p13 }
  0x82   : > { %p1006_p5 = pnand %p1005_p7, %p999_p12 }
  0x84   : > { %1009 = shalt.err (!%p1006_p5)
}
  0x85   : > { %s1010_s25 = scalar_lea.vmem %s1370_s12, 128  ;;  %s1123_s16 = smov [#allocation4]  }
  0x86   : > { %p1011_p8 = scmp.ne.s32.totalorder %s1370_s12, %s1010_s25  ;;  %s1015_s6 = sshll.u32 %s1123_s16, 4  ;;  %s1016_s6 = int_to_ptr.vmem [resolvable:$false] %s1015_s6 }
  0x87   : > { %s1017_s26 = scalar_lea.vmem %s1016_s6, 256  ;;  %p1018_p4 = scmp.lt.s32.totalorder %s1370_s12, %s1016_s6 }
  0x88   : > { %p1013_p1 = pnand %p1011_p8, %p997_p11  ;;  %p1019_p3 = scmp.lt.s32.totalorder %s1017_s26, %s1010_s25 }
  0x8a   : > { %p1014_p9 = pneg %p1013_p1  ;;  %p1020_p6 = por %p1019_p3, %p1018_p4 }
  0x8c   : > { %p1021_p13 = pnand %p1020_p6, %p1014_p9 }
  0x8e   : > { %1024 = shalt.err (!%p1021_p13)
}
  0x8f   : > { %799 = dma.hbm_to_vmem [thread:$0]  (!%p1366_p10), %s1362_s13, 128, %s1370_s12, %s296_s14  }
  0x90   : > { %p1504_p12 = scmp.ne.s32.totalorder %s1495_s11, 0 }
  0x91   : > { %s1400_s19 = sand.u32 (!%p1504_p12), 1, %s1099_s29  }
  0x92   : > { %316 = sbr.rel (%p1504_p12) target bundleno = 936 (0x3a8), region = 48  ;;  %s713_s17 = sshll.u32 (!%p1504_p12), %s1400_s19, 3 }
  0x93   : > { %s319_s27 = scalar_lea.sflag (!%p1504_p12), [#allocation5], %s1400_s19  ;;  %s322_s18 = scalar_lea.vmem (!%p1504_p12), [#allocation4], %s713_s17 }
  0x99   : > { %1078 = dma.done.wait (%p1341_p2), %s319_s27, 128  }
  0x9a   : > { %1080 = vsyncadd (%p1341_p2), %s319_s27, 4294967168  ;;  %p1505_p4 = scmp.ne.s32.totalorder %s1494_s10, 0 }
  0x9c   : > { %1082 = dma.done.wait (%p1505_p4), [#allocation8], 272  }
  0x9d   : > { %1084 = vsyncadd (%p1505_p4), [#allocation8], 4294967024 }
  0x9e   : > { %1086 = dma.done.wait (%p1505_p4), [#allocation11], 528  }
  0x9f   : > { %1088 = vsyncadd (%p1505_p4), [#allocation11], 4294966768  ;;  %v1124_v2 = vmov 0   ;;  %vm373_vm0 = vcmask 261120   ;;  %v1418_v3 = vld [vmem:[%s322_s18] sm:$0xff]  ;;  %v873_v12 = vld [vmem:[#allocation7] sm:$0xff]  }
  0xa0   : > { %871 = vset.pattern.permute.xlu1 %v1124_v2  ;;  %872 = vset.pattern.permute.xlu0 %v1124_v2  ;;  %v719_v4 = vld [vmem:[#allocation2] ss:$0 sm:$0xff]  ;;  %v374_v5 = vsel %vm373_vm0, %v1418_v3, 0.0  ;;  %v720_v6 = vld [vmem:[#allocation3] ss:$0 sm:$0xff]  ;;  %v1125_v13 = vmov 0.0  }
  0xa1   : > { %391 = vperm.xlu1 %871, %v719_v4   ;;  %375 = vadd.xlane.f32.xlu0 %v374_v5  ;;  %v874_v14 = vld [vmem:[#allocation7 + $0x8] sm:$0xff]   ;;  %vm1126_vm1 = vmmov 0   ;;  %v875_v15 = vld [vmem:[#allocation10] sm:$0xff]   ;;  %v876_v16 = vld [vmem:[#allocation10 + $0x8] sm:$0xff]   ;;  %vm523_vm4 = vcmask 523264   ;;  %s732_s10 = sshll.u32 %s1107_s8, 7 }
  0xa2   : > { %743 = vmatprep.subr.bf16.mxu0 %v1125_v13  ;;  %751 = vmatprep.subr.bf16.mxu1 %v1125_v13  ;;  %v877_v32 = vld [vmem:[#allocation10 + $0x10] sm:$0xff]   ;;  %v878_v33 = vld [vmem:[#allocation10 + $0x18] sm:$0xff]   ;;  %v725_v42 = vld [vmem:[#allocation12] ss:$0 sm:$0xff]  ;;  %s368_s11 = scalar_lea.vmem [#allocation13], %s713_s17  ;;  %s1432_s24 = scalar_lea.hbm %s1488_s7, %s732_s10 }
  0xa3   : > { %744 = vmatpush3.bf16.msra.mxu0 %v873_v12  ;;  %747 = vmatprep.mubr.msk.bf16.mxu0 %vm1126_vm1, %v1125_v13  ;;  %v721_v34 = vld [vmem:[#allocation9] ss:$0 sm:$0xff]  ;;  %s584_s20 = sshll.u32 %s368_s11, 4  ;;  %s570_s8 = scalar_lea.sflag [#allocation6], %s1400_s19  ;;  %s1434_s20 = int_to_ptr.vmem [resolvable:$true] %s584_s20 }
  0xa4   : > { %745 = vmatprep.subr.bf16.mxu0 %v1125_v13  ;;  %759 = vmatprep.mubr.msk.bf16.mxu1 %vm1126_vm1, %v1125_v13  ;;  %s1025_s14 = scalar_lea.vmem %s1434_s20, 128  ;;  %p1506_p9 = scmp.ne.s32.totalorder %s1501_s21, 0 }
  0xa5   : > { %411 = vperm.xlu1 %871, %v720_v6   ;;  %752 = vmatpush3.bf16.msra.mxu1 %v875_v15  ;;  %p1026_p2 = scmp.ne.s32.totalorder %s1434_s20, %s1025_s14  ;;  %s1127_s25 = smov [#allocation13]  }
  0xa6   : > { %753 = vmatprep.subr.bf16.mxu1 %v1125_v13  ;;  %s1029_s16 = sshll.u32 %s1127_s25, 4  ;;  %s1030_s16 = int_to_ptr.vmem [resolvable:$false] %s1029_s16 }
  0xa7   : > { %746 = vmatpush3.bf16.msra.mxu0 %v874_v14  ;;  %p1027_p10 = pnand %p1026_p2, %p1506_p9  ;;  %s1031_s6 = scalar_lea.vmem %s1030_s16, 256 }
  0xa8   : > { %p1032_p0 = scmp.lt.s32.totalorder %s1434_s20, %s1030_s16  ;;  %p1033_p7 = scmp.lt.s32.totalorder %s1031_s6, %s1025_s14 }
  0xa9   : > { %754 = vmatpush3.bf16.msra.mxu1 %v876_v16  ;;  %p1028_p11 = pneg %p1027_p10 }
  0xaa   : > { %755 = vmatprep.subr.bf16.mxu1 %v1125_v13  ;;  %p1034_p5 = por %p1033_p7, %p1032_p0 }
  0xac   : > { %p1035_p8 = pnand %p1034_p5, %p1028_p11 }
  0xad   : > { %756 = vmatpush3.bf16.msra.mxu1 %v877_v32 }
  0xae   : > { %757 = vmatprep.subr.bf16.mxu1 %v1125_v13 }
  0xb1   : > { %758 = vmatpush3.bf16.msra.mxu1 %v878_v33 }
 0x120   : > { %v392_v25 = vpop.permute.xlu1 %391 }
 0x124   : > { %v412_v29 = vpop.permute.xlu1 %411 }
 0x12e   : > { %v376_v7 = vpop.xlane.xlu0 %375 }
 0x12f   : > { %v378_v8 = vmul.f32 0.03125, %v376_v7 }
 0x131   : > { %v379_v9 = vsub.f32 %v1418_v3, %v378_v8 }
 0x133   : > { %v380_v10 = vmul.f32 %v379_v9, %v379_v9  ;;  %v394_v26 = vmul.f32 %v392_v25, %v379_v9 }
 0x135   : > { %v381_v11 = vsel %vm373_vm0, %v380_v10, 0.0 }
 0x136   : > { %382 = vadd.xlane.f32.xlu0 %v381_v11 }
 0x1c3   : > { %v383_v17 = vpop.xlane.xlu0 %382 }
 0x1c4   : > { %v384_v18 = vmul.f32 0.032258064, %v383_v17 }
 0x1c6   : > { %879 = vrsqrt.f32 %v384_v18  ;;  %vm397_vm2 = vcmp.eq.f32.partialorder %v384_v18, inf  ;;  %v400_v21 = vand.u32 2147483648, %v384_v18  ;;  %vm399_vm3 = vcmp.eq.f32.partialorder %v384_v18, 0.0 }
 0x1d0   : > { %v880_v19 = vpop.eup %879 }
 0x1d1   : > { %v396_v20 = vmul.f32 %v880_v19, %v384_v18 }
 0x1d3   : > { %v398_v22 = vsel %vm397_vm2, %v384_v18, %v396_v20 }
 0x1d4   : > { %v401_v23 = vsel %vm399_vm3, %v400_v21, %v398_v22 }
 0x1d5   : > { %v402_v24 = vadd.f32 1e-06, %v401_v23 }
 0x1d7   : > { %881 = vrcp.f32 %v402_v24 }
 0x1e1   : > { %v882_v27 = vpop.eup %881 }
 0x1e2   : > { %v404_v28 = vmul.f32 %v882_v27, %v394_v26 }
 0x1e4   : > { %v414_v30 = vadd.f32 %v412_v29, %v404_v28 }
 0x1e6   : > { %v415_v31 = vpack.c.bf16 %v414_v30, %v414_v30 }
 0x1e8   : > { %748 = vmatmul.mubr.msk.bf16.vlgmr.msra.gmra.mrb[0].mxu0 %vm373_vm0, %v415_v31 }
 0x2bb   : > { %v476_v35 = vpop.f32.mrb[0].mxu0 }
 0x2bc   : > { %v477_v36 = vadd.f32 %v721_v34, %v476_v35  ;;  %v749_v37 = vpop.f32.mrb[1].mxu0 }
 0x2bd   : > { %v479_v38 = vpop.f32.mrb[2].mxu0 }
 0x2be   : > { %v482_v39 = vmax.f32 %v477_v36, 0.0  ;;  %v750_v40 = vpop.f32.mrb[3].mxu0 }
 0x2c0   : > { %v483_v41 = vpack.c.bf16 %v482_v39, %v482_v39 }
 0x2c2   : > { %760 = vmatmul.mubr.msk.bf16.vlgmr.msra.gmra.mrb[0].mxu1 %vm523_vm4, %v483_v41 }
 0x395   : > { %v561_v43 = vpop.f32.mrb[0].mxu1 }
 0x396   : > { %v562_v44 = vadd.f32 %v725_v42, %v561_v43  ;;  %v761_v45 = vpop.f32.mrb[1].mxu1 }
 0x397   : > { %v564_v46 = vpop.f32.mrb[2].mxu1 }
 0x398   : > { %v567_v47 = vadd.f32 %v562_v44, %v1418_v3  ;;  %v762_v48 = vpop.f32.mrb[3].mxu1 }
 0x39a   : > { %568 = vst.msk [vmem:[%s368_s11] sm:$0xff] %vm373_vm0, %v567_v47 }
 0x39b   : > { %1038 = shalt.err (!%p1035_p8)
}
 0x39c   : > { %s1039_s26 = scalar_lea.hbm %s1432_s24, 128  ;;  %s1043_s27 = scalar_lea.hbm %s1488_s7, 256 }
 0x39d   : > { %p1040_p1 = scmp.ne.s32.totalorder %s1432_s24, %s1039_s26  ;;  %p1044_p13 = scmp.lt.u32.totalorder %s1432_s24, %s1488_s7 }
 0x39e   : > { %p1045_p12 = scmp.lt.u32.totalorder %s1043_s27, %s1039_s26  ;;  %p1047_p2 = scmp.lt.u32.totalorder %s1039_s26, %s1432_s24 }
 0x39f   : > { %p1041_p3 = pnand %p1040_p1, %p1506_p9 }
 0x3a0   : > { %p1046_p4 = por %p1045_p12, %p1044_p13 }
 0x3a1   : > { %p1042_p6 = pneg %p1041_p3 }
 0x3a2   : > { %p1048_p10 = por %p1047_p2, %p1046_p4 }
 0x3a4   : > { %p1049_p11 = pnand %p1048_p10, %p1042_p6 }
 0x3a6   : > { %1052 = shalt.err (!%p1049_p11)
}
 0x3a7   : > { %781 = dma.vmem_to_hbm [thread:$0]  (%p1506_p9), %s1434_s20, 128, %s1432_s24, %s570_s8  }
 0x3a8 PF: > { %s596_s11 = sand.u32 1, %s1095_s28   ;;  %p1507_p0 = scmp.ne.s32.totalorder %s1502_s23, 0 }
 0x3a9   : > { %p1508_p7 = scmp.ge.s32.totalorder %s1115_s9, 2  ;;  %s597_s13 = scalar_lea.sflag [#allocation6], %s596_s11 }
 0x3ab   : > { %p801_p5 = pnand %p1508_p7, %p1507_p0 }
 0x3ad   : > { %1090 = dma.done.wait (!%p801_p5), %s597_s13, 128  }
 0x3ae   : > { %1092 = vsyncadd (!%p801_p5), %s597_s13, 4294967168  ;;  %s29_s9 = sadd.s32 1, %s1115_s9   ;;  %s1509_s28 = smov %s1099_s29 }
 0x3af   : > { %p26_p8 = scmp.ge.s32.totalorder %s29_s9, 4   ;;  %s1510_s29 = smov %s1103_s30 }
 0x3b0   : > { %s1511_s30 = smov %s1350_s22  ;;  %s1512_s8 = smov %s1111_s5 }
 0x3b1   : > { %s1513_s5 = smov %s1515_s15  ;;  %28 = sbr.rel (!%p26_p8) target bundleno = 11 (0xb), region = 109 }
 0x3b8   :  { %602 = vsyncpa [#allocation5], 1 }
 0x3b9   :  { %604 = vsyncpa [#allocation5 + $0x1], 1 }
 0x3ba   :  { %605 = vsyncpa [#allocation8], 1 }
 0x3bb   :  { %606 = vsyncpa [#allocation11], 1 }
 0x3bc   :  { %607 = vsyncpa [#allocation6], 1 }
 0x3bd   :  { %609 = vsyncpa [#allocation6 + $0x1], 1 }

// kernel: encoder_block_forward.2
= control target key start
LH: loop header
LB: loop body
LE: loop exit
PB: predicated region body
PF: predicated region fallthrough
CT: control target
= control target key end

     0   :  { %s2238_s0 = inlined_call_operand.hbm [shape: f32[2,8,32], index: 0, kind: input, shape index: {}]   ;;  %s2239_s1 = inlined_call_operand.hbm [shape: s8[2,8,8], index: 1, kind: input, shape index: {}]   ;;  %s2240_s2 = inlined_call_operand.hbm [shape: bf16[32,96], index: 2, kind: input, shape index: {}]   ;;  %s2241_s3 = inlined_call_operand.hbm [shape: f32[1,96], index: 3, kind: input, shape index: {}]   ;;  %s2242_s4 = inlined_call_operand.hbm [shape: bf16[32,32], index: 4, kind: input, shape index: {}]   ;;  %s2243_s5 = inlined_call_operand.hbm [shape: f32[1,32], index: 5, kind: input, shape index: {}]   ;;  %s2244_s6 = inlined_call_operand.<no memory space> [shape: f32[1,1], index: 6, kind: input, shape index: {}]   ;;  %s2245_s8 = inlined_call_operand.hbm [shape: f32[2,8,32], index: 8, kind: output, shape index: {}]   ;;  %s2246_s7 = inlined_call_operand.<no memory space> [shape: f32[1,1], index: 7, kind: input, shape index: {}]  }
   0x1   :  { %2251 = sst [smem:[#allocation22_spill]] %s2238_s0  ;;  %v13_v0 = vstv %s2244_s6  ;;  %v15_v1 = vstv %s2246_s7 }
   0x2   :  { %2252 = sst [smem:[#allocation23_spill]] %s2240_s2  ;;  %14 = vst [vmem:[#allocation2] sm:$0x1] %v13_v0  ;;  %16 = vst [vmem:[#allocation3] sm:$0x1] %v15_v1 }
   0x3   :  { %17 = vsyncpa [#allocation5], 0 }
   0x4   :  { %19 = vsyncpa [#allocation5 + $0x1], 0 }
   0x5   :  { %20 = vsyncpa [#allocation8], 0 }
   0x6   :  { %22 = vsyncpa [#allocation8 + $0x1], 0 }
   0x7   :  { %23 = vsyncpa [#allocation11], 0 }
   0x8   :  { %24 = vsyncpa [#allocation14], 0 }
   0x9   :  { %25 = vsyncpa [#allocation6], 0 }
   0xa   :  { %27 = vsyncpa [#allocation6 + $0x1], 0  ;;  %s1810_s9 = smov 0   ;;  %s1812_s10 = smov 0  }
   0xb   :  { %s1814_s11 = smov 0   ;;  %s1816_s6 = smov 0  }
   0xc LB: > { %s1733_s7 = smov [#allocation9]   ;;  %s1831_s13 = sadd.s32 4294967295, %s1731_s6   ;;  %s1731_s6 = sphi %s1816_s6, %s2281_s6   ;;  %s1727_s11 = sphi %s1814_s11, %s2280_s11   ;;  %s1723_s10 = sphi %s1812_s10, %s2279_s10   ;;  %s1719_s9 = sphi %s1810_s9, %s2278_s9  }
   0xd   : > { %s254_s12 = sshll.u32 %s1733_s7, 4  ;;  %p1214_p0 = scmp.ge.s32.totalorder %s1731_s6, 1  ;;  %s1836_s12 = int_to_ptr.vmem [resolvable:$true] %s254_s12 }
   0xe   : > { %p2247_p1 = scmp.eq.s32.totalorder %s1831_s13, 0  ;;  %p242_p2 = scmp.lt.s32.totalorder %s1731_s6, 3 }
   0xf   : > { %s1734_s15 = smov [#allocation10]   ;;  %s1735_s18 = smov [#allocation12]  }
  0x10   : > { %p1838_p3 = pnand %p1214_p0, %p242_p2  ;;  %s268_s16 = sshll.u32 %s1734_s15, 4  ;;  %s1851_s16 = int_to_ptr.vmem [resolvable:$true] %s268_s16 }
  0x11   : > { %s278_s19 = sshll.u32 %s1735_s18, 4  ;;  %s2255_s2 = sld [smem:[#allocation23_spill]]  ;;  %s1853_s19 = int_to_ptr.vmem [resolvable:$true] %s278_s19 }
  0x12   : > { %s2253_s14 = scalar_select %p1838_p3, 1, 0 }
  0x13   : > { %p1362_p5 = pneg %p1838_p3 }
  0x15   : > { %p1847_p6 = pnand %p1362_p5, %p2247_p1 }
  0x17   : > { %s1477_s22 = scalar_lea.hbm %s2255_s2, 256  ;;  %p1863_p8 = pneg %p1847_p6 }
  0x18   : > { %p1478_p7 = scmp.ne.s32.totalorder %s2255_s2, %s1477_s22  ;;  %p1484_p11 = scmp.lt.u32.totalorder %s1477_s22, %s2255_s2 }
  0x1a   : > { %p1480_p9 = pnand %p1863_p8, %p1478_p7 }
  0x1c   : > { %p1481_p10 = pneg %p1480_p9 }
  0x1e   : > { %p1486_p12 = pnand %p1484_p11, %p1481_p10 }
  0x20   : > { %1489 = shalt.err (!%p1486_p12)
}
  0x21   : > { %s1490_s28 = scalar_lea.vmem %s1836_s12, 256  ;;  %p1498_p5 = scmp.lt.s32.totalorder %s1836_s12, %s1836_s12 }
  0x22   : > { %p1491_p13 = scmp.ne.s32.totalorder %s1836_s12, %s1490_s28  ;;  %p1499_p4 = scmp.lt.s32.totalorder %s1490_s28, %s1490_s28 }
  0x24   : > { %p1493_p0 = pnand %p1491_p13, %p1863_p8  ;;  %p1500_p7 = por %p1499_p4, %p1498_p5 }
  0x26   : > { %p1494_p2 = pneg %p1493_p0 }
  0x28   : > { %p1501_p9 = pnand %p1500_p7, %p1494_p2 }
  0x2a   : > { %1504 = shalt.err (!%p1501_p9)
}
  0x2b   : > { %s1736_s29 = smov 64   ;;  %s1737_s30 = smov 4  }
  0x2c   : > { %1365 = dma.hbm_to_vmem [thread:$0]  (!%p1847_p6), %s2255_s2, 256, %s1836_s12, [#allocation8], %s1736_s29, %s1736_s29, %s1737_s30  }
  0x2d   : > { %s1505_s21 = scalar_lea.hbm %s2241_s3, 16 }
  0x2e   : > { %p1506_p4 = scmp.ne.s32.totalorder %s2241_s3, %s1505_s21  ;;  %p1512_p12 = scmp.lt.u32.totalorder %s1505_s21, %s2241_s3 }
  0x30   : > { %p1508_p10 = pnand %p1506_p4, %p1863_p8 }
  0x32   : > { %p1509_p11 = pneg %p1508_p10 }
  0x34   : > { %p1514_p13 = pnand %p1512_p12, %p1509_p11 }
  0x36   : > { %1517 = shalt.err (!%p1514_p13)
}
  0x37   : > { %s1518_s12 = scalar_lea.vmem %s1851_s16, 16  ;;  %s1525_s27 = scalar_lea.vmem %s1851_s16, 32 }
  0x38   : > { %p1519_p0 = scmp.ne.s32.totalorder %s1851_s16, %s1518_s12  ;;  %p1526_p7 = scmp.lt.s32.totalorder %s1851_s16, %s1851_s16 }
  0x39   : > { %p1527_p9 = scmp.lt.s32.totalorder %s1525_s27, %s1518_s12 }
  0x3a   : > { %p1521_p2 = pnand %p1519_p0, %p1863_p8 }
  0x3b   : > { %p1528_p4 = por %p1527_p9, %p1526_p7 }
  0x3c   : > { %p1522_p5 = pneg %p1521_p2 }
  0x3e   : > { %p1529_p10 = pnand %p1528_p4, %p1522_p5 }
  0x40   : > { %1532 = shalt.err (!%p1529_p10)
}
  0x41   : > { %1368 = dma.hbm_to_vmem [thread:$0]  (!%p1847_p6), %s2241_s3, 16, %s1851_s16, [#allocation11]  }
  0x42   : > { %s1533_s20 = scalar_lea.hbm %s2242_s4, 256 }
  0x43   : > { %p1534_p11 = scmp.ne.s32.totalorder %s2242_s4, %s1533_s20  ;;  %p1540_p0 = scmp.lt.u32.totalorder %s1533_s20, %s2242_s4 }
  0x45   : > { %p1536_p12 = pnand %p1534_p11, %p1863_p8 }
  0x47   : > { %p1537_p13 = pneg %p1536_p12 }
  0x49   : > { %p1542_p2 = pnand %p1540_p0, %p1537_p13 }
  0x4b   : > { %1545 = shalt.err (!%p1542_p2)
}
  0x4c   : > { %s1546_s16 = scalar_lea.vmem %s1853_s19, 256  ;;  %p1554_p4 = scmp.lt.s32.totalorder %s1853_s19, %s1853_s19 }
  0x4d   : > { %p1547_p5 = scmp.ne.s32.totalorder %s1853_s19, %s1546_s16  ;;  %p1555_p10 = scmp.lt.s32.totalorder %s1546_s16, %s1546_s16 }
  0x4f   : > { %p1549_p7 = pnand %p1547_p5, %p1863_p8  ;;  %p1556_p11 = por %p1555_p10, %p1554_p4 }
  0x51   : > { %p1550_p9 = pneg %p1549_p7 }
  0x53   : > { %p1557_p12 = pnand %p1556_p11, %p1550_p9 }
  0x55   : > { %1560 = shalt.err (!%p1557_p12)
}
  0x56   : > { %1371 = dma.hbm_to_vmem [thread:$0]  (!%p1847_p6), %s2242_s4, 256, %s1853_s19, [#allocation11], %s1736_s29, %s1736_s29, %s1737_s30  }
  0x57   : > { %s1738_s27 = smov [#allocation13]   ;;  %s1561_s18 = scalar_lea.hbm %s2243_s5, 16 }
  0x58   : > { %s292_s28 = sshll.u32 %s1738_s27, 4  ;;  %p1562_p13 = scmp.ne.s32.totalorder %s2243_s5, %s1561_s18  ;;  %s293_s28 = int_to_ptr.vmem [resolvable:$true] %s292_s28 }
  0x59   : > { %p1568_p5 = scmp.lt.u32.totalorder %s1561_s18, %s2243_s5 }
  0x5a   : > { %p1564_p0 = pnand %p1562_p13, %p1863_p8 }
  0x5c   : > { %p1565_p2 = pneg %p1564_p0 }
  0x5e   : > { %p1570_p7 = pnand %p1568_p5, %p1565_p2 }
  0x60   : > { %1573 = shalt.err (!%p1570_p7)
}
  0x61   : > { %s1574_s19 = scalar_lea.vmem %s293_s28, 16  ;;  %s1581_s29 = scalar_lea.vmem %s293_s28, 32 }
  0x62   : > { %p1575_p9 = scmp.ne.s32.totalorder %s293_s28, %s1574_s19  ;;  %p1582_p11 = scmp.lt.s32.totalorder %s293_s28, %s293_s28 }
  0x63   : > { %p1583_p12 = scmp.lt.s32.totalorder %s1581_s29, %s1574_s19 }
  0x64   : > { %p1577_p4 = pnand %p1575_p9, %p1863_p8 }
  0x65   : > { %p1584_p1 = por %p1583_p12, %p1582_p11 }
  0x66   : > { %p1578_p10 = pneg %p1577_p4 }
  0x68   : > { %p1585_p3 = pnand %p1584_p1, %p1578_p10 }
  0x6a   : > { %1588 = shalt.err (!%p1585_p3)
}
  0x6b   : > { %1374 = dma.hbm_to_vmem [thread:$0]  (!%p1847_p6), %s2243_s5, 16, %s293_s28, [#allocation14]  }
  0x6c   : > { %s1213_s25 = sadd.s32 4294967294, %s1731_s6   ;;  %s1957_s17 = sadd.s32 1, %s1731_s6  }
  0x6d   : > { %s37_s16 = ssub.s32 %s1731_s6, %s1957_s17  ;;  %s40_s26 = sadd.s32 1, %s1727_s11 }
  0x6e   : > { %p38_p1 = scmp.eq.s32.totalorder %s37_s16, 0  ;;  %p47_p3 = scmp.ne.s32.totalorder %s1727_s11, %s1723_s10 }
  0x6f   : > { %p48_p8 = scmp.eq.s32.totalorder %s1731_s6, 0  ;;  %p53_p13 = scmp.ne.s32.totalorder %s1723_s10, %s1719_s9 }
  0x70   : > { %s1968_s12 = scalar_select %p38_p1, %s1727_s11, %s40_s26  }
  0x71   : > { %p1970_p0 = por %p48_p8, %p47_p3  ;;  %p2258_p2 = scmp.eq.s32.totalorder %s1831_s13, 0 }
  0x72   : > { %p229_p5 = scmp.eq.s32.totalorder %s1831_s13, 1  ;;  %p235_p7 = scmp.eq.s32.totalorder %s1213_s25, 1 }
  0x73   : > { %p1976_p6 = por %p2258_p2, %p53_p13  ;;  %p1390_p9 = scmp.lt.s32.totalorder %s1731_s6, 2 }
  0x74   : > { %s1983_s7 = sand.u32 1, %s1727_s11   ;;  %p1985_p4 = por %p229_p5, %p47_p3 }
  0x75   : > { %s2259_s28 = scalar_select %p1976_p6, 1, 0 }
  0x76   : > { %s2260_s15 = scalar_select %p1985_p4, 1, 0 }
  0x77   : > { %p1989_p10 = por %p235_p7, %p53_p13  ;;  %s1220_s20 = sshll.u32 %s1983_s7, 3 }
  0x78   : > { %s1221_s21 = sshll.u32 %s1731_s6, 7  ;;  %s2262_s0 = sld [smem:[#allocation22_spill]] }
  0x79   : > { %s2261_s18 = scalar_select %p1989_p10, 1, 0 }
  0x7a   : > { %s313_s29 = scalar_lea.vmem [#allocation4], %s1220_s20  ;;  %p2004_p11 = pnand %p1390_p9, %p1970_p0 }
  0x7b   : > { %s320_s30 = sshll.u32 %s313_s29, 4  ;;  %s1222_s16 = sshll.u32 %s1983_s7, 1  ;;  %s2000_s30 = int_to_ptr.vmem [resolvable:$true] %s320_s30 }
  0x7c   : > { %s310_s26 = scalar_lea.sflag [#allocation5], %s1983_s7  ;;  %p1591_p1 = pneg %p2004_p11 }
  0x7e   : > { %s1998_s19 = scalar_lea.hbm %s2262_s0, %s1221_s21  ;;  %s1594_s27 = scalar_lea.hbm %s2262_s0, 256 }
  0x7f   : > { %s1589_s21 = scalar_lea.hbm %s1998_s19, 128  ;;  %p1595_p13 = scmp.lt.u32.totalorder %s1998_s19, %s2262_s0 }
  0x80   : > { %p1590_p12 = scmp.ne.s32.totalorder %s1998_s19, %s1589_s21  ;;  %p1596_p0 = scmp.lt.u32.totalorder %s1594_s27, %s1589_s21 }
  0x81   : > { %p1598_p5 = scmp.lt.u32.totalorder %s1589_s21, %s1998_s19 }
  0x82   : > { %p1592_p3 = pnand %p1591_p1, %p1590_p12  ;;  %p1597_p2 = por %p1596_p0, %p1595_p13 }
  0x84   : > { %p1593_p8 = pneg %p1592_p3  ;;  %p1599_p7 = por %p1598_p5, %p1597_p2 }
  0x86   : > { %p1600_p9 = pnand %p1599_p7, %p1593_p8 }
  0x88   : > { %1603 = shalt.err (!%p1600_p9)
}
  0x89   : > { %s1604_s25 = scalar_lea.vmem %s2000_s30, 128  ;;  %s1739_s20 = smov [#allocation4]  }
  0x8a   : > { %p1605_p12 = scmp.ne.s32.totalorder %s2000_s30, %s1604_s25  ;;  %s1609_s22 = sshll.u32 %s1739_s20, 4  ;;  %s1610_s22 = int_to_ptr.vmem [resolvable:$false] %s1609_s22 }
  0x8b   : > { %s1611_s23 = scalar_lea.vmem %s1610_s22, 256  ;;  %p1612_p4 = scmp.lt.s32.totalorder %s2000_s30, %s1610_s22 }
  0x8c   : > { %p1607_p3 = pnand %p1605_p12, %p1591_p1  ;;  %p1613_p13 = scmp.lt.s32.totalorder %s1611_s23, %s1604_s25 }
  0x8e   : > { %p1608_p10 = pneg %p1607_p3  ;;  %p1614_p0 = por %p1613_p13, %p1612_p4 }
  0x90   : > { %p1615_p2 = pnand %p1614_p0, %p1608_p10 }
  0x92   : > { %1618 = shalt.err (!%p1615_p2)
}
  0x93   : > { %1378 = dma.hbm_to_vmem [thread:$0]  (!%p2004_p11), %s1998_s19, 128, %s2000_s30, %s310_s26  }
  0x94   : > { %s1223_s21 = sshll.u32 %s1731_s6, 5  ;;  %s331_s25 = scalar_lea.vmem [#allocation7], %s1222_s16 }
  0x95   : > { %s2040_s20 = scalar_lea.hbm %s2239_s1, %s1223_s21  ;;  %s338_s22 = sshll.u32 %s331_s25, 4  ;;  %s339_s22 = int_to_ptr.vmem [resolvable:$true] %s338_s22 }
  0x96   : > { %s2264_s23 = sand.u32 1, %s1731_s6   ;;  %s1619_s2 = scalar_lea.hbm %s2040_s20, 32 }
  0x97   : > { %s328_s0 = scalar_lea.sflag [#allocation8], %s2264_s23  ;;  %p1620_p4 = scmp.ne.s32.totalorder %s2040_s20, %s1619_s2 }
  0x98   : > { %s1624_s26 = scalar_lea.hbm %s2239_s1, 64  ;;  %p1625_p5 = scmp.lt.u32.totalorder %s2040_s20, %s2239_s1 }
  0x99   : > { %p1622_p10 = pnand %p1620_p4, %p1591_p1  ;;  %p1626_p7 = scmp.lt.u32.totalorder %s1624_s26, %s1619_s2 }
  0x9a   : > { %p1628_p12 = scmp.lt.u32.totalorder %s1619_s2, %s2040_s20 }
  0x9b   : > { %p1623_p8 = pneg %p1622_p10  ;;  %p1627_p9 = por %p1626_p7, %p1625_p5 }
  0x9d   : > { %p1629_p3 = por %p1628_p12, %p1627_p9 }
  0x9f   : > { %p1630_p13 = pnand %p1629_p3, %p1623_p8 }
  0xa1   : > { %1633 = shalt.err (!%p1630_p13)
}
  0xa2   : > { %s1634_s16 = scalar_lea.vmem %s339_s22, 32  ;;  %s1740_s27 = smov [#allocation7]  }
  0xa3   : > { %p1635_p0 = scmp.ne.s32.totalorder %s339_s22, %s1634_s16  ;;  %s1639_s29 = sshll.u32 %s1740_s27, 4  ;;  %s1640_s29 = int_to_ptr.vmem [resolvable:$false] %s1639_s29 }
  0xa4   : > { %s1641_s25 = scalar_lea.vmem %s1640_s29, 64  ;;  %p1642_p10 = scmp.lt.s32.totalorder %s339_s22, %s1640_s29 }
  0xa5   : > { %p1637_p2 = pnand %p1635_p0, %p1591_p1  ;;  %p1643_p6 = scmp.lt.s32.totalorder %s1641_s25, %s1634_s16 }
  0xa7   : > { %p1638_p4 = pneg %p1637_p2  ;;  %p1644_p5 = por %p1643_p6, %p1642_p10 }
  0xa9   : > { %p1645_p7 = pnand %p1644_p5, %p1638_p4 }
  0xab   : > { %1648 = shalt.err (!%p1645_p7)
}
  0xac   : > { %1381 = dma.hbm_to_vmem [thread:$0]  (!%p2004_p11), %s2040_s20, 32, %s339_s22, %s328_s0  }
  0xad   : > { %p2265_p8 = scmp.ne.s32.totalorder %s2253_s14, 0 }
  0xae   : > { %s2068_s2 = sand.u32 (!%p2265_p8), 1, %s1723_s10   ;;  %p2266_p6 = scmp.ne.s32.totalorder (!%p2265_p8), %s2259_s28, 0 }
  0xaf   : > { %347 = sbr.rel (%p2265_p8) target bundleno = 2014 (0x7de), region = 52  ;;  %s1225_s23 = sshll.u32 (!%p2265_p8), %s2068_s2, 3 }
  0xb0   : > { %s350_s19 = scalar_lea.sflag (!%p2265_p8), [#allocation5], %s2068_s2  ;;  %s353_s30 = scalar_lea.vmem (!%p2265_p8), [#allocation4], %s1225_s23 }
  0xb6   : > { %1694 = dma.done.wait (%p2266_p6), %s350_s19, 128  }
  0xb7   : > { %1696 = vsyncadd (%p2266_p6), %s350_s19, 4294967168  ;;  %s358_s0 = sand.u32 1, %s1831_s13   ;;  %s1226_s14 = sshll.u32 %s2068_s2, 1 }
  0xb8   : > { %s359_s24 = scalar_lea.sflag [#allocation8], %s358_s0  ;;  %s2080_s20 = scalar_lea.vmem [#allocation7], %s1226_s14 }
  0xb9   : > { %1698 = dma.done.wait (%p2266_p6), %s359_s24, 32  }
  0xba   : > { %1700 = vsyncadd (%p2266_p6), %s359_s24, 4294967264  ;;  %p2267_p11 = scmp.eq.s32.totalorder %s1831_s13, 0 }
  0xbc   : > { %1702 = dma.done.wait (%p2267_p11), [#allocation8], 256   ;;  %p2268_p1 = pmov %p2267_p11 }
  0xbe   : > { %1704 = vsyncadd (%p2268_p1), [#allocation8], 4294967040  ;;  %p2269_p9 = pmov %p2268_p1 }
  0xbf   : > { %p2270_p12 = pmov %p2268_p1 }
  0xc0   : > { %1706 = dma.done.wait (%p2269_p9), [#allocation11], 272  }
  0xc1   : > { %1708 = vsyncadd (%p2270_p12), [#allocation11], 4294967024  ;;  %p2271_p3 = pmov %p2268_p1 }
  0xc2   : > { %p2272_p13 = pmov %p2268_p1 }
  0xc3   : > { %1710 = dma.done.wait (%p2271_p3), [#allocation14], 16  }
  0xc4   : > { %1712 = vsyncadd (%p2272_p13), [#allocation14], 4294967280  ;;  %v1741_v2 = vmov 0   ;;  %vm420_vm0 = vcmask 261120   ;;  %v2098_v3 = vld [vmem:[%s353_s30] sm:$0xff]  ;;  %v1453_v12 = vld [vmem:[#allocation9] sm:$0xff]  }
  0xc5   : > { %1451 = vset.pattern.permute.xlu1 %v1741_v2  ;;  %1452 = vset.pattern.permute.xlu0 %v1741_v2  ;;  %v1232_v4 = vld [vmem:[#allocation2] ss:$0 sm:$0xff]  ;;  %v421_v5 = vsel %vm420_vm0, %v2098_v3, 0.0  ;;  %v1233_v6 = vld [vmem:[#allocation3] ss:$0 sm:$0xff]  ;;  %v1742_v13 = vmov 0.0  }
  0xc6   : > { %438 = vperm.xlu1 %1451, %v1232_v4   ;;  %422 = vadd.xlane.f32.xlu0 %v421_v5  ;;  %v1454_v14 = vld [vmem:[#allocation9 + $0x8] sm:$0xff]   ;;  %vm1743_vm1 = vmmov 0   ;;  %v1234_v30 = vld [vmem:[#allocation10] ss:$0 sm:$0xff]  ;;  %s1744_s28 = smov 88   ;;  %s1745_s22 = smov 96  }
  0xc7   : > { %1276 = vmatprep.subr.bf16.mxu0 %v1742_v13  ;;  %1284 = vmatprep.subr.bf16.mxu1 %v1742_v13  ;;  %s1746_s26 = smov 80   ;;  %s1747_s7 = smov 120   ;;  %vm538_vm4 = vcmask 64512   ;;  %v532_v50 = vld [vmem:[%s2080_s20] sm:$0x3]  ;;  %vm603_vm6 = vcmask 1043456  }
  0xc8   : > { %1277 = vmatpush3.bf16.msra.mxu0 %v1453_v12  ;;  %1280 = vmatprep.mubr.msk.bf16.mxu0 %vm1743_vm1, %v1742_v13  ;;  %s1748_s21 = smov 112   ;;  %s1749_s16 = smov 72   ;;  %v533_v51 = vunpack.c.0.s8 %v532_v50  ;;  %vm994_vm7 = vcmask 130048   ;;  %vm996_vm8 = vcmask 195584  }
  0xc9   : > { %1278 = vmatprep.subr.bf16.mxu0 %v1742_v13  ;;  %1286 = vmatprep.mubr.msk.bf16.mxu1 %vm1743_vm1, %v1742_v13  ;;  %s1750_s27 = smov 104   ;;  %s1751_s29 = smov 64  }
  0xca   : > { %458 = vperm.xlu1 %1451, %v1233_v6   ;;  %vm2142_vm5 = vcmp.eq.s32.totalorder %v533_v51, 0  ;;  %s1752_s25 = smov 56   ;;  %s1753_s19 = smov 48  }
  0xcb   : > { %s1754_s30 = smov 40   ;;  %s1755_s0 = smov 8  }
  0xcc   : > { %1279 = vmatpush3.bf16.msra.mxu0 %v1454_v14  ;;  %s1756_s14 = smov 16   ;;  %s1757_s24 = smov 24  }
  0xcd   : > { %1290 = vmatprep.subr.bf16.mxu0 %v1742_v13  ;;  %s1251_s20 = sshll.u32 %s1831_s13, 7  ;;  %s1069_s13 = scalar_lea.sflag [#allocation6], %s2068_s2 }
  0xce   : > { %p2275_p2 = scmp.ne.s32.totalorder %s2260_s15, 0 }
 0x145   : > { %v439_v23 = vpop.permute.xlu1 %438 }
 0x149   : > { %v459_v27 = vpop.permute.xlu1 %458 }
 0x153   : > { %v423_v7 = vpop.xlane.xlu0 %422 }
 0x154   : > { %v425_v8 = vmul.f32 0.03125, %v423_v7 }
 0x156   : > { %v426_v9 = vsub.f32 %v2098_v3, %v425_v8 }
 0x158   : > { %v427_v10 = vmul.f32 %v426_v9, %v426_v9  ;;  %v441_v24 = vmul.f32 %v439_v23, %v426_v9 }
 0x15a   : > { %v428_v11 = vsel %vm420_vm0, %v427_v10, 0.0 }
 0x15b   : > { %429 = vadd.xlane.f32.xlu0 %v428_v11 }
 0x1e8   : > { %v430_v15 = vpop.xlane.xlu0 %429 }
 0x1e9   : > { %v431_v16 = vmul.f32 0.032258064, %v430_v15 }
 0x1eb   : > { %1457 = vrsqrt.f32 %v431_v16  ;;  %vm444_vm2 = vcmp.eq.f32.partialorder %v431_v16, inf  ;;  %v447_v19 = vand.u32 2147483648, %v431_v16  ;;  %vm446_vm3 = vcmp.eq.f32.partialorder %v431_v16, 0.0 }
 0x1f5   : > { %v1458_v17 = vpop.eup %1457 }
 0x1f6   : > { %v443_v18 = vmul.f32 %v1458_v17, %v431_v16 }
 0x1f8   : > { %v445_v20 = vsel %vm444_vm2, %v431_v16, %v443_v18 }
 0x1f9   : > { %v448_v21 = vsel %vm446_vm3, %v447_v19, %v445_v20 }
 0x1fa   : > { %v449_v22 = vadd.f32 1e-06, %v448_v21 }
 0x1fc   : > { %1459 = vrcp.f32 %v449_v22 }
 0x206   : > { %v1460_v25 = vpop.eup %1459 }
 0x207   : > { %v451_v26 = vmul.f32 %v1460_v25, %v441_v24 }
 0x209   : > { %v461_v28 = vadd.f32 %v459_v27, %v451_v26 }
 0x20b   : > { %v462_v29 = vpack.c.bf16 %v461_v28, %v461_v28 }
 0x20d   : > { %1281 = vmatmul.mubr.msk.bf16.vlgmr.msra.gmra.mrb[0].mxu0 %vm420_vm0, %v462_v29 }
 0x20e   : > { %1292 = vmatprep.mubr.msk.bf16.mxu0 %vm1743_vm1, %v1742_v13 }
 0x2e0   : > { %v523_v31 = vpop.f32.mrb[0].mxu0 }
 0x2e1   : > { %v524_v32 = vadd.f32 %v1234_v30, %v523_v31  ;;  %v1282_v33 = vpop.f32.mrb[1].mxu0 }
 0x2e2   : > { %v526_v34 = vpop.f32.mrb[2].mxu0 }
 0x2e3   : > { %v2115_v35 = vpack.c.bf16 %v524_v32, %v524_v32  ;;  %v1283_v36 = vpop.f32.mrb[3].mxu0  ;;  %v529_v37 = vmul.f32 0.35355338, %v524_v32 }
 0x2e5   : > { %650 = vrot.lane.b32.xlu1 %v2115_v35, %s1744_s28  ;;  %536 = vrot.lane.b32.xlu0 %v2115_v35, %s1745_s22  ;;  %v530_v38 = vpack.c.bf16 %v529_v37, %v529_v37  ;;  %s415_s28 = scalar_lea.vmem [#allocation15], %s1225_s23 }
 0x2e6   : > { %s1082_s22 = sshll.u32 %s415_s28, 4  ;;  %s2195_s22 = int_to_ptr.vmem [resolvable:$true] %s1082_s22 }
 0x2e7   : > { %s1649_s23 = scalar_lea.vmem %s2195_s22, 128 }
 0x2e8   : > { %p1650_p0 = scmp.ne.s32.totalorder %s2195_s22, %s1649_s23 }
 0x2e9   : > { %761 = vrot.lane.b32.xlu1 %v2115_v35, %s1746_s26 }
 0x2ea   : > { %p1651_p4 = pnand %p1650_p0, %p2275_p2 }
 0x2ec   : > { %p1652_p10 = pneg %p1651_p4 }
 0x2ed   : > { %648 = vrot.lane.b32.xlu1 %v530_v38, %s1747_s7 }
 0x2f1   : > { %759 = vrot.lane.b32.xlu1 %v530_v38, %s1748_s21  ;;  %s2193_s21 = scalar_lea.hbm %s2245_s8, %s1251_s20 }
 0x2f5   : > { %872 = vrot.lane.b32.xlu1 %v2115_v35, %s1749_s16  ;;  %s1758_s16 = smov [#allocation15]  }
 0x2f9   : > { %870 = vrot.lane.b32.xlu1 %v530_v38, %s1750_s27  ;;  %s1653_s27 = sshll.u32 %s1758_s16, 4  ;;  %s1654_s27 = int_to_ptr.vmem [resolvable:$false] %s1653_s27 }
 0x2fa   : > { %p1656_p5 = scmp.lt.s32.totalorder %s2195_s22, %s1654_s27 }
 0x357   : > { %v651_v39 = vpop.permute.xlu1 %650  ;;  %v537_v40 = vpop.permute.xlu0 %536 }
 0x358   : > { %v543_v41 = vsel %vm538_vm4, %v537_v40, 0  ;;  %v656_v43 = vsel %vm538_vm4, %v651_v39, 0 }
 0x359   : > { %1285 = vmatpush3.bf16.xpose.msra.mxu1 %v543_v41 }
 0x35a   : > { %1296 = vmatprep.subr.bf16.mxu1 %v1742_v13 }
 0x35b   : > { %v762_v42 = vpop.permute.xlu1 %761 }
 0x35c   : > { %v767_v46 = vsel %vm538_vm4, %v762_v42, 0 }
 0x35f   : > { %v649_v44 = vpop.permute.xlu1 %648 }
 0x360   : > { %1287 = vmatmul.mubr.msk.bf16.vlgmr.msra.gmra.mrb[0].mxu1 %vm538_vm4, %v530_v38 }
 0x361   : > { %1297 = vmatpush3.bf16.xpose.msra.mxu1 %v656_v43  ;;  %1298 = vmatprep.mubr.msk.bf16.mxu1 %vm1743_vm1, %v1742_v13 }
 0x362   : > { %1308 = vmatprep.subr.bf16.mxu1 %v1742_v13 }
 0x363   : > { %v760_v45 = vpop.permute.xlu1 %759 }
 0x367   : > { %v873_v47 = vpop.permute.xlu1 %872 }
 0x368   : > { %1299 = vmatmul.mubr.msk.bf16.vlgmr.msra.gmra.mrb[4].mxu1 %vm538_vm4, %v649_v44  ;;  %v878_v48 = vsel %vm538_vm4, %v873_v47, 0 }
 0x369   : > { %1309 = vmatpush3.bf16.xpose.msra.mxu1 %v767_v46  ;;  %1310 = vmatprep.mubr.msk.bf16.mxu1 %vm1743_vm1, %v1742_v13 }
 0x36a   : > { %1320 = vmatprep.subr.bf16.mxu1 %v1742_v13 }
 0x36b   : > { %v871_v49 = vpop.permute.xlu1 %870 }
 0x370   : > { %1311 = vmatmul.mubr.msk.bf16.vlgmr.msra.gmra.mrb[8].mxu1 %vm538_vm4, %v760_v45 }
 0x371   : > { %1321 = vmatpush3.bf16.xpose.msra.mxu1 %v878_v48  ;;  %1322 = vmatprep.mubr.msk.bf16.mxu1 %vm1743_vm1, %v1742_v13 }
 0x372   : > { %1332 = vmatprep.subr.bf16.mxu1 %v1742_v13 }
 0x378   : > { %1323 = vmatmul.mubr.msk.bf16.vlgmr.msra.gmra.mrb[12].mxu1 %vm538_vm4, %v871_v49 }
 0x379   : > { %1336 = vmatprep.mubr.msk.bf16.mxu1 %vm1743_vm1, %v1742_v13 }
 0x433   : > { %v579_v53 = vpop.f32.mrb[0].mxu1 }
 0x434   : > { %v585_v54 = vsel %vm2142_vm5, -1e+09, %v579_v53  ;;  %v1288_v55 = vpop.f32.mrb[1].mxu1 }
 0x435   : > { %v582_v56 = vpop.f32.mrb[2].mxu1  ;;  %v586_v57 = vsel %vm538_vm4, %v585_v54, -inf }
 0x436   : > { %587 = vmax.xlane.f32.xlu0 %v586_v57  ;;  %v1289_v58 = vpop.f32.mrb[3].mxu1 }
 0x43b   : > { %v692_v59 = vpop.f32.mrb[4].mxu1 }
 0x43c   : > { %v698_v60 = vsel %vm2142_vm5, -1e+09, %v692_v59  ;;  %v1300_v61 = vpop.f32.mrb[5].mxu1 }
 0x43d   : > { %v695_v62 = vpop.f32.mrb[6].mxu1  ;;  %v699_v63 = vsel %vm538_vm4, %v698_v60, -inf }
 0x43e   : > { %700 = vmax.xlane.f32.xlu1 %v699_v63  ;;  %v1301_v0 = vpop.f32.mrb[7].mxu1 }
 0x443   : > { %v803_v1 = vpop.f32.mrb[8].mxu1 }
 0x444   : > { %v809_v2 = vsel %vm2142_vm5, -1e+09, %v803_v1  ;;  %v1312_v4 = vpop.f32.mrb[9].mxu1 }
 0x445   : > { %v806_v5 = vpop.f32.mrb[10].mxu1  ;;  %v810_v6 = vsel %vm538_vm4, %v809_v2, -inf  ;;  %v1455_v4 = vld [vmem:[#allocation12] sm:$0xff]  }
 0x446   : > { %811 = vmax.xlane.f32.xlu0 %v810_v6  ;;  %v1313_v7 = vpop.f32.mrb[11].mxu1  ;;  %1333 = vmatpush3.bf16.msra.mxu1 %v1455_v4  ;;  %v1456_v5 = vld [vmem:[#allocation12 + $0x8] sm:$0xff]  }
 0x447   : > { %1334 = vmatprep.subr.bf16.mxu1 %v1742_v13 }
 0x44a   : > { %1335 = vmatpush3.bf16.msra.mxu1 %v1456_v5 }
 0x44b   : > { %v914_v8 = vpop.f32.mrb[12].mxu1 }
 0x44c   : > { %v920_v9 = vsel %vm2142_vm5, -1e+09, %v914_v8  ;;  %v1324_v10 = vpop.f32.mrb[13].mxu1 }
 0x44d   : > { %v917_v11 = vpop.f32.mrb[14].mxu1  ;;  %v921_v12 = vsel %vm538_vm4, %v920_v9, -inf }
 0x44e   : > { %922 = vmax.xlane.f32.xlu0 %v921_v12  ;;  %v1325_v14 = vpop.f32.mrb[15].mxu1 }
 0x4c3   : > { %v588_v15 = vpop.xlane.xlu0 %587 }
 0x4c4   : > { %v589_v16 = vsub.f32 %v585_v54, %v588_v15 }
 0x4c6   : > { %v590_v17 = vmul.f32 1.442695, %v589_v16 }
 0x4c8   : > { %1461 = vpow2.f32 %v590_v17 }
 0x4cb   : > { %v701_v18 = vpop.xlane.xlu1 %700 }
 0x4cc   : > { %v702_v19 = vsub.f32 %v698_v60, %v701_v18 }
 0x4ce   : > { %v703_v20 = vmul.f32 1.442695, %v702_v19 }
 0x4d0   : > { %1463 = vpow2.f32 %v703_v20 }
 0x4d2   : > { %v1462_v21 = vpop.eup %1461 }
 0x4d3   : > { %v592_v22 = vsel %vm538_vm4, %v1462_v21, 0.0  ;;  %v812_v23 = vpop.xlane.xlu0 %811 }
 0x4d4   : > { %593 = vadd.xlane.f32.xlu1 %v592_v22  ;;  %v813_v31 = vsub.f32 %v809_v2, %v812_v23  ;;  %v1249_v22 = vld [vmem:[#allocation13] ss:$0 sm:$0xff] }
 0x4d6   : > { %v814_v32 = vmul.f32 1.442695, %v813_v31 }
 0x4da   : > { %v1464_v24 = vpop.eup %1463 }
 0x4db   : > { %v923_v25 = vpop.xlane.xlu0 %922  ;;  %v705_v26 = vsel %vm538_vm4, %v1464_v24, 0.0 }
 0x4dc   : > { %v924_v27 = vsub.f32 %v920_v9, %v923_v25  ;;  %706 = vadd.xlane.f32.xlu0 %v705_v26 }
 0x4de   : > { %v925_v28 = vmul.f32 1.442695, %v924_v27 }
 0x4e0   : > { %1465 = vpow2.f32 %v925_v28 }
 0x4e1   : > { %1467 = vpow2.f32 %v814_v32 }
 0x4e5   : > { %598 = vrot.lane.b32.xlu1 %v2115_v35, %s1751_s29  ;;  %s1655_s29 = scalar_lea.vmem %s1654_s27, 256 }
 0x4e6   : > { %p1657_p7 = scmp.lt.s32.totalorder %s1655_s29, %s1649_s23 }
 0x4e8   : > { %p1658_p8 = por %p1657_p7, %p1656_p5 }
 0x4ea   : > { %v1466_v29 = vpop.eup %1465  ;;  %p1659_p6 = pnand %p1658_p8, %p1652_p10 }
 0x4eb   : > { %v927_v30 = vsel %vm538_vm4, %v1466_v29, 0.0  ;;  %v1468_v33 = vpop.eup %1467 }
 0x4ec   : > { %928 = vadd.xlane.f32.xlu0 %v927_v30  ;;  %v816_v34 = vsel %vm538_vm4, %v1468_v33, 0.0 }
 0x502   : > { %711 = vrot.lane.b32.xlu0 %v2115_v35, %s1752_s25 }
 0x509   : > { %817 = vadd.xlane.f32.xlu1 %v816_v34 }
 0x51a   : > { %822 = vrot.lane.b32.xlu1 %v2115_v35, %s1753_s19 }
 0x51e   : > { %933 = vrot.lane.b32.xlu1 %v2115_v35, %s1754_s30 }
 0x561   : > { %v594_v36 = vpop.xlane.xlu1 %593 }
 0x562   : > { %1469 = vrcp.f32 %v594_v36 }
 0x565   : > { %v599_v37 = vpop.permute.xlu1 %598 }
 0x566   : > { %v605_v38 = vsel %vm603_vm6, %v599_v37, 0 }
 0x567   : > { %1291 = vmatpush3.bf16.msra.mxu0 %v605_v38 }
 0x568   : > { %1302 = vmatprep.subr.bf16.mxu0 %v1742_v13 }
 0x569   : > { %v707_v40 = vpop.xlane.xlu0 %706 }
 0x56a   : > { %1471 = vrcp.f32 %v707_v40 }
 0x56c   : > { %v1470_v39 = vpop.eup %1469 }
 0x56d   : > { %v596_v41 = vmul.f32 %v1470_v39, %v1462_v21 }
 0x56f   : > { %v597_v42 = vpack.c.bf16 %v596_v41, %v596_v41 }
 0x571   : > { %1293 = vmatmul.mubr.msk.bf16.vlgmr.msra.gmra.mrb[4].mxu0 %vm538_vm4, %v597_v42 }
 0x572   : > { %1304 = vmatprep.mubr.msk.bf16.mxu0 %vm1743_vm1, %v1742_v13 }
 0x574   : > { %v1472_v35 = vpop.eup %1471 }
 0x575   : > { %v709_v44 = vmul.f32 %v1472_v35, %v1464_v24 }
 0x577   : > { %v710_v47 = vpack.c.bf16 %v709_v44, %v709_v44 }
 0x579   : > { %v929_v43 = vpop.xlane.xlu0 %928 }
 0x57d   : > { %v712_v45 = vpop.permute.xlu0 %711 }
 0x57e   : > { %v717_v46 = vsel %vm603_vm6, %v712_v45, 0 }
 0x57f   : > { %1303 = vmatpush3.bf16.msra.mxu0 %v717_v46 }
 0x580   : > { %1314 = vmatprep.subr.bf16.mxu0 %v1742_v13 }
 0x582   : > { %1305 = vmatmul.mubr.msk.bf16.vlgmr.msra.gmra.mrb[8].mxu0 %vm538_vm4, %v710_v47 }
 0x583   : > { %1316 = vmatprep.mubr.msk.bf16.mxu0 %vm1743_vm1, %v1742_v13 }
 0x596   : > { %v818_v48 = vpop.xlane.xlu1 %817 }
 0x597   : > { %1473 = vrcp.f32 %v818_v48 }
 0x598   : > { %1475 = vrcp.f32 %v929_v43 }
 0x59a   : > { %v823_v49 = vpop.permute.xlu1 %822 }
 0x59b   : > { %v828_v50 = vsel %vm603_vm6, %v823_v49, 0 }
 0x59c   : > { %1315 = vmatpush3.bf16.msra.mxu0 %v828_v50 }
 0x59d   : > { %1326 = vmatprep.subr.bf16.mxu0 %v1742_v13 }
 0x59e   : > { %v934_v53 = vpop.permute.xlu1 %933 }
 0x59f   : > { %v939_v56 = vsel %vm603_vm6, %v934_v53, 0 }
 0x5a1   : > { %v1474_v51 = vpop.eup %1473 }
 0x5a2   : > { %v820_v52 = vmul.f32 %v1474_v51, %v1468_v33  ;;  %v1476_v55 = vpop.eup %1475 }
 0x5a3   : > { %v931_v57 = vmul.f32 %v1476_v55, %v1466_v29 }
 0x5a4   : > { %v821_v54 = vpack.c.bf16 %v820_v52, %v820_v52 }
 0x5a5   : > { %v932_v58 = vpack.c.bf16 %v931_v57, %v931_v57 }
 0x5a6   : > { %1317 = vmatmul.mubr.msk.bf16.vlgmr.msra.gmra.mrb[12].mxu0 %vm538_vm4, %v821_v54 }
 0x5a7   : > { %1327 = vmatpush3.bf16.msra.mxu0 %v939_v56  ;;  %1328 = vmatprep.mubr.msk.bf16.mxu0 %vm1743_vm1, %v1742_v13 }
 0x5ae   : > { %1329 = vmatmul.mubr.msk.bf16.vlgmr.msra.gmra.mrb[16].mxu0 %vm538_vm4, %v932_v58 }
 0x644   : > { %v641_v59 = vpop.f32.mrb[4].mxu0 }
 0x645   : > { %v1294_v60 = vpop.f32.mrb[5].mxu0 }
 0x646   : > { %v644_v61 = vpop.f32.mrb[6].mxu0 }
 0x647   : > { %v1295_v62 = vpop.f32.mrb[7].mxu0 }
 0x655   : > { %v753_v63 = vpop.f32.mrb[8].mxu0 }
 0x656   : > { %982 = vrot.lane.b32.xlu0 %v753_v63, %s1755_s0  ;;  %v1306_v0 = vpop.f32.mrb[9].mxu0 }
 0x657   : > { %v756_v1 = vpop.f32.mrb[10].mxu0 }
 0x658   : > { %v1307_v2 = vpop.f32.mrb[11].mxu0 }
 0x679   : > { %v864_v6 = vpop.f32.mrb[12].mxu0 }
 0x67a   : > { %986 = vrot.lane.b32.xlu1 %v864_v6, %s1756_s14  ;;  %v1318_v7 = vpop.f32.mrb[13].mxu0 }
 0x67b   : > { %v867_v8 = vpop.f32.mrb[14].mxu0 }
 0x67c   : > { %v1319_v9 = vpop.f32.mrb[15].mxu0 }
 0x681   : > { %v975_v10 = vpop.f32.mrb[16].mxu0 }
 0x682   : > { %990 = vrot.lane.b32.xlu0 %v975_v10, %s1757_s24  ;;  %v1330_v11 = vpop.f32.mrb[17].mxu0 }
 0x683   : > { %v978_v12 = vpop.f32.mrb[18].mxu0 }
 0x684   : > { %v1331_v14 = vpop.f32.mrb[19].mxu0 }
 0x6c8   : > { %v983_v15 = vpop.permute.xlu0 %982 }
 0x6c9   : > { %v993_v13 = vsel %vm538_vm4, %v641_v59, %v983_v15 }
 0x6ec   : > { %v987_v16 = vpop.permute.xlu1 %986 }
 0x6ed   : > { %v995_v17 = vsel %vm994_vm7, %v993_v13, %v987_v16 }
 0x6f4   : > { %v991_v18 = vpop.permute.xlu0 %990 }
 0x6f5   : > { %v997_v19 = vsel %vm996_vm8, %v995_v17, %v991_v18 }
 0x6f6   : > { %v998_v20 = vpack.c.bf16 %v997_v19, %v997_v19 }
 0x6f8   : > { %1337 = vmatmul.mubr.msk.bf16.vlgmr.msra.gmra.mrb[16].mxu1 %vm420_vm0, %v998_v20 }
 0x7cb   : > { %v1052_v21 = vpop.f32.mrb[16].mxu1 }
 0x7cc   : > { %v1058_v23 = vadd.f32 %v1052_v21, %v2098_v3  ;;  %v1338_v24 = vpop.f32.mrb[17].mxu1 }
 0x7cd   : > { %v1055_v25 = vpop.f32.mrb[18].mxu1 }
 0x7ce   : > { %v1066_v26 = vadd.f32 %v1249_v22, %v1058_v23  ;;  %v1339_v27 = vpop.f32.mrb[19].mxu1 }
 0x7d0   : > { %1067 = vst.msk [vmem:[%s415_s28] sm:$0xff] %vm420_vm0, %v1066_v26 }
 0x7d1   : > { %1662 = shalt.err (!%p1659_p6)
}
 0x7d2   : > { %s1663_s2 = scalar_lea.hbm %s2193_s21, 128  ;;  %s1667_s30 = scalar_lea.hbm %s2245_s8, 256 }
 0x7d3   : > { %p1664_p11 = scmp.ne.s32.totalorder %s2193_s21, %s1663_s2  ;;  %p1668_p12 = scmp.lt.u32.totalorder %s2193_s21, %s2245_s8 }
 0x7d4   : > { %p1669_p3 = scmp.lt.u32.totalorder %s1667_s30, %s1663_s2  ;;  %p1671_p0 = scmp.lt.u32.totalorder %s1663_s2, %s2193_s21 }
 0x7d5   : > { %p1665_p1 = pnand %p1664_p11, %p2275_p2 }
 0x7d6   : > { %p1670_p13 = por %p1669_p3, %p1668_p12 }
 0x7d7   : > { %p1666_p9 = pneg %p1665_p1 }
 0x7d8   : > { %p1672_p4 = por %p1671_p0, %p1670_p13 }
 0x7da   : > { %p1673_p10 = pnand %p1672_p4, %p1666_p9 }
 0x7dc   : > { %1676 = shalt.err (!%p1673_p10)
}
 0x7dd   : > { %1360 = dma.vmem_to_hbm [thread:$0]  (%p2275_p2), %s2195_s22, 128, %s2193_s21, %s1069_s13  }
 0x7de PF: > { %s1094_s24 = sand.u32 1, %s1719_s9   ;;  %p2276_p5 = scmp.ne.s32.totalorder %s2261_s18, 0 }
 0x7df   : > { %p2277_p7 = scmp.ge.s32.totalorder %s1731_s6, 2  ;;  %s1095_s20 = scalar_lea.sflag [#allocation6], %s1094_s24 }
 0x7e1   : > { %p1383_p8 = pnand %p2277_p7, %p2276_p5 }
 0x7e3   : > { %1714 = dma.done.wait (!%p1383_p8), %s1095_s20, 128  }
 0x7e4   : > { %1716 = vsyncadd (!%p1383_p8), %s1095_s20, 4294967168  ;;  %p30_p6 = scmp.ge.s32.totalorder %s1957_s17, 4   ;;  %s2278_s9 = smov %s1723_s10 }
 0x7e5   : > { %s2279_s10 = smov %s1727_s11  ;;  %s2280_s11 = smov %s1968_s12 }
 0x7e6   : > { %s2281_s6 = smov %s1957_s17  ;;  %32 = sbr.rel (!%p30_p6) target bundleno = 12 (0xc), region = 126 }
 0x7ed   :  { %1100 = vsyncpa [#allocation5], 1 }
 0x7ee   :  { %1102 = vsyncpa [#allocation5 + $0x1], 1 }
 0x7ef   :  { %1103 = vsyncpa [#allocation8], 1 }
 0x7f0   :  { %1105 = vsyncpa [#allocation8 + $0x1], 1 }
 0x7f1   :  { %1106 = vsyncpa [#allocation11], 1 }
 0x7f2   :  { %1107 = vsyncpa [#allocation14], 1 }
 0x7f3   :  { %1108 = vsyncpa [#allocation6], 1 }
 0x7f4   :  { %1110 = vsyncpa [#allocation6 + $0x1], 1 }

// kernel: encoder_block_forward.3
= control target key start
LH: loop header
LB: loop body
LE: loop exit
PB: predicated region body
PF: predicated region fallthrough
CT: control target
= control target key end

     0   :  { %s1482_s0 = inlined_call_operand.hbm [shape: f32[2,8,32], index: 0, kind: input, shape index: {}]   ;;  %s1483_s1 = inlined_call_operand.hbm [shape: bf16[32,64], index: 1, kind: input, shape index: {}]   ;;  %s1484_s2 = inlined_call_operand.hbm [shape: f32[1,64], index: 2, kind: input, shape index: {}]   ;;  %s1485_s3 = inlined_call_operand.hbm [shape: bf16[64,32], index: 3, kind: input, shape index: {}]   ;;  %s1486_s4 = inlined_call_operand.hbm [shape: f32[1,32], index: 4, kind: input, shape index: {}]   ;;  %s1487_s5 = inlined_call_operand.<no memory space> [shape: f32[1,1], index: 5, kind: input, shape index: {}]   ;;  %s1488_s7 = inlined_call_operand.hbm [shape: f32[2,8,32], index: 7, kind: output, shape index: {}]   ;;  %s1489_s6 = inlined_call_operand.<no memory space> [shape: f32[1,1], index: 6, kind: input, shape index: {}]  }
   0x1   :  { %v12_v0 = vstv %s1487_s5  ;;  %v14_v1 = vstv %s1489_s6 }
   0x2   :  { %13 = vst [vmem:[#allocation2] sm:$0x1] %v12_v0  ;;  %15 = vst [vmem:[#allocation3] sm:$0x1] %v14_v1 }
   0x3   :  { %16 = vsyncpa [#allocation5], 0 }
   0x4   :  { %18 = vsyncpa [#allocation5 + $0x1], 0 }
   0x5   :  { %19 = vsyncpa [#allocation8], 0 }
   0x6   :  { %20 = vsyncpa [#allocation11], 0 }
   0x7   :  { %21 = vsyncpa [#allocation6], 0 }
   0x8   :  { %23 = vsyncpa [#allocation6 + $0x1], 0  ;;  %s1174_s28 = smov 0   ;;  %s1176_s29 = smov 0  }
   0x9   :  { %s1178_s30 = smov 0   ;;  %s1180_s8 = smov 0  }
   0xa   :  { %s1182_s5 = smov 0   ;;  %s1184_s9 = smov 0  }
   0xb LB: > { %s702_s6 = sadd.s32 4294967295, %s1115_s9   ;;  %p704_p0 = scmp.ge.s32.totalorder %s1115_s9, 1  ;;  %s1115_s9 = sphi %s1184_s9, %s29_s9   ;;  %s1111_s5 = sphi %s1182_s5, %s1513_s5   ;;  %s1107_s8 = sphi %s1180_s8, %s1512_s8   ;;  %s1103_s30 = sphi %s1178_s30, %s1511_s30   ;;  %s1099_s29 = sphi %s1176_s29, %s1510_s29   ;;  %s1095_s28 = sphi %s1174_s28, %s1509_s28  }
   0xc   : > { %p1208_p1 = scmp.eq.s32.totalorder %s702_s6, 0  ;;  %p228_p2 = scmp.lt.s32.totalorder %s1115_s9, 3 }
   0xd   : > { %s1117_s12 = smov [#allocation7]   ;;  %s1118_s15 = smov [#allocation10]  }
   0xe   : > { %s1494_s10 = scalar_select %p1208_p1, 1, 0 }
   0xf   : > { %p1213_p3 = pnand %p704_p0, %p228_p2  ;;  %s240_s13 = sshll.u32 %s1117_s12, 4  ;;  %s1217_s13 = int_to_ptr.vmem [resolvable:$true] %s240_s13 }
  0x10   : > { %s264_s16 = sshll.u32 %s1118_s15, 4  ;;  %s1119_s17 = smov [#allocation9]   ;;  %s1228_s16 = int_to_ptr.vmem [resolvable:$true] %s264_s16 }
  0x11   : > { %s1495_s11 = scalar_select %p1213_p3, 1, 0 }
  0x12   : > { %p783_p4 = pneg %p1213_p3  ;;  %s1230_s18 = sshll.u32 %s1119_s17, 4  ;;  %s255_s18 = int_to_ptr.vmem [resolvable:$true] %s1230_s18 }
  0x13   : > { %s883_s21 = scalar_lea.hbm %s1483_s1, 256 }
  0x14   : > { %p1224_p6 = pnand %p783_p4, %p1208_p1  ;;  %p884_p7 = scmp.ne.s32.totalorder %s1483_s1, %s883_s21 }
  0x15   : > { %p890_p11 = scmp.lt.u32.totalorder %s883_s21, %s1483_s1 }
  0x16   : > { %p1240_p8 = pneg %p1224_p6 }
  0x18   : > { %p886_p9 = pnand %p1240_p8, %p884_p7 }
  0x1a   : > { %p887_p10 = pneg %p886_p9 }
  0x1c   : > { %p892_p12 = pnand %p890_p11, %p887_p10 }
  0x1e   : > { %895 = shalt.err (!%p892_p12)
}
  0x1f   : > { %s896_s27 = scalar_lea.vmem %s1217_s13, 256  ;;  %p904_p4 = scmp.lt.s32.totalorder %s1217_s13, %s1217_s13 }
  0x20   : > { %p897_p13 = scmp.ne.s32.totalorder %s1217_s13, %s896_s27  ;;  %p905_p5 = scmp.lt.s32.totalorder %s896_s27, %s896_s27 }
  0x22   : > { %p899_p0 = pnand %p897_p13, %p1240_p8  ;;  %p906_p7 = por %p905_p5, %p904_p4 }
  0x24   : > { %p900_p2 = pneg %p899_p0 }
  0x26   : > { %p907_p9 = pnand %p906_p7, %p900_p2 }
  0x28   : > { %910 = shalt.err (!%p907_p9)
}
  0x29   : > { %s1120_s12 = smov 64   ;;  %s1121_s15 = smov 4  }
  0x2a   : > { %786 = dma.hbm_to_vmem [thread:$0]  (!%p1224_p6), %s1483_s1, 256, %s1217_s13, [#allocation8], %s1120_s12, %s1120_s12, %s1121_s15  }
  0x2b   : > { %s911_s22 = scalar_lea.hbm %s1485_s3, 512 }
  0x2c   : > { %p912_p5 = scmp.ne.s32.totalorder %s1485_s3, %s911_s22  ;;  %p918_p12 = scmp.lt.u32.totalorder %s911_s22, %s1485_s3 }
  0x2e   : > { %p914_p10 = pnand %p912_p5, %p1240_p8 }
  0x30   : > { %p915_p11 = pneg %p914_p10 }
  0x32   : > { %p920_p13 = pnand %p918_p12, %p915_p11 }
  0x34   : > { %923 = shalt.err (!%p920_p13)
}
  0x35   : > { %s924_s13 = scalar_lea.vmem %s1228_s16, 512  ;;  %p932_p7 = scmp.lt.s32.totalorder %s1228_s16, %s1228_s16 }
  0x36   : > { %p925_p0 = scmp.ne.s32.totalorder %s1228_s16, %s924_s13  ;;  %p933_p9 = scmp.lt.s32.totalorder %s924_s13, %s924_s13 }
  0x38   : > { %p927_p2 = pnand %p925_p0, %p1240_p8  ;;  %p934_p5 = por %p933_p9, %p932_p7 }
  0x3a   : > { %p928_p4 = pneg %p927_p2 }
  0x3c   : > { %p935_p10 = pnand %p934_p5, %p928_p4 }
  0x3e   : > { %938 = shalt.err (!%p935_p10)
}
  0x3f   : > { %792 = dma.hbm_to_vmem [thread:$0]  (!%p1224_p6), %s1485_s3, 512, %s1228_s16, [#allocation11], %s1120_s12, %s1120_s12, %s1121_s15  }
  0x40   : > { %s939_s22 = scalar_lea.hbm %s1484_s2, 16 }
  0x41   : > { %p940_p11 = scmp.ne.s32.totalorder %s1484_s2, %s939_s22  ;;  %p946_p0 = scmp.lt.u32.totalorder %s939_s22, %s1484_s2 }
  0x43   : > { %p942_p12 = pnand %p940_p11, %p1240_p8 }
  0x45   : > { %p943_p13 = pneg %p942_p12 }
  0x47   : > { %p948_p2 = pnand %p946_p0, %p943_p13 }
  0x49   : > { %951 = shalt.err (!%p948_p2)
}
  0x4a   : > { %s952_s13 = scalar_lea.vmem %s255_s18, 16  ;;  %s959_s16 = scalar_lea.vmem %s255_s18, 32 }
  0x4b   : > { %p953_p4 = scmp.ne.s32.totalorder %s255_s18, %s952_s13  ;;  %p960_p5 = scmp.lt.s32.totalorder %s255_s18, %s255_s18 }
  0x4c   : > { %p961_p10 = scmp.lt.s32.totalorder %s959_s16, %s952_s13 }
  0x4d   : > { %p955_p7 = pnand %p953_p4, %p1240_p8 }
  0x4e   : > { %p962_p3 = por %p961_p10, %p960_p5 }
  0x4f   : > { %p956_p9 = pneg %p955_p7 }
  0x51   : > { %p963_p1 = pnand %p962_p3, %p956_p9 }
  0x53   : > { %966 = shalt.err (!%p963_p1)
}
  0x54   : > { %789 = dma.hbm_to_vmem [thread:$0]  (!%p1224_p6), %s1484_s2, 16, %s255_s18, [#allocation8]  }
  0x55   : > { %s1122_s17 = smov [#allocation12]   ;;  %s967_s22 = scalar_lea.hbm %s1486_s4, 16 }
  0x56   : > { %s278_s19 = sshll.u32 %s1122_s17, 4  ;;  %p968_p11 = scmp.ne.s32.totalorder %s1486_s4, %s967_s22  ;;  %s279_s19 = int_to_ptr.vmem [resolvable:$true] %s278_s19 }
  0x57   : > { %p974_p12 = scmp.lt.u32.totalorder %s967_s22, %s1486_s4 }
  0x58   : > { %p970_p1 = pnand %p968_p11, %p1240_p8 }
  0x5a   : > { %p971_p3 = pneg %p970_p1 }
  0x5c   : > { %p976_p13 = pnand %p974_p12, %p971_p3 }
  0x5e   : > { %979 = shalt.err (!%p976_p13)
}
  0x5f   : > { %s980_s18 = scalar_lea.vmem %s279_s19, 16  ;;  %s987_s13 = scalar_lea.vmem %s279_s19, 32 }
  0x60   : > { %p981_p0 = scmp.ne.s32.totalorder %s279_s19, %s980_s18  ;;  %p988_p7 = scmp.lt.s32.totalorder %s279_s19, %s279_s19 }
  0x61   : > { %p989_p9 = scmp.lt.s32.totalorder %s987_s13, %s980_s18 }
  0x62   : > { %p983_p2 = pnand %p981_p0, %p1240_p8 }
  0x63   : > { %p990_p5 = por %p989_p9, %p988_p7 }
  0x64   : > { %p984_p4 = pneg %p983_p2 }
  0x66   : > { %p991_p10 = pnand %p990_p5, %p984_p4 }
  0x68   : > { %994 = shalt.err (!%p991_p10)
}
  0x69   : > { %795 = dma.hbm_to_vmem [thread:$0]  (!%p1224_p6), %s1486_s4, 16, %s279_s19, [#allocation11]  }
  0x6a   : > { %s703_s24 = sadd.s32 4294967294, %s1115_s9   ;;  %s41_s15 = sadd.s32 1, %s1111_s5 }
  0x6b   : > { %p43_p8 = scmp.ge.s32.totalorder %s41_s15, 2  ;;  %s50_s14 = sadd.s32 1, %s1103_s30 }
  0x6c   : > { %p57_p11 = scmp.ne.s32.totalorder %s1103_s30, %s1099_s29  ;;  %p58_p1 = scmp.eq.s32.totalorder %s1115_s9, 0 }
  0x6d   : > { %s1515_s15 = smov (%p43_p8, %s41_s15), 0  ;;  %p63_p12 = scmp.ne.s32.totalorder %s1099_s29, %s1095_s28 }
  0x6e   : > { %p1329_p3 = por %p58_p1, %p57_p11  ;;  %s45_s19 = ssub.s32 %s1111_s5, %s1515_s15 }
  0x6f   : > { %p215_p6 = scmp.eq.s32.totalorder %s702_s6, 1  ;;  %p48_p13 = scmp.eq.s32.totalorder %s45_s19, 0 }
  0x70   : > { %p1499_p0 = scmp.ne.s32.totalorder %s1494_s10, 0  ;;  %p221_p7 = scmp.eq.s32.totalorder %s703_s24, 1 }
  0x71   : > { %p1345_p4 = por %p215_p6, %p57_p11  ;;  %p808_p5 = scmp.lt.s32.totalorder %s1115_s9, 2 }
  0x72   : > { %p1341_p2 = por %p1499_p0, %p63_p12  ;;  %p1352_p9 = por %p221_p7, %p63_p12 }
  0x73   : > { %s1501_s21 = scalar_select %p1345_p4, 1, 0 }
  0x74   : > { %s1350_s22 = scalar_select %p48_p13, %s1103_s30, %s50_s14  }
  0x75   : > { %s1502_s23 = scalar_select %p1352_p9, 1, 0 }
  0x76   : > { %s295_s25 = sand.u32 1, %s1103_s30   ;;  %s711_s6 = sshll.u32 %s1111_s5, 7 }
  0x77   : > { %s710_s26 = sshll.u32 %s295_s25, 3  ;;  %s1362_s13 = scalar_lea.hbm %s1482_s0, %s711_s6 }
  0x78   : > { %s299_s16 = scalar_lea.vmem [#allocation4], %s710_s26  ;;  %p1366_p10 = pnand %p808_p5, %p1329_p3 }
  0x79   : > { %s307_s12 = sshll.u32 %s299_s16, 4  ;;  %s296_s14 = scalar_lea.sflag [#allocation5], %s295_s25  ;;  %s1370_s12 = int_to_ptr.vmem [resolvable:$true] %s307_s12 }
  0x7a   : > { %s995_s19 = scalar_lea.hbm %s1362_s13, 128  ;;  %p997_p11 = pneg %p1366_p10 }
  0x7b   : > { %p996_p8 = scmp.ne.s32.totalorder %s1362_s13, %s995_s19  ;;  %s1000_s17 = scalar_lea.hbm %s1482_s0, 256 }
  0x7c   : > { %p1001_p3 = scmp.lt.u32.totalorder %s1362_s13, %s1482_s0  ;;  %p1002_p6 = scmp.lt.u32.totalorder %s1000_s17, %s995_s19 }
  0x7d   : > { %p998_p1 = pnand %p997_p11, %p996_p8  ;;  %p1004_p0 = scmp.lt.u32.totalorder %s995_s19, %s1362_s13 }
  0x7e   : > { %p1003_p13 = por %p1002_p6, %p1001_p3 }
  0x7f   : > { %p999_p12 = pneg %p998_p1 }
  0x80   : > { %p1005_p7 = por %p1004_p0, %p1003_p13 }
  0x82   : > { %p1006_p5 = pnand %p1005_p7, %p999_p12 }
  0x84   : > { %1009 = shalt.err (!%p1006_p5)
}
  0x85   : > { %s1010_s25 = scalar_lea.vmem %s1370_s12, 128  ;;  %s1123_s16 = smov [#allocation4]  }
  0x86   : > { %p1011_p8 = scmp.ne.s32.totalorder %s1370_s12, %s1010_s25  ;;  %s1015_s6 = sshll.u32 %s1123_s16, 4  ;;  %s1016_s6 = int_to_ptr.vmem [resolvable:$false] %s1015_s6 }
  0x87   : > { %s1017_s26 = scalar_lea.vmem %s1016_s6, 256  ;;  %p1018_p4 = scmp.lt.s32.totalorder %s1370_s12, %s1016_s6 }
  0x88   : > { %p1013_p1 = pnand %p1011_p8, %p997_p11  ;;  %p1019_p3 = scmp.lt.s32.totalorder %s1017_s26, %s1010_s25 }
  0x8a   : > { %p1014_p9 = pneg %p1013_p1  ;;  %p1020_p6 = por %p1019_p3, %p1018_p4 }
  0x8c   : > { %p1021_p13 = pnand %p1020_p6, %p1014_p9 }
  0x8e   : > { %1024 = shalt.err (!%p1021_p13)
}
  0x8f   : > { %799 = dma.hbm_to_vmem [thread:$0]  (!%p1366_p10), %s1362_s13, 128, %s1370_s12, %s296_s14  }
  0x90   : > { %p1504_p12 = scmp.ne.s32.totalorder %s1495_s11, 0 }
  0x91   : > { %s1400_s19 = sand.u32 (!%p1504_p12), 1, %s1099_s29  }
  0x92   : > { %316 = sbr.rel (%p1504_p12) target bundleno = 936 (0x3a8), region = 48  ;;  %s713_s17 = sshll.u32 (!%p1504_p12), %s1400_s19, 3 }
  0x93   : > { %s319_s27 = scalar_lea.sflag (!%p1504_p12), [#allocation5], %s1400_s19  ;;  %s322_s18 = scalar_lea.vmem (!%p1504_p12), [#allocation4], %s713_s17 }
  0x99   : > { %1078 = dma.done.wait (%p1341_p2), %s319_s27, 128  }
  0x9a   : > { %1080 = vsyncadd (%p1341_p2), %s319_s27, 4294967168  ;;  %p1505_p4 = scmp.ne.s32.totalorder %s1494_s10, 0 }
  0x9c   : > { %1082 = dma.done.wait (%p1505_p4), [#allocation8], 272  }
  0x9d   : > { %1084 = vsyncadd (%p1505_p4), [#allocation8], 4294967024 }
  0x9e   : > { %1086 = dma.done.wait (%p1505_p4), [#allocation11], 528  }
  0x9f   : > { %1088 = vsyncadd (%p1505_p4), [#allocation11], 4294966768  ;;  %v1124_v2 = vmov 0   ;;  %vm373_vm0 = vcmask 261120   ;;  %v1418_v3 = vld [vmem:[%s322_s18] sm:$0xff]  ;;  %v873_v12 = vld [vmem:[#allocation7] sm:$0xff]  }
  0xa0   : > { %871 = vset.pattern.permute.xlu1 %v1124_v2  ;;  %872 = vset.pattern.permute.xlu0 %v1124_v2  ;;  %v719_v4 = vld [vmem:[#allocation2] ss:$0 sm:$0xff]  ;;  %v374_v5 = vsel %vm373_vm0, %v1418_v3, 0.0  ;;  %v720_v6 = vld [vmem:[#allocation3] ss:$0 sm:$0xff]  ;;  %v1125_v13 = vmov 0.0  }
  0xa1   : > { %391 = vperm.xlu1 %871, %v719_v4   ;;  %375 = vadd.xlane.f32.xlu0 %v374_v5  ;;  %v874_v14 = vld [vmem:[#allocation7 + $0x8] sm:$0xff]   ;;  %vm1126_vm1 = vmmov 0   ;;  %v875_v15 = vld [vmem:[#allocation10] sm:$0xff]   ;;  %v876_v16 = vld [vmem:[#allocation10 + $0x8] sm:$0xff]   ;;  %vm523_vm4 = vcmask 523264   ;;  %s732_s10 = sshll.u32 %s1107_s8, 7 }
  0xa2   : > { %743 = vmatprep.subr.bf16.mxu0 %v1125_v13  ;;  %751 = vmatprep.subr.bf16.mxu1 %v1125_v13  ;;  %v877_v32 = vld [vmem:[#allocation10 + $0x10] sm:$0xff]   ;;  %v878_v33 = vld [vmem:[#allocation10 + $0x18] sm:$0xff]   ;;  %v725_v42 = vld [vmem:[#allocation12] ss:$0 sm:$0xff]  ;;  %s368_s11 = scalar_lea.vmem [#allocation13], %s713_s17  ;;  %s1432_s24 = scalar_lea.hbm %s1488_s7, %s732_s10 }
  0xa3   : > { %744 = vmatpush3.bf16.msra.mxu0 %v873_v12  ;;  %747 = vmatprep.mubr.msk.bf16.mxu0 %vm1126_vm1, %v1125_v13  ;;  %v721_v34 = vld [vmem:[#allocation9] ss:$0 sm:$0xff]  ;;  %s584_s20 = sshll.u32 %s368_s11, 4  ;;  %s570_s8 = scalar_lea.sflag [#allocation6], %s1400_s19  ;;  %s1434_s20 = int_to_ptr.vmem [resolvable:$true] %s584_s20 }
  0xa4   : > { %745 = vmatprep.subr.bf16.mxu0 %v1125_v13  ;;  %759 = vmatprep.mubr.msk.bf16.mxu1 %vm1126_vm1, %v1125_v13  ;;  %s1025_s14 = scalar_lea.vmem %s1434_s20, 128  ;;  %p1506_p9 = scmp.ne.s32.totalorder %s1501_s21, 0 }
  0xa5   : > { %411 = vperm.xlu1 %871, %v720_v6   ;;  %752 = vmatpush3.bf16.msra.mxu1 %v875_v15  ;;  %p1026_p2 = scmp.ne.s32.totalorder %s1434_s20, %s1025_s14  ;;  %s1127_s25 = smov [#allocation13]  }
  0xa6   : > { %753 = vmatprep.subr.bf16.mxu1 %v1125_v13  ;;  %s1029_s16 = sshll.u32 %s1127_s25, 4  ;;  %s1030_s16 = int_to_ptr.vmem [resolvable:$false] %s1029_s16 }
  0xa7   : > { %746 = vmatpush3.bf16.msra.mxu0 %v874_v14  ;;  %p1027_p10 = pnand %p1026_p2, %p1506_p9  ;;  %s1031_s6 = scalar_lea.vmem %s1030_s16, 256 }
  0xa8   : > { %p1032_p0 = scmp.lt.s32.totalorder %s1434_s20, %s1030_s16  ;;  %p1033_p7 = scmp.lt.s32.totalorder %s1031_s6, %s1025_s14 }
  0xa9   : > { %754 = vmatpush3.bf16.msra.mxu1 %v876_v16  ;;  %p1028_p11 = pneg %p1027_p10 }
  0xaa   : > { %755 = vmatprep.subr.bf16.mxu1 %v1125_v13  ;;  %p1034_p5 = por %p1033_p7, %p1032_p0 }
  0xac   : > { %p1035_p8 = pnand %p1034_p5, %p1028_p11 }
  0xad   : > { %756 = vmatpush3.bf16.msra.mxu1 %v877_v32 }
  0xae   : > { %757 = vmatprep.subr.bf16.mxu1 %v1125_v13 }
  0xb1   : > { %758 = vmatpush3.bf16.msra.mxu1 %v878_v33 }
 0x120   : > { %v392_v25 = vpop.permute.xlu1 %391 }
 0x124   : > { %v412_v29 = vpop.permute.xlu1 %411 }
 0x12e   : > { %v376_v7 = vpop.xlane.xlu0 %375 }
 0x12f   : > { %v378_v8 = vmul.f32 0.03125, %v376_v7 }
 0x131   : > { %v379_v9 = vsub.f32 %v1418_v3, %v378_v8 }
 0x133   : > { %v380_v10 = vmul.f32 %v379_v9, %v379_v9  ;;  %v394_v26 = vmul.f32 %v392_v25, %v379_v9 }
 0x135   : > { %v381_v11 = vsel %vm373_vm0, %v380_v10, 0.0 }
 0x136   : > { %382 = vadd.xlane.f32.xlu0 %v381_v11 }
 0x1c3   : > { %v383_v17 = vpop.xlane.xlu0 %382 }
 0x1c4   : > { %v384_v18 = vmul.f32 0.032258064, %v383_v17 }
 0x1c6   : > { %879 = vrsqrt.f32 %v384_v18  ;;  %vm397_vm2 = vcmp.eq.f32.partialorder %v384_v18, inf  ;;  %v400_v21 = vand.u32 2147483648, %v384_v18  ;;  %vm399_vm3 = vcmp.eq.f32.partialorder %v384_v18, 0.0 }
 0x1d0   : > { %v880_v19 = vpop.eup %879 }
 0x1d1   : > { %v396_v20 = vmul.f32 %v880_v19, %v384_v18 }
 0x1d3   : > { %v398_v22 = vsel %vm397_vm2, %v384_v18, %v396_v20 }
 0x1d4   : > { %v401_v23 = vsel %vm399_vm3, %v400_v21, %v398_v22 }
 0x1d5   : > { %v402_v24 = vadd.f32 1e-06, %v401_v23 }
 0x1d7   : > { %881 = vrcp.f32 %v402_v24 }
 0x1e1   : > { %v882_v27 = vpop.eup %881 }
 0x1e2   : > { %v404_v28 = vmul.f32 %v882_v27, %v394_v26 }
 0x1e4   : > { %v414_v30 = vadd.f32 %v412_v29, %v404_v28 }
 0x1e6   : > { %v415_v31 = vpack.c.bf16 %v414_v30, %v414_v30 }
 0x1e8   : > { %748 = vmatmul.mubr.msk.bf16.vlgmr.msra.gmra.mrb[0].mxu0 %vm373_vm0, %v415_v31 }
 0x2bb   : > { %v476_v35 = vpop.f32.mrb[0].mxu0 }
 0x2bc   : > { %v477_v36 = vadd.f32 %v721_v34, %v476_v35  ;;  %v749_v37 = vpop.f32.mrb[1].mxu0 }
 0x2bd   : > { %v479_v38 = vpop.f32.mrb[2].mxu0 }
 0x2be   : > { %v482_v39 = vmax.f32 %v477_v36, 0.0  ;;  %v750_v40 = vpop.f32.mrb[3].mxu0 }
 0x2c0   : > { %v483_v41 = vpack.c.bf16 %v482_v39, %v482_v39 }
 0x2c2   : > { %760 = vmatmul.mubr.msk.bf16.vlgmr.msra.gmra.mrb[0].mxu1 %vm523_vm4, %v483_v41 }
 0x395   : > { %v561_v43 = vpop.f32.mrb[0].mxu1 }
 0x396   : > { %v562_v44 = vadd.f32 %v725_v42, %v561_v43  ;;  %v761_v45 = vpop.f32.mrb[1].mxu1 }
 0x397   : > { %v564_v46 = vpop.f32.mrb[2].mxu1 }
 0x398   : > { %v567_v47 = vadd.f32 %v562_v44, %v1418_v3  ;;  %v762_v48 = vpop.f32.mrb[3].mxu1 }
 0x39a   : > { %568 = vst.msk [vmem:[%s368_s11] sm:$0xff] %vm373_vm0, %v567_v47 }
 0x39b   : > { %1038 = shalt.err (!%p1035_p8)
}
 0x39c   : > { %s1039_s26 = scalar_lea.hbm %s1432_s24, 128  ;;  %s1043_s27 = scalar_lea.hbm %s1488_s7, 256 }
 0x39d   : > { %p1040_p1 = scmp.ne.s32.totalorder %s1432_s24, %s1039_s26  ;;  %p1044_p13 = scmp.lt.u32.totalorder %s1432_s24, %s1488_s7 }
 0x39e   : > { %p1045_p12 = scmp.lt.u32.totalorder %s1043_s27, %s1039_s26  ;;  %p1047_p2 = scmp.lt.u32.totalorder %s1039_s26, %s1432_s24 }
 0x39f   : > { %p1041_p3 = pnand %p1040_p1, %p1506_p9 }
 0x3a0   : > { %p1046_p4 = por %p1045_p12, %p1044_p13 }
 0x3a1   : > { %p1042_p6 = pneg %p1041_p3 }
 0x3a2   : > { %p1048_p10 = por %p1047_p2, %p1046_p4 }
 0x3a4   : > { %p1049_p11 = pnand %p1048_p10, %p1042_p6 }
 0x3a6   : > { %1052 = shalt.err (!%p1049_p11)
}
 0x3a7   : > { %781 = dma.vmem_to_hbm [thread:$0]  (%p1506_p9), %s1434_s20, 128, %s1432_s24, %s570_s8  }
 0x3a8 PF: > { %s596_s11 = sand.u32 1, %s1095_s28   ;;  %p1507_p0 = scmp.ne.s32.totalorder %s1502_s23, 0 }
 0x3a9   : > { %p1508_p7 = scmp.ge.s32.totalorder %s1115_s9, 2  ;;  %s597_s13 = scalar_lea.sflag [#allocation6], %s596_s11 }
 0x3ab   : > { %p801_p5 = pnand %p1508_p7, %p1507_p0 }
 0x3ad   : > { %1090 = dma.done.wait (!%p801_p5), %s597_s13, 128  }
 0x3ae   : > { %1092 = vsyncadd (!%p801_p5), %s597_s13, 4294967168  ;;  %s29_s9 = sadd.s32 1, %s1115_s9   ;;  %s1509_s28 = smov %s1099_s29 }
 0x3af   : > { %p26_p8 = scmp.ge.s32.totalorder %s29_s9, 4   ;;  %s1510_s29 = smov %s1103_s30 }
 0x3b0   : > { %s1511_s30 = smov %s1350_s22  ;;  %s1512_s8 = smov %s1111_s5 }
 0x3b1   : > { %s1513_s5 = smov %s1515_s15  ;;  %28 = sbr.rel (!%p26_p8) target bundleno = 11 (0xb), region = 109 }
 0x3b8   :  { %602 = vsyncpa [#allocation5], 1 }
 0x3b9   :  { %604 = vsyncpa [#allocation5 + $0x1], 1 }
 0x3ba   :  { %605 = vsyncpa [#allocation8], 1 }
 0x3bb   :  { %606 = vsyncpa [#allocation11], 1 }
 0x3bc   :  { %607 = vsyncpa [#allocation6], 1 }
 0x3bd   :  { %609 = vsyncpa [#allocation6 + $0x1], 1 }

// kernel: encoder_block_forward.2
= control target key start
LH: loop header
LB: loop body
LE: loop exit
PB: predicated region body
PF: predicated region fallthrough
CT: control target
= control target key end

     0   :  { %s2238_s0 = inlined_call_operand.hbm [shape: f32[2,8,32], index: 0, kind: input, shape index: {}]   ;;  %s2239_s1 = inlined_call_operand.hbm [shape: s8[2,8,8], index: 1, kind: input, shape index: {}]   ;;  %s2240_s2 = inlined_call_operand.hbm [shape: bf16[32,96], index: 2, kind: input, shape index: {}]   ;;  %s2241_s3 = inlined_call_operand.hbm [shape: f32[1,96], index: 3, kind: input, shape index: {}]   ;;  %s2242_s4 = inlined_call_operand.hbm [shape: bf16[32,32], index: 4, kind: input, shape index: {}]   ;;  %s2243_s5 = inlined_call_operand.hbm [shape: f32[1,32], index: 5, kind: input, shape index: {}]   ;;  %s2244_s6 = inlined_call_operand.<no memory space> [shape: f32[1,1], index: 6, kind: input, shape index: {}]   ;;  %s2245_s8 = inlined_call_operand.hbm [shape: f32[2,8,32], index: 8, kind: output, shape index: {}]   ;;  %s2246_s7 = inlined_call_operand.<no memory space> [shape: f32[1,1], index: 7, kind: input, shape index: {}]  }
   0x1   :  { %2251 = sst [smem:[#allocation22_spill]] %s2238_s0  ;;  %v13_v0 = vstv %s2244_s6  ;;  %v15_v1 = vstv %s2246_s7 }
   0x2   :  { %2252 = sst [smem:[#allocation23_spill]] %s2240_s2  ;;  %14 = vst [vmem:[#allocation2] sm:$0x1] %v13_v0  ;;  %16 = vst [vmem:[#allocation3] sm:$0x1] %v15_v1 }
   0x3   :  { %17 = vsyncpa [#allocation5], 0 }
   0x4   :  { %19 = vsyncpa [#allocation5 + $0x1], 0 }
   0x5   :  { %20 = vsyncpa [#allocation8], 0 }
   0x6   :  { %22 = vsyncpa [#allocation8 + $0x1], 0 }
   0x7   :  { %23 = vsyncpa [#allocation11], 0 }
   0x8   :  { %24 = vsyncpa [#allocation14], 0 }
   0x9   :  { %25 = vsyncpa [#allocation6], 0 }
   0xa   :  { %27 = vsyncpa [#allocation6 + $0x1], 0  ;;  %s1810_s9 = smov 0   ;;  %s1812_s10 = smov 0  }
   0xb   :  { %s1814_s11 = smov 0   ;;  %s1816_s6 = smov 0  }
   0xc LB: > { %s1733_s7 = smov [#allocation9]   ;;  %s1831_s13 = sadd.s32 4294967295, %s1731_s6   ;;  %s1731_s6 = sphi %s1816_s6, %s2281_s6   ;;  %s1727_s11 = sphi %s1814_s11, %s2280_s11   ;;  %s1723_s10 = sphi %s1812_s10, %s2279_s10   ;;  %s1719_s9 = sphi %s1810_s9, %s2278_s9  }
   0xd   : > { %s254_s12 = sshll.u32 %s1733_s7, 4  ;;  %p1214_p0 = scmp.ge.s32.totalorder %s1731_s6, 1  ;;  %s1836_s12 = int_to_ptr.vmem [resolvable:$true] %s254_s12 }
   0xe   : > { %p2247_p1 = scmp.eq.s32.totalorder %s1831_s13, 0  ;;  %p242_p2 = scmp.lt.s32.totalorder %s1731_s6, 3 }
   0xf   : > { %s1734_s15 = smov [#allocation10]   ;;  %s1735_s18 = smov [#allocation12]  }
  0x10   : > { %p1838_p3 = pnand %p1214_p0, %p242_p2  ;;  %s268_s16 = sshll.u32 %s1734_s15, 4  ;;  %s1851_s16 = int_to_ptr.vmem [resolvable:$true] %s268_s16 }
  0x11   : > { %s278_s19 = sshll.u32 %s1735_s18, 4  ;;  %s2255_s2 = sld [smem:[#allocation23_spill]]  ;;  %s1853_s19 = int_to_ptr.vmem [resolvable:$true] %s278_s19 }
  0x12   : > { %s2253_s14 = scalar_select %p1838_p3, 1, 0 }
  0x13   : > { %p1362_p5 = pneg %p1838_p3 }
  0x15   : > { %p1847_p6 = pnand %p1362_p5, %p2247_p1 }
  0x17   : > { %s1477_s22 = scalar_lea.hbm %s2255_s2, 256  ;;  %p1863_p8 = pneg %p1847_p6 }
  0x18   : > { %p1478_p7 = scmp.ne.s32.totalorder %s2255_s2, %s1477_s22  ;;  %p1484_p11 = scmp.lt.u32.totalorder %s1477_s22, %s2255_s2 }
  0x1a   : > { %p1480_p9 = pnand %p1863_p8, %p1478_p7 }
  0x1c   : > { %p1481_p10 = pneg %p1480_p9 }
  0x1e   : > { %p1486_p12 = pnand %p1484_p11, %p1481_p10 }
  0x20   : > { %1489 = shalt.err (!%p1486_p12)
}
  0x21   : > { %s1490_s28 = scalar_lea.vmem %s1836_s12, 256  ;;  %p1498_p5 = scmp.lt.s32.totalorder %s1836_s12, %s1836_s12 }
  0x22   : > { %p1491_p13 = scmp.ne.s32.totalorder %s1836_s12, %s1490_s28  ;;  %p1499_p4 = scmp.lt.s32.totalorder %s1490_s28, %s1490_s28 }
  0x24   : > { %p1493_p0 = pnand %p1491_p13, %p1863_p8  ;;  %p1500_p7 = por %p1499_p4, %p1498_p5 }
  0x26   : > { %p1494_p2 = pneg %p1493_p0 }
  0x28   : > { %p1501_p9 = pnand %p1500_p7, %p1494_p2 }
  0x2a   : > { %1504 = shalt.err (!%p1501_p9)
}
  0x2b   : > { %s1736_s29 = smov 64   ;;  %s1737_s30 = smov 4  }
  0x2c   : > { %1365 = dma.hbm_to_vmem [thread:$0]  (!%p1847_p6), %s2255_s2, 256, %s1836_s12, [#allocation8], %s1736_s29, %s1736_s29, %s1737_s30  }
  0x2d   : > { %s1505_s21 = scalar_lea.hbm %s2241_s3, 16 }
  0x2e   : > { %p1506_p4 = scmp.ne.s32.totalorder %s2241_s3, %s1505_s21  ;;  %p1512_p12 = scmp.lt.u32.totalorder %s1505_s21, %s2241_s3 }
  0x30   : > { %p1508_p10 = pnand %p1506_p4, %p1863_p8 }
  0x32   : > { %p1509_p11 = pneg %p1508_p10 }
  0x34   : > { %p1514_p13 = pnand %p1512_p12, %p1509_p11 }
  0x36   : > { %1517 = shalt.err (!%p1514_p13)
}
  0x37   : > { %s1518_s12 = scalar_lea.vmem %s1851_s16, 16  ;;  %s1525_s27 = scalar_lea.vmem %s1851_s16, 32 }
  0x38   : > { %p1519_p0 = scmp.ne.s32.totalorder %s1851_s16, %s1518_s12  ;;  %p1526_p7 = scmp.lt.s32.totalorder %s1851_s16, %s1851_s16 }
  0x39   : > { %p1527_p9 = scmp.lt.s32.totalorder %s1525_s27, %s1518_s12 }
  0x3a   : > { %p1521_p2 = pnand %p1519_p0, %p1863_p8 }
  0x3b   : > { %p1528_p4 = por %p1527_p9, %p1526_p7 }
  0x3c   : > { %p1522_p5 = pneg %p1521_p2 }
  0x3e   : > { %p1529_p10 = pnand %p1528_p4, %p1522_p5 }
  0x40   : > { %1532 = shalt.err (!%p1529_p10)
}
  0x41   : > { %1368 = dma.hbm_to_vmem [thread:$0]  (!%p1847_p6), %s2241_s3, 16, %s1851_s16, [#allocation11]  }
  0x42   : > { %s1533_s20 = scalar_lea.hbm %s2242_s4, 256 }
  0x43   : > { %p1534_p11 = scmp.ne.s32.totalorder %s2242_s4, %s1533_s20  ;;  %p1540_p0 = scmp.lt.u32.totalorder %s1533_s20, %s2242_s4 }
  0x45   : > { %p1536_p12 = pnand %p1534_p11, %p1863_p8 }
  0x47   : > { %p1537_p13 = pneg %p1536_p12 }
  0x49   : > { %p1542_p2 = pnand %p1540_p0, %p1537_p13 }
  0x4b   : > { %1545 = shalt.err (!%p1542_p2)
}
  0x4c   : > { %s1546_s16 = scalar_lea.vmem %s1853_s19, 256  ;;  %p1554_p4 = scmp.lt.s32.totalorder %s1853_s19, %s1853_s19 }
  0x4d   : > { %p1547_p5 = scmp.ne.s32.totalorder %s1853_s19, %s1546_s16  ;;  %p1555_p10 = scmp.lt.s32.totalorder %s1546_s16, %s1546_s16 }
  0x4f   : > { %p1549_p7 = pnand %p1547_p5, %p1863_p8  ;;  %p1556_p11 = por %p1555_p10, %p1554_p4 }
  0x51   : > { %p1550_p9 = pneg %p1549_p7 }
  0x53   : > { %p1557_p12 = pnand %p1556_p11, %p1550_p9 }
  0x55   : > { %1560 = shalt.err (!%p1557_p12)
}
  0x56   : > { %1371 = dma.hbm_to_vmem [thread:$0]  (!%p1847_p6), %s2242_s4, 256, %s1853_s19, [#allocation11], %s1736_s29, %s1736_s29, %s1737_s30  }
  0x57   : > { %s1738_s27 = smov [#allocation13]   ;;  %s1561_s18 = scalar_lea.hbm %s2243_s5, 16 }
  0x58   : > { %s292_s28 = sshll.u32 %s1738_s27, 4  ;;  %p1562_p13 = scmp.ne.s32.totalorder %s2243_s5, %s1561_s18  ;;  %s293_s28 = int_to_ptr.vmem [resolvable:$true] %s292_s28 }
  0x59   : > { %p1568_p5 = scmp.lt.u32.totalorder %s1561_s18, %s2243_s5 }
  0x5a   : > { %p1564_p0 = pnand %p1562_p13, %p1863_p8 }
  0x5c   : > { %p1565_p2 = pneg %p1564_p0 }
  0x5e   : > { %p1570_p7 = pnand %p1568_p5, %p1565_p2 }
  0x60   : > { %1573 = shalt.err (!%p1570_p7)
}
  0x61   : > { %s1574_s19 = scalar_lea.vmem %s293_s28, 16  ;;  %s1581_s29 = scalar_lea.vmem %s293_s28, 32 }
  0x62   : > { %p1575_p9 = scmp.ne.s32.totalorder %s293_s28, %s1574_s19  ;;  %p1582_p11 = scmp.lt.s32.totalorder %s293_s28, %s293_s28 }
  0x63   : > { %p1583_p12 = scmp.lt.s32.totalorder %s1581_s29, %s1574_s19 }
  0x64   : > { %p1577_p4 = pnand %p1575_p9, %p1863_p8 }
  0x65   : > { %p1584_p1 = por %p1583_p12, %p1582_p11 }
  0x66   : > { %p1578_p10 = pneg %p1577_p4 }
  0x68   : > { %p1585_p3 = pnand %p1584_p1, %p1578_p10 }
  0x6a   : > { %1588 = shalt.err (!%p1585_p3)
}
  0x6b   : > { %1374 = dma.hbm_to_vmem [thread:$0]  (!%p1847_p6), %s2243_s5, 16, %s293_s28, [#allocation14]  }
  0x6c   : > { %s1213_s25 = sadd.s32 4294967294, %s1731_s6   ;;  %s1957_s17 = sadd.s32 1, %s1731_s6  }
  0x6d   : > { %s37_s16 = ssub.s32 %s1731_s6, %s1957_s17  ;;  %s40_s26 = sadd.s32 1, %s1727_s11 }
  0x6e   : > { %p38_p1 = scmp.eq.s32.totalorder %s37_s16, 0  ;;  %p47_p3 = scmp.ne.s32.totalorder %s1727_s11, %s1723_s10 }
  0x6f   : > { %p48_p8 = scmp.eq.s32.totalorder %s1731_s6, 0  ;;  %p53_p13 = scmp.ne.s32.totalorder %s1723_s10, %s1719_s9 }
  0x70   : > { %s1968_s12 = scalar_select %p38_p1, %s1727_s11, %s40_s26  }
  0x71   : > { %p1970_p0 = por %p48_p8, %p47_p3  ;;  %p2258_p2 = scmp.eq.s32.totalorder %s1831_s13, 0 }
  0x72   : > { %p229_p5 = scmp.eq.s32.totalorder %s1831_s13, 1  ;;  %p235_p7 = scmp.eq.s32.totalorder %s1213_s25, 1 }
  0x73   : > { %p1976_p6 = por %p2258_p2, %p53_p13  ;;  %p1390_p9 = scmp.lt.s32.totalorder %s1731_s6, 2 }
  0x74   : > { %s1983_s7 = sand.u32 1, %s1727_s11   ;;  %p1985_p4 = por %p229_p5, %p47_p3 }
  0x75   : > { %s2259_s28 = scalar_select %p1976_p6, 1, 0 }
  0x76   : > { %s2260_s15 = scalar_select %p1985_p4, 1, 0 }
  0x77   : > { %p1989_p10 = por %p235_p7, %p53_p13  ;;  %s1220_s20 = sshll.u32 %s1983_s7, 3 }
  0x78   : > { %s1221_s21 = sshll.u32 %s1731_s6, 7  ;;  %s2262_s0 = sld [smem:[#allocation22_spill]] }
  0x79   : > { %s2261_s18 = scalar_select %p1989_p10, 1, 0 }
  0x7a   : > { %s313_s29 = scalar_lea.vmem [#allocation4], %s1220_s20  ;;  %p2004_p11 = pnand %p1390_p9, %p1970_p0 }
  0x7b   : > { %s320_s30 = sshll.u32 %s313_s29, 4  ;;  %s1222_s16 = sshll.u32 %s1983_s7, 1  ;;  %s2000_s30 = int_to_ptr.vmem [resolvable:$true] %s320_s30 }
  0x7c   : > { %s310_s26 = scalar_lea.sflag [#allocation5], %s1983_s7  ;;  %p1591_p1 = pneg %p2004_p11 }
  0x7e   : > { %s1998_s19 = scalar_lea.hbm %s2262_s0, %s1221_s21  ;;  %s1594_s27 = scalar_lea.hbm %s2262_s0, 256 }
  0x7f   : > { %s1589_s21 = scalar_lea.hbm %s1998_s19, 128  ;;  %p1595_p13 = scmp.lt.u32.totalorder %s1998_s19, %s2262_s0 }
  0x80   : > { %p1590_p12 = scmp.ne.s32.totalorder %s1998_s19, %s1589_s21  ;;  %p1596_p0 = scmp.lt.u32.totalorder %s1594_s27, %s1589_s21 }
  0x81   : > { %p1598_p5 = scmp.lt.u32.totalorder %s1589_s21, %s1998_s19 }
  0x82   : > { %p1592_p3 = pnand %p1591_p1, %p1590_p12  ;;  %p1597_p2 = por %p1596_p0, %p1595_p13 }
  0x84   : > { %p1593_p8 = pneg %p1592_p3  ;;  %p1599_p7 = por %p1598_p5, %p1597_p2 }
  0x86   : > { %p1600_p9 = pnand %p1599_p7, %p1593_p8 }
  0x88   : > { %1603 = shalt.err (!%p1600_p9)
}
  0x89   : > { %s1604_s25 = scalar_lea.vmem %s2000_s30, 128  ;;  %s1739_s20 = smov [#allocation4]  }
  0x8a   : > { %p1605_p12 = scmp.ne.s32.totalorder %s2000_s30, %s1604_s25  ;;  %s1609_s22 = sshll.u32 %s1739_s20, 4  ;;  %s1610_s22 = int_to_ptr.vmem [resolvable:$false] %s1609_s22 }
  0x8b   : > { %s1611_s23 = scalar_lea.vmem %s1610_s22, 256  ;;  %p1612_p4 = scmp.lt.s32.totalorder %s2000_s30, %s1610_s22 }
  0x8c   : > { %p1607_p3 = pnand %p1605_p12, %p1591_p1  ;;  %p1613_p13 = scmp.lt.s32.totalorder %s1611_s23, %s1604_s25 }
  0x8e   : > { %p1608_p10 = pneg %p1607_p3  ;;  %p1614_p0 = por %p1613_p13, %p1612_p4 }
  0x90   : > { %p1615_p2 = pnand %p1614_p0, %p1608_p10 }
  0x92   : > { %1618 = shalt.err (!%p1615_p2)
}
  0x93   : > { %1378 = dma.hbm_to_vmem [thread:$0]  (!%p2004_p11), %s1998_s19, 128, %s2000_s30, %s310_s26  }
  0x94   : > { %s1223_s21 = sshll.u32 %s1731_s6, 5  ;;  %s331_s25 = scalar_lea.vmem [#allocation7], %s1222_s16 }
  0x95   : > { %s2040_s20 = scalar_lea.hbm %s2239_s1, %s1223_s21  ;;  %s338_s22 = sshll.u32 %s331_s25, 4  ;;  %s339_s22 = int_to_ptr.vmem [resolvable:$true] %s338_s22 }
  0x96   : > { %s2264_s23 = sand.u32 1, %s1731_s6   ;;  %s1619_s2 = scalar_lea.hbm %s2040_s20, 32 }
  0x97   : > { %s328_s0 = scalar_lea.sflag [#allocation8], %s2264_s23  ;;  %p1620_p4 = scmp.ne.s32.totalorder %s2040_s20, %s1619_s2 }
  0x98   : > { %s1624_s26 = scalar_lea.hbm %s2239_s1, 64  ;;  %p1625_p5 = scmp.lt.u32.totalorder %s2040_s20, %s2239_s1 }
  0x99   : > { %p1622_p10 = pnand %p1620_p4, %p1591_p1  ;;  %p1626_p7 = scmp.lt.u32.totalorder %s1624_s26, %s1619_s2 }
  0x9a   : > { %p1628_p12 = scmp.lt.u32.totalorder %s1619_s2, %s2040_s20 }
  0x9b   : > { %p1623_p8 = pneg %p1622_p10  ;;  %p1627_p9 = por %p1626_p7, %p1625_p5 }
  0x9d   : > { %p1629_p3 = por %p1628_p12, %p1627_p9 }
  0x9f   : > { %p1630_p13 = pnand %p1629_p3, %p1623_p8 }
  0xa1   : > { %1633 = shalt.err (!%p1630_p13)
}
  0xa2   : > { %s1634_s16 = scalar_lea.vmem %s339_s22, 32  ;;  %s1740_s27 = smov [#allocation7]  }
  0xa3   : > { %p1635_p0 = scmp.ne.s32.totalorder %s339_s22, %s1634_s16  ;;  %s1639_s29 = sshll.u32 %s1740_s27, 4  ;;  %s1640_s29 = int_to_ptr.vmem [resolvable:$false] %s1639_s29 }
  0xa4   : > { %s1641_s25 = scalar_lea.vmem %s1640_s29, 64  ;;  %p1642_p10 = scmp.lt.s32.totalorder %s339_s22, %s1640_s29 }
  0xa5   : > { %p1637_p2 = pnand %p1635_p0, %p1591_p1  ;;  %p1643_p6 = scmp.lt.s32.totalorder %s1641_s25, %s1634_s16 }
  0xa7   : > { %p1638_p4 = pneg %p1637_p2  ;;  %p1644_p5 = por %p1643_p6, %p1642_p10 }
  0xa9   : > { %p1645_p7 = pnand %p1644_p5, %p1638_p4 }
  0xab   : > { %1648 = shalt.err (!%p1645_p7)
}
  0xac   : > { %1381 = dma.hbm_to_vmem [thread:$0]  (!%p2004_p11), %s2040_s20, 32, %s339_s22, %s328_s0  }
  0xad   : > { %p2265_p8 = scmp.ne.s32.totalorder %s2253_s14, 0 }
  0xae   : > { %s2068_s2 = sand.u32 (!%p2265_p8), 1, %s1723_s10   ;;  %p2266_p6 = scmp.ne.s32.totalorder (!%p2265_p8), %s2259_s28, 0 }
  0xaf   : > { %347 = sbr.rel (%p2265_p8) target bundleno = 2014 (0x7de), region = 52  ;;  %s1225_s23 = sshll.u32 (!%p2265_p8), %s2068_s2, 3 }
  0xb0   : > { %s350_s19 = scalar_lea.sflag (!%p2265_p8), [#allocation5], %s2068_s2  ;;  %s353_s30 = scalar_lea.vmem (!%p2265_p8), [#allocation4], %s1225_s23 }
  0xb6   : > { %1694 = dma.done.wait (%p2266_p6), %s350_s19, 128  }
  0xb7   : > { %1696 = vsyncadd (%p2266_p6), %s350_s19, 4294967168  ;;  %s358_s0 = sand.u32 1, %s1831_s13   ;;  %s1226_s14 = sshll.u32 %s2068_s2, 1 }
  0xb8   : > { %s359_s24 = scalar_lea.sflag [#allocation8], %s358_s0  ;;  %s2080_s20 = scalar_lea.vmem [#allocation7], %s1226_s14 }
  0xb9   : > { %1698 = dma.done.wait (%p2266_p6), %s359_s24, 32  }
  0xba   : > { %1700 = vsyncadd (%p2266_p6), %s359_s24, 4294967264  ;;  %p2267_p11 = scmp.eq.s32.totalorder %s1831_s13, 0 }
  0xbc   : > { %1702 = dma.done.wait (%p2267_p11), [#allocation8], 256   ;;  %p2268_p1 = pmov %p2267_p11 }
  0xbe   : > { %1704 = vsyncadd (%p2268_p1), [#allocation8], 4294967040  ;;  %p2269_p9 = pmov %p2268_p1 }
  0xbf   : > { %p2270_p12 = pmov %p2268_p1 }
  0xc0   : > { %1706 = dma.done.wait (%p2269_p9), [#allocation11], 272  }
  0xc1   : > { %1708 = vsyncadd (%p2270_p12), [#allocation11], 4294967024  ;;  %p2271_p3 = pmov %p2268_p1 }
  0xc2   : > { %p2272_p13 = pmov %p2268_p1 }
  0xc3   : > { %1710 = dma.done.wait (%p2271_p3), [#allocation14], 16  }
  0xc4   : > { %1712 = vsyncadd (%p2272_p13), [#allocation14], 4294967280  ;;  %v1741_v2 = vmov 0   ;;  %vm420_vm0 = vcmask 261120   ;;  %v2098_v3 = vld [vmem:[%s353_s30] sm:$0xff]  ;;  %v1453_v12 = vld [vmem:[#allocation9] sm:$0xff]  }
  0xc5   : > { %1451 = vset.pattern.permute.xlu1 %v1741_v2  ;;  %1452 = vset.pattern.permute.xlu0 %v1741_v2  ;;  %v1232_v4 = vld [vmem:[#allocation2] ss:$0 sm:$0xff]  ;;  %v421_v5 = vsel %vm420_vm0, %v2098_v3, 0.0  ;;  %v1233_v6 = vld [vmem:[#allocation3] ss:$0 sm:$0xff]  ;;  %v1742_v13 = vmov 0.0  }
  0xc6   : > { %438 = vperm.xlu1 %1451, %v1232_v4   ;;  %422 = vadd.xlane.f32.xlu0 %v421_v5  ;;  %v1454_v14 = vld [vmem:[#allocation9 + $0x8] sm:$0xff]   ;;  %vm1743_vm1 = vmmov 0   ;;  %v1234_v30 = vld [vmem:[#allocation10] ss:$0 sm:$0xff]  ;;  %s1744_s28 = smov 88   ;;  %s1745_s22 = smov 96  }
  0xc7   : > { %1276 = vmatprep.subr.bf16.mxu0 %v1742_v13  ;;  %1284 = vmatprep.subr.bf16.mxu1 %v1742_v13  ;;  %s1746_s26 = smov 80   ;;  %s1747_s7 = smov 120   ;;  %vm538_vm4 = vcmask 64512   ;;  %v532_v50 = vld [vmem:[%s2080_s20] sm:$0x3]  ;;  %vm603_vm6 = vcmask 1043456  }
  0xc8   : > { %1277 = vmatpush3.bf16.msra.mxu0 %v1453_v12  ;;  %1280 = vmatprep.mubr.msk.bf16.mxu0 %vm1743_vm1, %v1742_v13  ;;  %s1748_s21 = smov 112   ;;  %s1749_s16 = smov 72   ;;  %v533_v51 = vunpack.c.0.s8 %v532_v50  ;;  %vm994_vm7 = vcmask 130048   ;;  %vm996_vm8 = vcmask 195584  }
  0xc9   : > { %1278 = vmatprep.subr.bf16.mxu0 %v1742_v13  ;;  %1286 = vmatprep.mubr.msk.bf16.mxu1 %vm1743_vm1, %v1742_v13  ;;  %s1750_s27 = smov 104   ;;  %s1751_s29 = smov 64  }
  0xca   : > { %458 = vperm.xlu1 %1451, %v1233_v6   ;;  %vm2142_vm5 = vcmp.eq.s32.totalorder %v533_v51, 0  ;;  %s1752_s25 = smov 56   ;;  %s1753_s19 = smov 48  }
  0xcb   : > { %s1754_s30 = smov 40   ;;  %s1755_s0 = smov 8  }
  0xcc   : > { %1279 = vmatpush3.bf16.msra.mxu0 %v1454_v14  ;;  %s1756_s14 = smov 16   ;;  %s1757_s24 = smov 24  }
  0xcd   : > { %1290 = vmatprep.subr.bf16.mxu0 %v1742_v13  ;;  %s1251_s20 = sshll.u32 %s1831_s13, 7  ;;  %s1069_s13 = scalar_lea.sflag [#allocation6], %s2068_s2 }
  0xce   : > { %p2275_p2 = scmp.ne.s32.totalorder %s2260_s15, 0 }
 0x145   : > { %v439_v23 = vpop.permute.xlu1 %438 }
 0x149   : > { %v459_v27 = vpop.permute.xlu1 %458 }
 0x153   : > { %v423_v7 = vpop.xlane.xlu0 %422 }
 0x154   : > { %v425_v8 = vmul.f32 0.03125, %v423_v7 }
 0x156   : > { %v426_v9 = vsub.f32 %v2098_v3, %v425_v8 }
 0x158   : > { %v427_v10 = vmul.f32 %v426_v9, %v426_v9  ;;  %v441_v24 = vmul.f32 %v439_v23, %v426_v9 }
 0x15a   : > { %v428_v11 = vsel %vm420_vm0, %v427_v10, 0.0 }
 0x15b   : > { %429 = vadd.xlane.f32.xlu0 %v428_v11 }
 0x1e8   : > { %v430_v15 = vpop.xlane.xlu0 %429 }
 0x1e9   : > { %v431_v16 = vmul.f32 0.032258064, %v430_v15 }
 0x1eb   : > { %1457 = vrsqrt.f32 %v431_v16  ;;  %vm444_vm2 = vcmp.eq.f32.partialorder %v431_v16, inf  ;;  %v447_v19 = vand.u32 2147483648, %v431_v16  ;;  %vm446_vm3 = vcmp.eq.f32.partialorder %v431_v16, 0.0 }
 0x1f5   : > { %v1458_v17 = vpop.eup %1457 }
 0x1f6   : > { %v443_v18 = vmul.f32 %v1458_v17, %v431_v16 }
 0x1f8   : > { %v445_v20 = vsel %vm444_vm2, %v431_v16, %v443_v18 }
 0x1f9   : > { %v448_v21 = vsel %vm446_vm3, %v447_v19, %v445_v20 }
 0x1fa   : > { %v449_v22 = vadd.f32 1e-06, %v448_v21 }
 0x1fc   : > { %1459 = vrcp.f32 %v449_v22 }
 0x206   : > { %v1460_v25 = vpop.eup %1459 }
 0x207   : > { %v451_v26 = vmul.f32 %v1460_v25, %v441_v24 }
 0x209   : > { %v461_v28 = vadd.f32 %v459_v27, %v451_v26 }
 0x20b   : > { %v462_v29 = vpack.c.bf16 %v461_v28, %v461_v28 }
 0x20d   : > { %1281 = vmatmul.mubr.msk.bf16.vlgmr.msra.gmra.mrb[0].mxu0 %vm420_vm0, %v462_v29 }
 0x20e   : > { %1292 = vmatprep.mubr.msk.bf16.mxu0 %vm1743_vm1, %v1742_v13 }
 0x2e0   : > { %v523_v31 = vpop.f32.mrb[0].mxu0 }
 0x2e1   : > { %v524_v32 = vadd.f32 %v1234_v30, %v523_v31  ;;  %v1282_v33 = vpop.f32.mrb[1].mxu0 }
 0x2e2   : > { %v526_v34 = vpop.f32.mrb[2].mxu0 }
 0x2e3   : > { %v2115_v35 = vpack.c.bf16 %v524_v32, %v524_v32  ;;  %v1283_v36 = vpop.f32.mrb[3].mxu0  ;;  %v529_v37 = vmul.f32 0.35355338, %v524_v32 }
 0x2e5   : > { %650 = vrot.lane.b32.xlu1 %v2115_v35, %s1744_s28  ;;  %536 = vrot.lane.b32.xlu0 %v2115_v35, %s1745_s22  ;;  %v530_v38 = vpack.c.bf16 %v529_v37, %v529_v37  ;;  %s415_s28 = scalar_lea.vmem [#allocation15], %s1225_s23 }
 0x2e6   : > { %s1082_s22 = sshll.u32 %s415_s28, 4  ;;  %s2195_s22 = int_to_ptr.vmem [resolvable:$true] %s1082_s22 }
 0x2e7   : > { %s1649_s23 = scalar_lea.vmem %s2195_s22, 128 }
 0x2e8   : > { %p1650_p0 = scmp.ne.s32.totalorder %s2195_s22, %s1649_s23 }
 0x2e9   : > { %761 = vrot.lane.b32.xlu1 %v2115_v35, %s1746_s26 }
 0x2ea   : > { %p1651_p4 = pnand %p1650_p0, %p2275_p2 }
 0x2ec   : > { %p1652_p10 = pneg %p1651_p4 }
 0x2ed   : > { %648 = vrot.lane.b32.xlu1 %v530_v38, %s1747_s7 }
 0x2f1   : > { %759 = vrot.lane.b32.xlu1 %v530_v38, %s1748_s21  ;;  %s2193_s21 = scalar_lea.hbm %s2245_s8, %s1251_s20 }
 0x2f5   : > { %872 = vrot.lane.b32.xlu1 %v2115_v35, %s1749_s16  ;;  %s1758_s16 = smov [#allocation15]  }
 0x2f9   : > { %870 = vrot.lane.b32.xlu1 %v530_v38, %s1750_s27  ;;  %s1653_s27 = sshll.u32 %s1758_s16, 4  ;;  %s1654_s27 = int_to_ptr.vmem [resolvable:$false] %s1653_s27 }
 0x2fa   : > { %p1656_p5 = scmp.lt.s32.totalorder %s2195_s22, %s1654_s27 }
 0x357   : > { %v651_v39 = vpop.permute.xlu1 %650  ;;  %v537_v40 = vpop.permute.xlu0 %536 }
 0x358   : > { %v543_v41 = vsel %vm538_vm4, %v537_v40, 0  ;;  %v656_v43 = vsel %vm538_vm4, %v651_v39, 0 }
 0x359   : > { %1285 = vmatpush3.bf16.xpose.msra.mxu1 %v543_v41 }
 0x35a   : > { %1296 = vmatprep.subr.bf16.mxu1 %v1742_v13 }
 0x35b   : > { %v762_v42 = vpop.permute.xlu1 %761 }
 0x35c   : > { %v767_v46 = vsel %vm538_vm4, %v762_v42, 0 }
 0x35f   : > { %v649_v44 = vpop.permute.xlu1 %648 }
 0x360   : > { %1287 = vmatmul.mubr.msk.bf16.vlgmr.msra.gmra.mrb[0].mxu1 %vm538_vm4, %v530_v38 }
 0x361   : > { %1297 = vmatpush3.bf16.xpose.msra.mxu1 %v656_v43  ;;  %1298 = vmatprep.mubr.msk.bf16.mxu1 %vm1743_vm1, %v1742_v13 }
 0x362   : > { %1308 = vmatprep.subr.bf16.mxu1 %v1742_v13 }
 0x363   : > { %v760_v45 = vpop.permute.xlu1 %759 }
 0x367   : > { %v873_v47 = vpop.permute.xlu1 %872 }
 0x368   : > { %1299 = vmatmul.mubr.msk.bf16.vlgmr.msra.gmra.mrb[4].mxu1 %vm538_vm4, %v649_v44  ;;  %v878_v48 = vsel %vm538_vm4, %v873_v47, 0 }
 0x369   : > { %1309 = vmatpush3.bf16.xpose.msra.mxu1 %v767_v46  ;;  %1310 = vmatprep.mubr.msk.bf16.mxu1 %vm1743_vm1, %v1742_v13 }
 0x36a   : > { %1320 = vmatprep.subr.bf16.mxu1 %v1742_v13 }
 0x36b   : > { %v871_v49 = vpop.permute.xlu1 %870 }
 0x370   : > { %1311 = vmatmul.mubr.msk.bf16.vlgmr.msra.gmra.mrb[8].mxu1 %vm538_vm4, %v760_v45 }
 0x371   : > { %1321 = vmatpush3.bf16.xpose.msra.mxu1 %v878_v48  ;;  %1322 = vmatprep.mubr.msk.bf16.mxu1 %vm1743_vm1, %v1742_v13 }
 0x372   : > { %1332 = vmatprep.subr.bf16.mxu1 %v1742_v13 }
 0x378   : > { %1323 = vmatmul.mubr.msk.bf16.vlgmr.msra.gmra.mrb[12].mxu1 %vm538_vm4, %v871_v49 }
 0x379   : > { %1336 = vmatprep.mubr.msk.bf16.mxu1 %vm1743_vm1, %v1742_v13 }
 0x433   : > { %v579_v53 = vpop.f32.mrb[0].mxu1 }
 0x434   : > { %v585_v54 = vsel %vm2142_vm5, -1e+09, %v579_v53  ;;  %v1288_v55 = vpop.f32.mrb[1].mxu1 }
 0x435   : > { %v582_v56 = vpop.f32.mrb[2].mxu1  ;;  %v586_v57 = vsel %vm538_vm4, %v585_v54, -inf }
 0x436   : > { %587 = vmax.xlane.f32.xlu0 %v586_v57  ;;  %v1289_v58 = vpop.f32.mrb[3].mxu1 }
 0x43b   : > { %v692_v59 = vpop.f32.mrb[4].mxu1 }
 0x43c   : > { %v698_v60 = vsel %vm2142_vm5, -1e+09, %v692_v59  ;;  %v1300_v61 = vpop.f32.mrb[5].mxu1 }
 0x43d   : > { %v695_v62 = vpop.f32.mrb[6].mxu1  ;;  %v699_v63 = vsel %vm538_vm4, %v698_v60, -inf }
 0x43e   : > { %700 = vmax.xlane.f32.xlu1 %v699_v63  ;;  %v1301_v0 = vpop.f32.mrb[7].mxu1 }
 0x443   : > { %v803_v1 = vpop.f32.mrb[8].mxu1 }
 0x444   : > { %v809_v2 = vsel %vm2142_vm5, -1e+09, %v803_v1  ;;  %v1312_v4 = vpop.f32.mrb[9].mxu1 }
 0x445   : > { %v806_v5 = vpop.f32.mrb[10].mxu1  ;;  %v810_v6 = vsel %vm538_vm4, %v809_v2, -inf  ;;  %v1455_v4 = vld [vmem:[#allocation12] sm:$0xff]  }
 0x446   : > { %811 = vmax.xlane.f32.xlu0 %v810_v6  ;;  %v1313_v7 = vpop.f32.mrb[11].mxu1  ;;  %1333 = vmatpush3.bf16.msra.mxu1 %v1455_v4  ;;  %v1456_v5 = vld [vmem:[#allocation12 + $0x8] sm:$0xff]  }
 0x447   : > { %1334 = vmatprep.subr.bf16.mxu1 %v1742_v13 }
 0x44a   : > { %1335 = vmatpush3.bf16.msra.mxu1 %v1456_v5 }
 0x44b   : > { %v914_v8 = vpop.f32.mrb[12].mxu1 }
 0x44c   : > { %v920_v9 = vsel %vm2142_vm5, -1e+09, %v914_v8  ;;  %v1324_v10 = vpop.f32.mrb[13].mxu1 }
 0x44d   : > { %v917_v11 = vpop.f32.mrb[14].mxu1  ;;  %v921_v12 = vsel %vm538_vm4, %v920_v9, -inf }
 0x44e   : > { %922 = vmax.xlane.f32.xlu0 %v921_v12  ;;  %v1325_v14 = vpop.f32.mrb[15].mxu1 }
 0x4c3   : > { %v588_v15 = vpop.xlane.xlu0 %587 }
 0x4c4   : > { %v589_v16 = vsub.f32 %v585_v54, %v588_v15 }
 0x4c6   : > { %v590_v17 = vmul.f32 1.442695, %v589_v16 }
 0x4c8   : > { %1461 = vpow2.f32 %v590_v17 }
 0x4cb   : > { %v701_v18 = vpop.xlane.xlu1 %700 }
 0x4cc   : > { %v702_v19 = vsub.f32 %v698_v60, %v701_v18 }
 0x4ce   : > { %v703_v20 = vmul.f32 1.442695, %v702_v19 }
 0x4d0   : > { %1463 = vpow2.f32 %v703_v20 }
 0x4d2   : > { %v1462_v21 = vpop.eup %1461 }
 0x4d3   : > { %v592_v22 = vsel %vm538_vm4, %v1462_v21, 0.0  ;;  %v812_v23 = vpop.xlane.xlu0 %811 }
 0x4d4   : > { %593 = vadd.xlane.f32.xlu1 %v592_v22  ;;  %v813_v31 = vsub.f32 %v809_v2, %v812_v23  ;;  %v1249_v22 = vld [vmem:[#allocation13] ss:$0 sm:$0xff] }
 0x4d6   : > { %v814_v32 = vmul.f32 1.442695, %v813_v31 }
 0x4da   : > { %v1464_v24 = vpop.eup %1463 }
 0x4db   : > { %v923_v25 = vpop.xlane.xlu0 %922  ;;  %v705_v26 = vsel %vm538_vm4, %v1464_v24, 0.0 }
 0x4dc   : > { %v924_v27 = vsub.f32 %v920_v9, %v923_v25  ;;  %706 = vadd.xlane.f32.xlu0 %v705_v26 }
 0x4de   : > { %v925_v28 = vmul.f32 1.442695, %v924_v27 }
 0x4e0   : > { %1465 = vpow2.f32 %v925_v28 }
 0x4e1   : > { %1467 = vpow2.f32 %v814_v32 }
 0x4e5   : > { %598 = vrot.lane.b32.xlu1 %v2115_v35, %s1751_s29  ;;  %s1655_s29 = scalar_lea.vmem %s1654_s27, 256 }
 0x4e6   : > { %p1657_p7 = scmp.lt.s32.totalorder %s1655_s29, %s1649_s23 }
 0x4e8   : > { %p1658_p8 = por %p1657_p7, %p1656_p5 }
 0x4ea   : > { %v1466_v29 = vpop.eup %1465  ;;  %p1659_p6 = pnand %p1658_p8, %p1652_p10 }
 0x4eb   : > { %v927_v30 = vsel %vm538_vm4, %v1466_v29, 0.0  ;;  %v1468_v33 = vpop.eup %1467 }
 0x4ec   : > { %928 = vadd.xlane.f32.xlu0 %v927_v30  ;;  %v816_v34 = vsel %vm538_vm4, %v1468_v33, 0.0 }
 0x502   : > { %711 = vrot.lane.b32.xlu0 %v2115_v35, %s1752_s25 }
 0x509   : > { %817 = vadd.xlane.f32.xlu1 %v816_v34 }
 0x51a   : > { %822 = vrot.lane.b32.xlu1 %v2115_v35, %s1753_s19 }
 0x51e   : > { %933 = vrot.lane.b32.xlu1 %v2115_v35, %s1754_s30 }
 0x561   : > { %v594_v36 = vpop.xlane.xlu1 %593 }
 0x562   : > { %1469 = vrcp.f32 %v594_v36 }
 0x565   : > { %v599_v37 = vpop.permute.xlu1 %598 }
 0x566   : > { %v605_v38 = vsel %vm603_vm6, %v599_v37, 0 }
 0x567   : > { %1291 = vmatpush3.bf16.msra.mxu0 %v605_v38 }
 0x568   : > { %1302 = vmatprep.subr.bf16.mxu0 %v1742_v13 }
 0x569   : > { %v707_v40 = vpop.xlane.xlu0 %706 }
 0x56a   : > { %1471 = vrcp.f32 %v707_v40 }
 0x56c   : > { %v1470_v39 = vpop.eup %1469 }
 0x56d   : > { %v596_v41 = vmul.f32 %v1470_v39, %v1462_v21 }
 0x56f   : > { %v597_v42 = vpack.c.bf16 %v596_v41, %v596_v41 }
 0x571   : > { %1293 = vmatmul.mubr.msk.bf16.vlgmr.msra.gmra.mrb[4].mxu0 %vm538_vm4, %v597_v42 }
 0x572   : > { %1304 = vmatprep.mubr.msk.bf16.mxu0 %vm1743_vm1, %v1742_v13 }
 0x574   : > { %v1472_v35 = vpop.eup %1471 }
 0x575   : > { %v709_v44 = vmul.f32 %v1472_v35, %v1464_v24 }
 0x577   : > { %v710_v47 = vpack.c.bf16 %v709_v44, %v709_v44 }
 0x579   : > { %v929_v43 = vpop.xlane.xlu0 %928 }
 0x57d   : > { %v712_v45 = vpop.permute.xlu0 %711 }
 0x57e   : > { %v717_v46 = vsel %vm603_vm6, %v712_v45, 0 }
 0x57f   : > { %1303 = vmatpush3.bf16.msra.mxu0 %v717_v46 }
 0x580   : > { %1314 = vmatprep.subr.bf16.mxu0 %v1742_v13 }
 0x582   : > { %1305 = vmatmul.mubr.msk.bf16.vlgmr.msra.gmra.mrb[8].mxu0 %vm538_vm4, %v710_v47 }
 0x583   : > { %1316 = vmatprep.mubr.msk.bf16.mxu0 %vm1743_vm1, %v1742_v13 }
 0x596   : > { %v818_v48 = vpop.xlane.xlu1 %817 }
 0x597   : > { %1473 = vrcp.f32 %v818_v48 }
 0x598   : > { %1475 = vrcp.f32 %v929_v43 }
 0x59a   : > { %v823_v49 = vpop.permute.xlu1 %822 }
 0x59b   : > { %v828_v50 = vsel %vm603_vm6, %v823_v49, 0 }
 0x59c   : > { %1315 = vmatpush3.bf16.msra.mxu0 %v828_v50 }
 0x59d   : > { %1326 = vmatprep.subr.bf16.mxu0 %v1742_v13 }
 0x59e   : > { %v934_v53 = vpop.permute.xlu1 %933 }
 0x59f   : > { %v939_v56 = vsel %vm603_vm6, %v934_v53, 0 }
 0x5a1   : > { %v1474_v51 = vpop.eup %1473 }
 0x5a2   : > { %v820_v52 = vmul.f32 %v1474_v51, %v1468_v33  ;;  %v1476_v55 = vpop.eup %1475 }
 0x5a3   : > { %v931_v57 = vmul.f32 %v1476_v55, %v1466_v29 }
 0x5a4   : > { %v821_v54 = vpack.c.bf16 %v820_v52, %v820_v52 }
 0x5a5   : > { %v932_v58 = vpack.c.bf16 %v931_v57, %v931_v57 }
 0x5a6   : > { %1317 = vmatmul.mubr.msk.bf16.vlgmr.msra.gmra.mrb[12].mxu0 %vm538_vm4, %v821_v54 }
 0x5a7   : > { %1327 = vmatpush3.bf16.msra.mxu0 %v939_v56  ;;  %1328 = vmatprep.mubr.msk.bf16.mxu0 %vm1743_vm1, %v1742_v13 }
 0x5ae   : > { %1329 = vmatmul.mubr.msk.bf16.vlgmr.msra.gmra.mrb[16].mxu0 %vm538_vm4, %v932_v58 }
 0x644   : > { %v641_v59 = vpop.f32.mrb[4].mxu0 }
 0x645   : > { %v1294_v60 = vpop.f32.mrb[5].mxu0 }
 0x646   : > { %v644_v61 = vpop.f32.mrb[6].mxu0 }
 0x647   : > { %v1295_v62 = vpop.f32.mrb[7].mxu0 }
 0x655   : > { %v753_v63 = vpop.f32.mrb[8].mxu0 }
 0x656   : > { %982 = vrot.lane.b32.xlu0 %v753_v63, %s1755_s0  ;;  %v1306_v0 = vpop.f32.mrb[9].mxu0 }
 0x657   : > { %v756_v1 = vpop.f32.mrb[10].mxu0 }
 0x658   : > { %v1307_v2 = vpop.f32.mrb[11].mxu0 }
 0x679   : > { %v864_v6 = vpop.f32.mrb[12].mxu0 }
 0x67a   : > { %986 = vrot.lane.b32.xlu1 %v864_v6, %s1756_s14  ;;  %v1318_v7 = vpop.f32.mrb[13].mxu0 }
 0x67b   : > { %v867_v8 = vpop.f32.mrb[14].mxu0 }
 0x67c   : > { %v1319_v9 = vpop.f32.mrb[15].mxu0 }
 0x681   : > { %v975_v10 = vpop.f32.mrb[16].mxu0 }
 0x682   : > { %990 = vrot.lane.b32.xlu0 %v975_v10, %s1757_s24  ;;  %v1330_v11 = vpop.f32.mrb[17].mxu0 }
 0x683   : > { %v978_v12 = vpop.f32.mrb[18].mxu0 }
 0x684   : > { %v1331_v14 = vpop.f32.mrb[19].mxu0 }
 0x6c8   : > { %v983_v15 = vpop.permute.xlu0 %982 }
 0x6c9   : > { %v993_v13 = vsel %vm538_vm4, %v641_v59, %v983_v15 }
 0x6ec   : > { %v987_v16 = vpop.permute.xlu1 %986 }
 0x6ed   : > { %v995_v17 = vsel %vm994_vm7, %v993_v13, %v987_v16 }
 0x6f4   : > { %v991_v18 = vpop.permute.xlu0 %990 }
 0x6f5   : > { %v997_v19 = vsel %vm996_vm8, %v995_v17, %v991_v18 }
 0x6f6   : > { %v998_v20 = vpack.c.bf16 %v997_v19, %v997_v19 }
 0x6f8   : > { %1337 = vmatmul.mubr.msk.bf16.vlgmr.msra.gmra.mrb[16].mxu1 %vm420_vm0, %v998_v20 }
 0x7cb   : > { %v1052_v21 = vpop.f32.mrb[16].mxu1 }
 0x7cc   : > { %v1058_v23 = vadd.f32 %v1052_v21, %v2098_v3  ;;  %v1338_v24 = vpop.f32.mrb[17].mxu1 }
 0x7cd   : > { %v1055_v25 = vpop.f32.mrb[18].mxu1 }
 0x7ce   : > { %v1066_v26 = vadd.f32 %v1249_v22, %v1058_v23  ;;  %v1339_v27 = vpop.f32.mrb[19].mxu1 }
 0x7d0   : > { %1067 = vst.msk [vmem:[%s415_s28] sm:$0xff] %vm420_vm0, %v1066_v26 }
 0x7d1   : > { %1662 = shalt.err (!%p1659_p6)
}
 0x7d2   : > { %s1663_s2 = scalar_lea.hbm %s2193_s21, 128  ;;  %s1667_s30 = scalar_lea.hbm %s2245_s8, 256 }
 0x7d3   : > { %p1664_p11 = scmp.ne.s32.totalorder %s2193_s21, %s1663_s2  ;;  %p1668_p12 = scmp.lt.u32.totalorder %s2193_s21, %s2245_s8 }
 0x7d4   : > { %p1669_p3 = scmp.lt.u32.totalorder %s1667_s30, %s1663_s2  ;;  %p1671_p0 = scmp.lt.u32.totalorder %s1663_s2, %s2193_s21 }
 0x7d5   : > { %p1665_p1 = pnand %p1664_p11, %p2275_p2 }
 0x7d6   : > { %p1670_p13 = por %p1669_p3, %p1668_p12 }
 0x7d7   : > { %p1666_p9 = pneg %p1665_p1 }
 0x7d8   : > { %p1672_p4 = por %p1671_p0, %p1670_p13 }
 0x7da   : > { %p1673_p10 = pnand %p1672_p4, %p1666_p9 }
 0x7dc   : > { %1676 = shalt.err (!%p1673_p10)
}
 0x7dd   : > { %1360 = dma.vmem_to_hbm [thread:$0]  (%p2275_p2), %s2195_s22, 128, %s2193_s21, %s1069_s13  }
 0x7de PF: > { %s1094_s24 = sand.u32 1, %s1719_s9   ;;  %p2276_p5 = scmp.ne.s32.totalorder %s2261_s18, 0 }
 0x7df   : > { %p2277_p7 = scmp.ge.s32.totalorder %s1731_s6, 2  ;;  %s1095_s20 = scalar_lea.sflag [#allocation6], %s1094_s24 }
 0x7e1   : > { %p1383_p8 = pnand %p2277_p7, %p2276_p5 }
 0x7e3   : > { %1714 = dma.done.wait (!%p1383_p8), %s1095_s20, 128  }
 0x7e4   : > { %1716 = vsyncadd (!%p1383_p8), %s1095_s20, 4294967168  ;;  %p30_p6 = scmp.ge.s32.totalorder %s1957_s17, 4   ;;  %s2278_s9 = smov %s1723_s10 }
 0x7e5   : > { %s2279_s10 = smov %s1727_s11  ;;  %s2280_s11 = smov %s1968_s12 }
 0x7e6   : > { %s2281_s6 = smov %s1957_s17  ;;  %32 = sbr.rel (!%p30_p6) target bundleno = 12 (0xc), region = 126 }
 0x7ed   :  { %1100 = vsyncpa [#allocation5], 1 }
 0x7ee   :  { %1102 = vsyncpa [#allocation5 + $0x1], 1 }
 0x7ef   :  { %1103 = vsyncpa [#allocation8], 1 }
 0x7f0   :  { %1105 = vsyncpa [#allocation8 + $0x1], 1 }
 0x7f1   :  { %1106 = vsyncpa [#allocation11], 1 }
 0x7f2   :  { %1107 = vsyncpa [#allocation14], 1 }
 0x7f3   :  { %1108 = vsyncpa [#allocation6], 1 }
 0x7f4   :  { %1110 = vsyncpa [#allocation6 + $0x1], 1 }

</bundles_post_ra>
